<compile_context>
chip_gen: v5e
topology: v5e:2x2
jax: 0.10.0
libtpu: 0.0.40
codegen_flags: <defaults>
</compile_context>

<pallas_src>
import jax
import jax.numpy as jnp
import numpy as np
from jax.experimental import pallas as pl
from jax.experimental.pallas import tpu as pltpu

# ---- small, module-consistent problem sizes -------------------------------
B = 2             # batch
S = 16            # sequence length (multiple of 8 -> tile-aligned leading reshapes)
D = 128           # embed_dim (lane-dense)
H = 8             # num_heads (as in the module)
HEAD_DIM = D // H # 16
FF = 4 * D        # feed-forward hidden dim
SCALING = HEAD_DIM ** (-0.5)           # torch: self.scaling
INV_SCALING = float(1.0 / SCALING)     # torch divides scores by self.scaling
LN_EPS = 1e-5


def _layer_norm(x, gamma, beta):
    mean = jnp.mean(x, axis=-1, keepdims=True)
    var = jnp.mean((x - mean) ** 2, axis=-1, keepdims=True)
    return (x - mean) * jax.lax.rsqrt(var + LN_EPS) * gamma + beta


def encoder_layer_kernel(x_ref, wqkv_ref, bqkv_ref, w1_ref, b1_ref, w2_ref,
                         vec_ref, o_ref):
    # x arrives already flattened & lane-dense: (B*S, D).
    x = x_ref[...]

    # --- fused QKV projection (score scaling pre-folded into the Q columns) ---
    qkv = jnp.dot(x, wqkv_ref[...], preferred_element_type=jnp.float32) + bqkv_ref[...]
    q = qkv[:, :D].reshape(B, S, D)          # tile-aligned lane slices + leading reshape
    k = qkv[:, D:2 * D].reshape(B, S, D)
    v = qkv[:, 2 * D:].reshape(B, S, D)

    # --- attention ---
    # Per-head QK^T matmuls (static unrolled loop), stacked along the leading axis so
    # the softmax reductions / exp / reciprocal run ONCE over all heads.
    s_parts = []
    for h in range(H):
        sl = slice(h * HEAD_DIM, (h + 1) * HEAD_DIM)
        s_parts.append(jnp.einsum("bqd,bkd->bqk", q[:, :, sl], k[:, :, sl],
                                  preferred_element_type=jnp.float32))
    s = jnp.concatenate(s_parts, axis=0)                      # (H*B, S, S)
    s = s - jnp.max(s, axis=-1, keepdims=True)
    p = jnp.exp(s)
    p = p * pl.reciprocal(jnp.sum(p, axis=-1, keepdims=True), approx=False)  # exact

    ctx_parts = []
    for h in range(H):
        sl = slice(h * HEAD_DIM, (h + 1) * HEAD_DIM)
        ctx_parts.append(jnp.einsum("bqk,bkd->bqd", p[h * B:(h + 1) * B], v[:, :, sl],
                                    preferred_element_type=jnp.float32))
    attn = jnp.concatenate(ctx_parts, axis=-1).reshape(B * S, D)

    # --- packed (1, D) vectors: rows = [gamma1, beta1, gamma2, beta2, b2, pad x3] ---
    vecs = vec_ref[...]
    g1, be1 = vecs[0:1], vecs[1:2]
    g2, be2 = vecs[2:3], vecs[3:4]
    b2 = vecs[4:5]

    # --- residual + LayerNorm 1 ---
    out1 = _layer_norm(x + attn, g1, be1)

    # --- feed-forward network (all B*S rows through the MXU at once) ---
    h1 = jnp.dot(out1, w1_ref[...], preferred_element_type=jnp.float32) + b1_ref[...]
    h1 = jnp.maximum(h1, 0.0)
    ffn = jnp.dot(h1, w2_ref[...], preferred_element_type=jnp.float32) + b2

    # --- residual + LayerNorm 2 ---
    out2 = _layer_norm(out1 + ffn, g2, be2)
    o_ref[...] = out2.astype(o_ref.dtype)                     # (B*S, 128): unmasked stores


@jax.jit
def encoder_layer(x, params):
    wqkv, bqkv, w1, b1, w2, vec_pack = params
    x2d = x.reshape(B * S, D)                 # wrapper-side layout plumbing (free)
    vmem = lambda: pl.BlockSpec(memory_space=pltpu.MemorySpace.VMEM)
    out2d = pl.pallas_call(
        encoder_layer_kernel,
        out_shape=jax.ShapeDtypeStruct((B * S, D), x.dtype),
        in_specs=[vmem() for _ in range(7)],
        out_specs=vmem(),
    )(x2d, wqkv, bqkv, w1, b1, w2, vec_pack)
    return out2d.reshape(B, S, D)


def make_params(key):
    ks = jax.random.split(key, 10)
    scale = 0.05
    wq = scale * jax.random.normal(ks[0], (D, D), jnp.float32)
    bq = scale * jax.random.normal(ks[1], (1, D), jnp.float32)
    wk = scale * jax.random.normal(ks[2], (D, D), jnp.float32)
    bk = scale * jax.random.normal(ks[3], (1, D), jnp.float32)
    wv = scale * jax.random.normal(ks[4], (D, D), jnp.float32)
    bv = scale * jax.random.normal(ks[5], (1, D), jnp.float32)
    w1 = scale * jax.random.normal(ks[6], (D, FF), jnp.float32)
    b1 = scale * jax.random.normal(ks[7], (1, FF), jnp.float32)
    w2 = scale * jax.random.normal(ks[8], (FF, D), jnp.float32)
    b2 = scale * jax.random.normal(ks[9], (1, D), jnp.float32)
    # LayerNorm params: torch defaults (ones / zeros).
    g1, be1 = jnp.ones((1, D), jnp.float32), jnp.zeros((1, D), jnp.float32)
    g2, be2 = jnp.ones((1, D), jnp.float32), jnp.zeros((1, D), jnp.float32)

    # Packed forms consumed by the kernel.  The torch "/ self.scaling" (i.e. multiply
    # logits by sqrt(head_dim)) is folded into the Q projection here, for free.
    wqkv = jnp.concatenate([wq * INV_SCALING, wk, wv], axis=1)            # (D, 3D)
    bqkv = jnp.concatenate([bq * INV_SCALING, bk, bv], axis=1)            # (1, 3D)
    vec_pack = jnp.concatenate(
        [g1, be1, g2, be2, b2, jnp.zeros((3, D), jnp.float32)], axis=0)   # (8, D)
    kernel_params = (wqkv, bqkv, w1, b1, w2, vec_pack)
    raw_params = dict(wq=wq, bq=bq, wk=wk, bk=bk, wv=wv, bv=bv,
                      w1=w1, b1=b1, w2=w2, b2=b2, g1=g1, be1=be1, g2=g2, be2=be2)
    return kernel_params, raw_params


def reference(x, raw):
    # Pure-JAX mirror of the PyTorch forward pass (uses the RAW, unscaled params).
    hp = "highest"
    q = x @ raw["wq"] + raw["bq"]
    k = x @ raw["wk"] + raw["bk"]
    v = x @ raw["wv"] + raw["bv"]

    def split_heads(t):  # (B,S,D) -> (B,H,S,hd)
        return t.reshape(B, S, H, HEAD_DIM).transpose(0, 2, 1, 3)

    qh, kh, vh = split_heads(q), split_heads(k), split_heads(v)
    scores = jnp.einsum("bhqd,bhkd->bhqk", qh, kh, precision=hp) / SCALING
    w = jax.nn.softmax(scores, axis=-1)
    ctx = jnp.einsum("bhqk,bhkd->bhqd", w, vh,
                     precision=hp).transpose(0, 2, 1, 3).reshape(B, S, D)
    out1 = _layer_norm(x + ctx, raw["g1"], raw["be1"])
    h1 = jnp.maximum(jnp.einsum("bsd,df->bsf", out1, raw["w1"], precision=hp)
                     + raw["b1"], 0.0)
    ffn = jnp.einsum("bsf,fd->bsd", h1, raw["w2"], precision=hp) + raw["b2"]
    return _layer_norm(out1 + ffn, raw["g2"], raw["be2"])


if __name__ == "__main__":
    key = jax.random.PRNGKey(0)
    xkey, pkey = jax.random.split(key)
    x = jax.random.normal(xkey, (B, S, D), jnp.float32)
    kernel_params, raw_params = make_params(pkey)

    out = jax.block_until_ready(encoder_layer(x, kernel_params))
    ref = reference(x, raw_params)

    # Tolerance covers possible multi-pass f32 MXU rounding differences vs. XLA.
    np.testing.assert_allclose(np.asarray(out), np.asarray(ref), rtol=5e-3, atol=5e-3)
    print("KERNEL_OK")
</pallas_src>

<mosaic_0001>
module attributes {stable_mosaic.version = 11 : i64} {
  func.func @encoder_layer_kernel(%arg0: memref<32x128xf32, #tpu.memory_space<vmem>>, %arg1: memref<128x384xf32, #tpu.memory_space<vmem>>, %arg2: memref<1x384xf32, #tpu.memory_space<vmem>>, %arg3: memref<128x512xf32, #tpu.memory_space<vmem>>, %arg4: memref<1x512xf32, #tpu.memory_space<vmem>>, %arg5: memref<512x128xf32, #tpu.memory_space<vmem>>, %arg6: memref<8x128xf32, #tpu.memory_space<vmem>>, %arg7: memref<32x128xf32, #tpu.memory_space<vmem>>) attributes {dimension_semantics = [], scalar_prefetch = 0 : i64, scratch_operands = 0 : i64, tpu.core_type = #tpu.core_type<tc>} {
    %c0 = arith.constant 0 : index
    %c0_0 = arith.constant 0 : index
    %0 = vector.load %arg0[%c0, %c0_0] : memref<32x128xf32, #tpu.memory_space<vmem>>, vector<32x128xf32>
    %c0_1 = arith.constant 0 : index
    %c0_2 = arith.constant 0 : index
    %1 = vector.load %arg1[%c0_1, %c0_2] : memref<128x384xf32, #tpu.memory_space<vmem>>, vector<128x384xf32>
    %cst = arith.constant dense<0.000000e+00> : vector<32x384xf32>
    %2 = tpu.matmul %0, %1, %cst {dimension_numbers = #tpu.dot_dimension_numbers<[1], [0], [0], [1], [0, 0, 1, 1], [], []>} : vector<32x128xf32>, vector<128x384xf32>, vector<32x384xf32> -> vector<32x384xf32>
    %c0_3 = arith.constant 0 : index
    %c0_4 = arith.constant 0 : index
    %3 = vector.load %arg2[%c0_3, %c0_4] : memref<1x384xf32, #tpu.memory_space<vmem>>, vector<1x384xf32>
    %4 = vector.broadcast %3 : vector<1x384xf32> to vector<32x384xf32>
    %5 = arith.addf %2, %4 : vector<32x384xf32>
    %6 = vector.extract_strided_slice %5 {offsets = [0, 0], sizes = [32, 128], strides = [1, 1]} : vector<32x384xf32> to vector<32x128xf32>
    %7 = vector.shape_cast %6 : vector<32x128xf32> to vector<2x16x128xf32>
    %8 = vector.extract_strided_slice %5 {offsets = [0, 128], sizes = [32, 128], strides = [1, 1]} : vector<32x384xf32> to vector<32x128xf32>
    %9 = vector.shape_cast %8 : vector<32x128xf32> to vector<2x16x128xf32>
    %10 = vector.extract_strided_slice %5 {offsets = [0, 256], sizes = [32, 128], strides = [1, 1]} : vector<32x384xf32> to vector<32x128xf32>
    %11 = vector.shape_cast %10 : vector<32x128xf32> to vector<2x16x128xf32>
    %12 = vector.extract_strided_slice %7 {offsets = [0, 0, 0], sizes = [2, 16, 16], strides = [1, 1, 1]} : vector<2x16x128xf32> to vector<2x16x16xf32>
    %13 = vector.extract_strided_slice %9 {offsets = [0, 0, 0], sizes = [2, 16, 16], strides = [1, 1, 1]} : vector<2x16x128xf32> to vector<2x16x16xf32>
    "tpu.trace_start"() <{level = 10 : i32, message = "bqd,bkd->bqk"}> : () -> ()
    %cst_5 = arith.constant dense<0.000000e+00> : vector<2x16x16xf32>
    %14 = tpu.matmul %12, %13, %cst_5 {dimension_numbers = #tpu.dot_dimension_numbers<[2], [2], [1], [1], [0, 0, 0, 1, 1, 1], [0], [0]>} : vector<2x16x16xf32>, vector<2x16x16xf32>, vector<2x16x16xf32> -> vector<2x16x16xf32>
    "tpu.trace_stop"() : () -> ()
    %15 = vector.extract_strided_slice %7 {offsets = [0, 0, 16], sizes = [2, 16, 16], strides = [1, 1, 1]} : vector<2x16x128xf32> to vector<2x16x16xf32>
    %16 = vector.extract_strided_slice %9 {offsets = [0, 0, 16], sizes = [2, 16, 16], strides = [1, 1, 1]} : vector<2x16x128xf32> to vector<2x16x16xf32>
    "tpu.trace_start"() <{level = 10 : i32, message = "bqd,bkd->bqk"}> : () -> ()
    %cst_6 = arith.constant dense<0.000000e+00> : vector<2x16x16xf32>
    %17 = tpu.matmul %15, %16, %cst_6 {dimension_numbers = #tpu.dot_dimension_numbers<[2], [2], [1], [1], [0, 0, 0, 1, 1, 1], [0], [0]>} : vector<2x16x16xf32>, vector<2x16x16xf32>, vector<2x16x16xf32> -> vector<2x16x16xf32>
    "tpu.trace_stop"() : () -> ()
    %18 = vector.extract_strided_slice %7 {offsets = [0, 0, 32], sizes = [2, 16, 16], strides = [1, 1, 1]} : vector<2x16x128xf32> to vector<2x16x16xf32>
    %19 = vector.extract_strided_slice %9 {offsets = [0, 0, 32], sizes = [2, 16, 16], strides = [1, 1, 1]} : vector<2x16x128xf32> to vector<2x16x16xf32>
    "tpu.trace_start"() <{level = 10 : i32, message = "bqd,bkd->bqk"}> : () -> ()
    %cst_7 = arith.constant dense<0.000000e+00> : vector<2x16x16xf32>
    %20 = tpu.matmul %18, %19, %cst_7 {dimension_numbers = #tpu.dot_dimension_numbers<[2], [2], [1], [1], [0, 0, 0, 1, 1, 1], [0], [0]>} : vector<2x16x16xf32>, vector<2x16x16xf32>, vector<2x16x16xf32> -> vector<2x16x16xf32>
    "tpu.trace_stop"() : () -> ()
    %21 = vector.extract_strided_slice %7 {offsets = [0, 0, 48], sizes = [2, 16, 16], strides = [1, 1, 1]} : vector<2x16x128xf32> to vector<2x16x16xf32>
    %22 = vector.extract_strided_slice %9 {offsets = [0, 0, 48], sizes = [2, 16, 16], strides = [1, 1, 1]} : vector<2x16x128xf32> to vector<2x16x16xf32>
    "tpu.trace_start"() <{level = 10 : i32, message = "bqd,bkd->bqk"}> : () -> ()
    %cst_8 = arith.constant dense<0.000000e+00> : vector<2x16x16xf32>
    %23 = tpu.matmul %21, %22, %cst_8 {dimension_numbers = #tpu.dot_dimension_numbers<[2], [2], [1], [1], [0, 0, 0, 1, 1, 1], [0], [0]>} : vector<2x16x16xf32>, vector<2x16x16xf32>, vector<2x16x16xf32> -> vector<2x16x16xf32>
    "tpu.trace_stop"() : () -> ()
    %24 = vector.extract_strided_slice %7 {offsets = [0, 0, 64], sizes = [2, 16, 16], strides = [1, 1, 1]} : vector<2x16x128xf32> to vector<2x16x16xf32>
    %25 = vector.extract_strided_slice %9 {offsets = [0, 0, 64], sizes = [2, 16, 16], strides = [1, 1, 1]} : vector<2x16x128xf32> to vector<2x16x16xf32>
    "tpu.trace_start"() <{level = 10 : i32, message = "bqd,bkd->bqk"}> : () -> ()
    %cst_9 = arith.constant dense<0.000000e+00> : vector<2x16x16xf32>
    %26 = tpu.matmul %24, %25, %cst_9 {dimension_numbers = #tpu.dot_dimension_numbers<[2], [2], [1], [1], [0, 0, 0, 1, 1, 1], [0], [0]>} : vector<2x16x16xf32>, vector<2x16x16xf32>, vector<2x16x16xf32> -> vector<2x16x16xf32>
    "tpu.trace_stop"() : () -> ()
    %27 = vector.extract_strided_slice %7 {offsets = [0, 0, 80], sizes = [2, 16, 16], strides = [1, 1, 1]} : vector<2x16x128xf32> to vector<2x16x16xf32>
    %28 = vector.extract_strided_slice %9 {offsets = [0, 0, 80], sizes = [2, 16, 16], strides = [1, 1, 1]} : vector<2x16x128xf32> to vector<2x16x16xf32>
    "tpu.trace_start"() <{level = 10 : i32, message = "bqd,bkd->bqk"}> : () -> ()
    %cst_10 = arith.constant dense<0.000000e+00> : vector<2x16x16xf32>
    %29 = tpu.matmul %27, %28, %cst_10 {dimension_numbers = #tpu.dot_dimension_numbers<[2], [2], [1], [1], [0, 0, 0, 1, 1, 1], [0], [0]>} : vector<2x16x16xf32>, vector<2x16x16xf32>, vector<2x16x16xf32> -> vector<2x16x16xf32>
    "tpu.trace_stop"() : () -> ()
    %30 = vector.extract_strided_slice %7 {offsets = [0, 0, 96], sizes = [2, 16, 16], strides = [1, 1, 1]} : vector<2x16x128xf32> to vector<2x16x16xf32>
    %31 = vector.extract_strided_slice %9 {offsets = [0, 0, 96], sizes = [2, 16, 16], strides = [1, 1, 1]} : vector<2x16x128xf32> to vector<2x16x16xf32>
    "tpu.trace_start"() <{level = 10 : i32, message = "bqd,bkd->bqk"}> : () -> ()
    %cst_11 = arith.constant dense<0.000000e+00> : vector<2x16x16xf32>
    %32 = tpu.matmul %30, %31, %cst_11 {dimension_numbers = #tpu.dot_dimension_numbers<[2], [2], [1], [1], [0, 0, 0, 1, 1, 1], [0], [0]>} : vector<2x16x16xf32>, vector<2x16x16xf32>, vector<2x16x16xf32> -> vector<2x16x16xf32>
    "tpu.trace_stop"() : () -> ()
    %33 = vector.extract_strided_slice %7 {offsets = [0, 0, 112], sizes = [2, 16, 16], strides = [1, 1, 1]} : vector<2x16x128xf32> to vector<2x16x16xf32>
    %34 = vector.extract_strided_slice %9 {offsets = [0, 0, 112], sizes = [2, 16, 16], strides = [1, 1, 1]} : vector<2x16x128xf32> to vector<2x16x16xf32>
    "tpu.trace_start"() <{level = 10 : i32, message = "bqd,bkd->bqk"}> : () -> ()
    %cst_12 = arith.constant dense<0.000000e+00> : vector<2x16x16xf32>
    %35 = tpu.matmul %33, %34, %cst_12 {dimension_numbers = #tpu.dot_dimension_numbers<[2], [2], [1], [1], [0, 0, 0, 1, 1, 1], [0], [0]>} : vector<2x16x16xf32>, vector<2x16x16xf32>, vector<2x16x16xf32> -> vector<2x16x16xf32>
    "tpu.trace_stop"() : () -> ()
    %36 = tpu.concatenate %14, %17, %20, %23, %26, %29, %32, %35 in 0 : vector<2x16x16xf32>, vector<2x16x16xf32>, vector<2x16x16xf32>, vector<2x16x16xf32>, vector<2x16x16xf32>, vector<2x16x16xf32>, vector<2x16x16xf32>, vector<2x16x16xf32> -> vector<16x16x16xf32>
    %cst_13 = arith.constant dense<0xFF800000> : vector<16x16xf32>
    %37 = vector.multi_reduction <maximumf>, %36, %cst_13 [2] : vector<16x16x16xf32> to vector<16x16xf32>
    %38 = vector.shape_cast %37 : vector<16x16xf32> to vector<16x16x1xf32>
    %39 = vector.broadcast %38 : vector<16x16x1xf32> to vector<16x16x16xf32>
    %40 = arith.subf %36, %39 : vector<16x16x16xf32>
    %41 = math.exp %40 : vector<16x16x16xf32>
    %cst_14 = arith.constant dense<0.000000e+00> : vector<16x16xf32>
    %42 = vector.multi_reduction <add>, %41, %cst_14 [2] : vector<16x16x16xf32> to vector<16x16xf32>
    %43 = vector.shape_cast %42 : vector<16x16xf32> to vector<16x16x1xf32>
    %44 = tpu.reciprocal %43 : vector<16x16x1xf32> -> vector<16x16x1xf32>
    %45 = vector.broadcast %44 : vector<16x16x1xf32> to vector<16x16x16xf32>
    %46 = arith.mulf %41, %45 : vector<16x16x16xf32>
    %47 = vector.extract_strided_slice %46 {offsets = [0, 0, 0], sizes = [2, 16, 16], strides = [1, 1, 1]} : vector<16x16x16xf32> to vector<2x16x16xf32>
    %48 = vector.extract_strided_slice %11 {offsets = [0, 0, 0], sizes = [2, 16, 16], strides = [1, 1, 1]} : vector<2x16x128xf32> to vector<2x16x16xf32>
    "tpu.trace_start"() <{level = 10 : i32, message = "bqk,bkd->bqd"}> : () -> ()
    %cst_15 = arith.constant dense<0.000000e+00> : vector<2x16x16xf32>
    %49 = tpu.matmul %47, %48, %cst_15 {dimension_numbers = #tpu.dot_dimension_numbers<[2], [1], [1], [2], [0, 0, 0, 1, 1, 2], [0], [0]>} : vector<2x16x16xf32>, vector<2x16x16xf32>, vector<2x16x16xf32> -> vector<2x16x16xf32>
    "tpu.trace_stop"() : () -> ()
    %50 = vector.extract_strided_slice %46 {offsets = [2, 0, 0], sizes = [2, 16, 16], strides = [1, 1, 1]} : vector<16x16x16xf32> to vector<2x16x16xf32>
    %51 = vector.extract_strided_slice %11 {offsets = [0, 0, 16], sizes = [2, 16, 16], strides = [1, 1, 1]} : vector<2x16x128xf32> to vector<2x16x16xf32>
    "tpu.trace_start"() <{level = 10 : i32, message = "bqk,bkd->bqd"}> : () -> ()
    %cst_16 = arith.constant dense<0.000000e+00> : vector<2x16x16xf32>
    %52 = tpu.matmul %50, %51, %cst_16 {dimension_numbers = #tpu.dot_dimension_numbers<[2], [1], [1], [2], [0, 0, 0, 1, 1, 2], [0], [0]>} : vector<2x16x16xf32>, vector<2x16x16xf32>, vector<2x16x16xf32> -> vector<2x16x16xf32>
    "tpu.trace_stop"() : () -> ()
    %53 = vector.extract_strided_slice %46 {offsets = [4, 0, 0], sizes = [2, 16, 16], strides = [1, 1, 1]} : vector<16x16x16xf32> to vector<2x16x16xf32>
    %54 = vector.extract_strided_slice %11 {offsets = [0, 0, 32], sizes = [2, 16, 16], strides = [1, 1, 1]} : vector<2x16x128xf32> to vector<2x16x16xf32>
    "tpu.trace_start"() <{level = 10 : i32, message = "bqk,bkd->bqd"}> : () -> ()
    %cst_17 = arith.constant dense<0.000000e+00> : vector<2x16x16xf32>
    %55 = tpu.matmul %53, %54, %cst_17 {dimension_numbers = #tpu.dot_dimension_numbers<[2], [1], [1], [2], [0, 0, 0, 1, 1, 2], [0], [0]>} : vector<2x16x16xf32>, vector<2x16x16xf32>, vector<2x16x16xf32> -> vector<2x16x16xf32>
    "tpu.trace_stop"() : () -> ()
    %56 = vector.extract_strided_slice %46 {offsets = [6, 0, 0], sizes = [2, 16, 16], strides = [1, 1, 1]} : vector<16x16x16xf32> to vector<2x16x16xf32>
    %57 = vector.extract_strided_slice %11 {offsets = [0, 0, 48], sizes = [2, 16, 16], strides = [1, 1, 1]} : vector<2x16x128xf32> to vector<2x16x16xf32>
    "tpu.trace_start"() <{level = 10 : i32, message = "bqk,bkd->bqd"}> : () -> ()
    %cst_18 = arith.constant dense<0.000000e+00> : vector<2x16x16xf32>
    %58 = tpu.matmul %56, %57, %cst_18 {dimension_numbers = #tpu.dot_dimension_numbers<[2], [1], [1], [2], [0, 0, 0, 1, 1, 2], [0], [0]>} : vector<2x16x16xf32>, vector<2x16x16xf32>, vector<2x16x16xf32> -> vector<2x16x16xf32>
    "tpu.trace_stop"() : () -> ()
    %59 = vector.extract_strided_slice %46 {offsets = [8, 0, 0], sizes = [2, 16, 16], strides = [1, 1, 1]} : vector<16x16x16xf32> to vector<2x16x16xf32>
    %60 = vector.extract_strided_slice %11 {offsets = [0, 0, 64], sizes = [2, 16, 16], strides = [1, 1, 1]} : vector<2x16x128xf32> to vector<2x16x16xf32>
    "tpu.trace_start"() <{level = 10 : i32, message = "bqk,bkd->bqd"}> : () -> ()
    %cst_19 = arith.constant dense<0.000000e+00> : vector<2x16x16xf32>
    %61 = tpu.matmul %59, %60, %cst_19 {dimension_numbers = #tpu.dot_dimension_numbers<[2], [1], [1], [2], [0, 0, 0, 1, 1, 2], [0], [0]>} : vector<2x16x16xf32>, vector<2x16x16xf32>, vector<2x16x16xf32> -> vector<2x16x16xf32>
    "tpu.trace_stop"() : () -> ()
    %62 = vector.extract_strided_slice %46 {offsets = [10, 0, 0], sizes = [2, 16, 16], strides = [1, 1, 1]} : vector<16x16x16xf32> to vector<2x16x16xf32>
    %63 = vector.extract_strided_slice %11 {offsets = [0, 0, 80], sizes = [2, 16, 16], strides = [1, 1, 1]} : vector<2x16x128xf32> to vector<2x16x16xf32>
    "tpu.trace_start"() <{level = 10 : i32, message = "bqk,bkd->bqd"}> : () -> ()
    %cst_20 = arith.constant dense<0.000000e+00> : vector<2x16x16xf32>
    %64 = tpu.matmul %62, %63, %cst_20 {dimension_numbers = #tpu.dot_dimension_numbers<[2], [1], [1], [2], [0, 0, 0, 1, 1, 2], [0], [0]>} : vector<2x16x16xf32>, vector<2x16x16xf32>, vector<2x16x16xf32> -> vector<2x16x16xf32>
    "tpu.trace_stop"() : () -> ()
    %65 = vector.extract_strided_slice %46 {offsets = [12, 0, 0], sizes = [2, 16, 16], strides = [1, 1, 1]} : vector<16x16x16xf32> to vector<2x16x16xf32>
    %66 = vector.extract_strided_slice %11 {offsets = [0, 0, 96], sizes = [2, 16, 16], strides = [1, 1, 1]} : vector<2x16x128xf32> to vector<2x16x16xf32>
    "tpu.trace_start"() <{level = 10 : i32, message = "bqk,bkd->bqd"}> : () -> ()
    %cst_21 = arith.constant dense<0.000000e+00> : vector<2x16x16xf32>
    %67 = tpu.matmul %65, %66, %cst_21 {dimension_numbers = #tpu.dot_dimension_numbers<[2], [1], [1], [2], [0, 0, 0, 1, 1, 2], [0], [0]>} : vector<2x16x16xf32>, vector<2x16x16xf32>, vector<2x16x16xf32> -> vector<2x16x16xf32>
    "tpu.trace_stop"() : () -> ()
    %68 = vector.extract_strided_slice %46 {offsets = [14, 0, 0], sizes = [2, 16, 16], strides = [1, 1, 1]} : vector<16x16x16xf32> to vector<2x16x16xf32>
    %69 = vector.extract_strided_slice %11 {offsets = [0, 0, 112], sizes = [2, 16, 16], strides = [1, 1, 1]} : vector<2x16x128xf32> to vector<2x16x16xf32>
    "tpu.trace_start"() <{level = 10 : i32, message = "bqk,bkd->bqd"}> : () -> ()
    %cst_22 = arith.constant dense<0.000000e+00> : vector<2x16x16xf32>
    %70 = tpu.matmul %68, %69, %cst_22 {dimension_numbers = #tpu.dot_dimension_numbers<[2], [1], [1], [2], [0, 0, 0, 1, 1, 2], [0], [0]>} : vector<2x16x16xf32>, vector<2x16x16xf32>, vector<2x16x16xf32> -> vector<2x16x16xf32>
    "tpu.trace_stop"() : () -> ()
    %71 = tpu.concatenate %49, %52, %55, %58, %61, %64, %67, %70 in 2 : vector<2x16x16xf32>, vector<2x16x16xf32>, vector<2x16x16xf32>, vector<2x16x16xf32>, vector<2x16x16xf32>, vector<2x16x16xf32>, vector<2x16x16xf32>, vector<2x16x16xf32> -> vector<2x16x128xf32>
    %72 = vector.shape_cast %71 : vector<2x16x128xf32> to vector<32x128xf32>
    %c0_23 = arith.constant 0 : index
    %c0_24 = arith.constant 0 : index
    %73 = vector.load %arg6[%c0_23, %c0_24] : memref<8x128xf32, #tpu.memory_space<vmem>>, vector<8x128xf32>
    %74 = vector.extract_strided_slice %73 {offsets = [0, 0], sizes = [1, 128], strides = [1, 1]} : vector<8x128xf32> to vector<1x128xf32>
    %75 = vector.extract_strided_slice %73 {offsets = [1, 0], sizes = [1, 128], strides = [1, 1]} : vector<8x128xf32> to vector<1x128xf32>
    %76 = vector.extract_strided_slice %73 {offsets = [2, 0], sizes = [1, 128], strides = [1, 1]} : vector<8x128xf32> to vector<1x128xf32>
    %77 = vector.extract_strided_slice %73 {offsets = [3, 0], sizes = [1, 128], strides = [1, 1]} : vector<8x128xf32> to vector<1x128xf32>
    %78 = vector.extract_strided_slice %73 {offsets = [4, 0], sizes = [1, 128], strides = [1, 1]} : vector<8x128xf32> to vector<1x128xf32>
    %79 = arith.addf %0, %72 : vector<32x128xf32>
    %cst_25 = arith.constant dense<0.000000e+00> : vector<32xf32>
    %80 = vector.multi_reduction <add>, %79, %cst_25 [1] : vector<32x128xf32> to vector<32xf32>
    %81 = vector.shape_cast %80 : vector<32xf32> to vector<32x1xf32>
    %cst_26 = arith.constant 1.280000e+02 : f32
    %82 = vector.broadcast %cst_26 : f32 to vector<32x1xf32>
    %83 = arith.divf %81, %82 : vector<32x1xf32>
    %84 = vector.broadcast %83 : vector<32x1xf32> to vector<32x128xf32>
    %85 = arith.subf %79, %84 : vector<32x128xf32>
    %86 = arith.mulf %85, %85 : vector<32x128xf32>
    %cst_27 = arith.constant dense<0.000000e+00> : vector<32xf32>
    %87 = vector.multi_reduction <add>, %86, %cst_27 [1] : vector<32x128xf32> to vector<32xf32>
    %88 = vector.shape_cast %87 : vector<32xf32> to vector<32x1xf32>
    %cst_28 = arith.constant 1.280000e+02 : f32
    %89 = vector.broadcast %cst_28 : f32 to vector<32x1xf32>
    %90 = arith.divf %88, %89 : vector<32x1xf32>
    %91 = vector.broadcast %83 : vector<32x1xf32> to vector<32x128xf32>
    %92 = arith.subf %79, %91 : vector<32x128xf32>
    %cst_29 = arith.constant 9.99999974E-6 : f32
    %93 = vector.broadcast %cst_29 : f32 to vector<32x1xf32>
    %94 = arith.addf %90, %93 : vector<32x1xf32>
    %95 = math.rsqrt %94 : vector<32x1xf32>
    %96 = vector.broadcast %95 : vector<32x1xf32> to vector<32x128xf32>
    %97 = arith.mulf %92, %96 : vector<32x128xf32>
    %98 = vector.broadcast %74 : vector<1x128xf32> to vector<32x128xf32>
    %99 = arith.mulf %97, %98 : vector<32x128xf32>
    %100 = vector.broadcast %75 : vector<1x128xf32> to vector<32x128xf32>
    %101 = arith.addf %99, %100 : vector<32x128xf32>
    %c0_30 = arith.constant 0 : index
    %c0_31 = arith.constant 0 : index
    %102 = vector.load %arg3[%c0_30, %c0_31] : memref<128x512xf32, #tpu.memory_space<vmem>>, vector<128x512xf32>
    %cst_32 = arith.constant dense<0.000000e+00> : vector<32x512xf32>
    %103 = tpu.matmul %101, %102, %cst_32 {dimension_numbers = #tpu.dot_dimension_numbers<[1], [0], [0], [1], [0, 0, 1, 1], [], []>} : vector<32x128xf32>, vector<128x512xf32>, vector<32x512xf32> -> vector<32x512xf32>
    %c0_33 = arith.constant 0 : index
    %c0_34 = arith.constant 0 : index
    %104 = vector.load %arg4[%c0_33, %c0_34] : memref<1x512xf32, #tpu.memory_space<vmem>>, vector<1x512xf32>
    %105 = vector.broadcast %104 : vector<1x512xf32> to vector<32x512xf32>
    %106 = arith.addf %103, %105 : vector<32x512xf32>
    %cst_35 = arith.constant 0.000000e+00 : f32
    %107 = vector.broadcast %cst_35 : f32 to vector<32x512xf32>
    %108 = arith.maximumf %106, %107 : vector<32x512xf32>
    %c0_36 = arith.constant 0 : index
    %c0_37 = arith.constant 0 : index
    %109 = vector.load %arg5[%c0_36, %c0_37] : memref<512x128xf32, #tpu.memory_space<vmem>>, vector<512x128xf32>
    %cst_38 = arith.constant dense<0.000000e+00> : vector<32x128xf32>
    %110 = tpu.matmul %108, %109, %cst_38 {dimension_numbers = #tpu.dot_dimension_numbers<[1], [0], [0], [1], [0, 0, 1, 1], [], []>} : vector<32x512xf32>, vector<512x128xf32>, vector<32x128xf32> -> vector<32x128xf32>
    %111 = vector.broadcast %78 : vector<1x128xf32> to vector<32x128xf32>
    %112 = arith.addf %110, %111 : vector<32x128xf32>
    %113 = arith.addf %101, %112 : vector<32x128xf32>
    %cst_39 = arith.constant dense<0.000000e+00> : vector<32xf32>
    %114 = vector.multi_reduction <add>, %113, %cst_39 [1] : vector<32x128xf32> to vector<32xf32>
    %115 = vector.shape_cast %114 : vector<32xf32> to vector<32x1xf32>
    %cst_40 = arith.constant 1.280000e+02 : f32
    %116 = vector.broadcast %cst_40 : f32 to vector<32x1xf32>
    %117 = arith.divf %115, %116 : vector<32x1xf32>
    %118 = vector.broadcast %117 : vector<32x1xf32> to vector<32x128xf32>
    %119 = arith.subf %113, %118 : vector<32x128xf32>
    %120 = arith.mulf %119, %119 : vector<32x128xf32>
    %cst_41 = arith.constant dense<0.000000e+00> : vector<32xf32>
    %121 = vector.multi_reduction <add>, %120, %cst_41 [1] : vector<32x128xf32> to vector<32xf32>
    %122 = vector.shape_cast %121 : vector<32xf32> to vector<32x1xf32>
    %cst_42 = arith.constant 1.280000e+02 : f32
    %123 = vector.broadcast %cst_42 : f32 to vector<32x1xf32>
    %124 = arith.divf %122, %123 : vector<32x1xf32>
    %125 = vector.broadcast %117 : vector<32x1xf32> to vector<32x128xf32>
    %126 = arith.subf %113, %125 : vector<32x128xf32>
    %cst_43 = arith.constant 9.99999974E-6 : f32
    %127 = vector.broadcast %cst_43 : f32 to vector<32x1xf32>
    %128 = arith.addf %124, %127 : vector<32x1xf32>
    %129 = math.rsqrt %128 : vector<32x1xf32>
    %130 = vector.broadcast %129 : vector<32x1xf32> to vector<32x128xf32>
    %131 = arith.mulf %126, %130 : vector<32x128xf32>
    %132 = vector.broadcast %76 : vector<1x128xf32> to vector<32x128xf32>
    %133 = arith.mulf %131, %132 : vector<32x128xf32>
    %134 = vector.broadcast %77 : vector<1x128xf32> to vector<32x128xf32>
    %135 = arith.addf %133, %134 : vector<32x128xf32>
    %c0_44 = arith.constant 0 : index
    %c0_45 = arith.constant 0 : index
    %136 = vector.load %arg7[%c0_44, %c0_45] : memref<32x128xf32, #tpu.memory_space<vmem>>, vector<32x128xf32>
    tpu.vector_store %arg7[%c0_44, %c0_45], %135 {strides = array<i32>} : memref<32x128xf32, #tpu.memory_space<vmem>>, vector<32x128xf32>,
    return
  }
}

</mosaic_0001>

<bundles_post_ra>
// kernel: encoder_layer.1
= control target key start
LH: loop header
LB: loop body
LE: loop exit
PB: predicated region body
PF: predicated region fallthrough
CT: control target
= control target key end

     0   :  { %12 = vsyncpa [#allocation3], 0  ;;  %s4584_s0 = inlined_call_operand.hbm [shape: f32[32,128], index: 0, kind: input, shape index: {}]   ;;  %s4585_s1 = inlined_call_operand.hbm [shape: f32[128,384], index: 1, kind: input, shape index: {}]   ;;  %s4586_s2 = inlined_call_operand.hbm [shape: f32[1,384], index: 2, kind: input, shape index: {}]   ;;  %s4587_s3 = inlined_call_operand.hbm [shape: f32[128,512], index: 3, kind: input, shape index: {}]   ;;  %s4588_s4 = inlined_call_operand.vmem [shape: f32[1,512], index: 4, kind: input, shape index: {}]   ;;  %s4589_s5 = inlined_call_operand.hbm [shape: f32[512,128], index: 5, kind: input, shape index: {}]   ;;  %s4590_s6 = inlined_call_operand.hbm [shape: f32[8,128], index: 6, kind: input, shape index: {}]   ;;  %s4591_s7 = inlined_call_operand.hbm [shape: f32[32,128], index: 7, kind: output, shape index: {}]  }
   0x1   :  { %13 = vsyncpa [#allocation6], 0 }
   0x2   :  { %14 = vsyncpa [#allocation9], 0 }
   0x3   :  { %15 = vsyncpa [#allocation12], 0  ;;  %s34_s26 = sshll.u32 %s4585_s1, 4  ;;  %s35_s26 = int_to_ptr.hbm [resolvable:$true] %s34_s26 }
   0x4   :  { %16 = vsyncpa [#allocation4], 0  ;;  %s3470_s27 = smov [#allocation5]   ;;  %s58_s8 = sshll.u32 %s4587_s3, 4  ;;  %s59_s8 = int_to_ptr.hbm [resolvable:$true] %s58_s8 }
   0x5   :  { %s36_s28 = sshll.u32 %s3470_s27, 4  ;;  %s3471_s9 = smov 384   ;;  %s37_s28 = int_to_ptr.vmem [resolvable:$true] %s36_s28 }
   0x6   :  { %s3472_s10 = smov 24   ;;  %s3473_s11 = smov [#allocation8]  }
   0x7   :  { %42 = dma.hbm_to_vmem [thread:$0]  %s35_s26, 6144, %s37_s28, [#allocation6], %s3471_s9, %s3471_s9, %s3472_s10  }
   0x8   :  { %s60_s12 = sshll.u32 %s3473_s11, 4  ;;  %s3474_s13 = smov 512   ;;  %s61_s12 = int_to_ptr.vmem [resolvable:$true] %s60_s12 }
   0x9   :  { %s3475_s14 = smov 32   ;;  %s21_s16 = sshll.u32 %s4584_s0, 4  ;;  %s22_s16 = int_to_ptr.hbm [resolvable:$true] %s21_s16 }
   0xa   :  { %66 = dma.hbm_to_vmem [thread:$0]  %s59_s8, 8192, %s61_s12, [#allocation9], %s3474_s13, %s3474_s13, %s3475_s14  }
   0xb   :  { %s3476_s17 = smov [#allocation2]   ;;  %s48_s20 = sshll.u32 %s4586_s2, 4  ;;  %s49_s20 = int_to_ptr.hbm [resolvable:$true] %s48_s20 }
   0xc   :  { %s23_s18 = sshll.u32 %s3476_s17, 4  ;;  %s3477_s21 = smov 128   ;;  %s24_s18 = int_to_ptr.vmem [resolvable:$true] %s23_s18 }
   0xd   :  { %s3478_s22 = smov 8   ;;  %s3479_s23 = smov [#allocation7]  }
   0xe   :  { %29 = dma.hbm_to_vmem [thread:$0]  %s22_s16, 512, %s24_s18, [#allocation3], %s3477_s21, %s3477_s21, %s3478_s22  }
   0xf   :  { %s50_s24 = sshll.u32 %s3479_s23, 4  ;;  %s73_s0 = sshll.u32 %s4589_s5, 4  ;;  %s51_s24 = int_to_ptr.vmem [resolvable:$true] %s50_s24  ;;  %s74_s0 = int_to_ptr.hbm [resolvable:$true] %s73_s0 }
  0x10   :  { %53 = dma.hbm_to_vmem [thread:$0]  %s49_s20, 48, %s51_s24, [#allocation6]  }
  0x11   :  { %s87_s2 = sshll.u32 %s4590_s6, 4  ;;  %s3480_s29 = smov [#allocation10]   ;;  %s88_s2 = int_to_ptr.hbm [resolvable:$true] %s87_s2 }
  0x12   :  { %s75_s30 = sshll.u32 %s3480_s29, 4  ;;  %s3481_s8 = smov [#allocation11]   ;;  %s76_s30 = int_to_ptr.vmem [resolvable:$true] %s75_s30 }
  0x13   :  { %81 = dma.hbm_to_vmem [thread:$0]  %s74_s0, 8192, %s76_s30, [#allocation9], %s3477_s21, %s3477_s21, %s3478_s22  }
  0x14   :  { %s89_s9 = sshll.u32 %s3481_s8, 4  ;;  %s90_s9 = int_to_ptr.vmem [resolvable:$true] %s89_s9 }
  0x15   :  { %92 = dma.hbm_to_vmem [thread:$0]  %s88_s2, 128, %s90_s9, [#allocation12]  }
  0x16   :  { %3460 = dma.done.wait [#allocation3], 512  }
  0x17   :  { %3461 = vsyncadd [#allocation3], 4294966784 }
  0x18   :  { %3462 = dma.done.wait [#allocation6], 6192  }
  0x19   :  { %3463 = vsyncadd [#allocation6], 4294961104 }
  0x1a   :  { %3464 = dma.done.wait [#allocation9], 16384  }
  0x1b   :  { %3465 = vsyncadd [#allocation9], 4294950912 }
  0x1c   :  { %3466 = dma.done.wait [#allocation12], 128  }
  0x1d   :  { %3467 = vsyncadd [#allocation12], 4294967168  ;;  %v166_v0 = vld [vmem:[#allocation5 + $0x168] sm:$0xff]  ;;  %v167_v1 = vld [vmem:[#allocation5 + $0x170] sm:$0xff]  ;;  %s3482_s5 = smov 112   ;;  %s3483_s6 = smov 48  }
  0x1e   :  { %v163_v2 = vld [vmem:[#allocation5 + $0x150] sm:$0xff]  ;;  %177 = vmatpush.msra.mxu0 %v166_v0  ;;  %206 = vmatpush.msra.mxu1 %v167_v1  ;;  %v164_v3 = vld [vmem:[#allocation5 + $0x158] sm:$0xff]  ;;  %v161_v5 = vld [vmem:[#allocation5 + $0x140] sm:$0xff]  ;;  %vm264_vm0 = vcmask 130048   ;;  %s3484_s10 = smov 64   ;;  %s3485_s11 = smov 80  }
  0x1f   :  { %v160_v4 = vld [vmem:[#allocation5 + $0x138] sm:$0xff]  ;;  %v157_v6 = vld [vmem:[#allocation5 + $0x120] sm:$0xff]  ;;  %v158_v7 = vld [vmem:[#allocation5 + $0x128] sm:$0xff]  ;;  %s3486_s12 = smov 16   ;;  %s3487_s13 = smov 96  }
  0x20   :  { %178 = vmatpush.msra.mxu0 %v163_v2  ;;  %207 = vmatpush.msra.mxu1 %v164_v3  ;;  %v154_v8 = vld [vmem:[#allocation5 + $0x108] sm:$0xff]  ;;  %v155_v9 = vld [vmem:[#allocation5 + $0x110] sm:$0xff]  ;;  %v152_v11 = vld [vmem:[#allocation5 + $0xf8] sm:$0xff]  ;;  %s2940_s18 = sshll.u32 %s4591_s7, 4  ;;  %s2941_s18 = int_to_ptr.hbm [resolvable:$true] %s2940_s18 }
  0x21   :  { %v151_v10 = vld [vmem:[#allocation5 + $0xf0] sm:$0xff]  ;;  %v148_v12 = vld [vmem:[#allocation5 + $0xd8] sm:$0xff]  ;;  %v149_v13 = vld [vmem:[#allocation5 + $0xe0] sm:$0xff] }
  0x22   :  { %179 = vmatpush.msra.mxu0 %v160_v4  ;;  %208 = vmatpush.msra.mxu1 %v161_v5  ;;  %v168_v14 = vld [vmem:[#allocation5 + $0x178] sm:$0xff]  ;;  %v165_v15 = vld [vmem:[#allocation5 + $0x160] sm:$0xff]  ;;  %v146_v17 = vld [vmem:[#allocation5 + $0xc8] sm:$0xff] }
  0x23   :  { %v145_v16 = vld [vmem:[#allocation5 + $0xc0] sm:$0xff]  ;;  %235 = vmatpush.msra.mxu2 %v168_v14  ;;  %v162_v18 = vld [vmem:[#allocation5 + $0x148] sm:$0xff]  ;;  %v143_v20 = vld [vmem:[#allocation5 + $0xb0] sm:$0xff] }
  0x24   :  { %180 = vmatpush.msra.mxu0 %v157_v6  ;;  %209 = vmatpush.msra.mxu1 %v158_v7  ;;  %v142_v19 = vld [vmem:[#allocation5 + $0xa8] sm:$0xff]  ;;  %v159_v21 = vld [vmem:[#allocation5 + $0x130] sm:$0xff]  ;;  %v140_v23 = vld [vmem:[#allocation5 + $0x98] sm:$0xff] }
  0x25   :  { %236 = vmatpush.msra.mxu2 %v165_v15  ;;  %v139_v22 = vld [vmem:[#allocation5 + $0x90] sm:$0xff]  ;;  %v156_v24 = vld [vmem:[#allocation5 + $0x118] sm:$0xff]  ;;  %v137_v26 = vld [vmem:[#allocation5 + $0x80] sm:$0xff] }
  0x26   :  { %181 = vmatpush.msra.mxu0 %v154_v8  ;;  %210 = vmatpush.msra.mxu1 %v155_v9  ;;  %v136_v25 = vld [vmem:[#allocation5 + $0x78] sm:$0xff]  ;;  %v153_v27 = vld [vmem:[#allocation5 + $0x100] sm:$0xff]  ;;  %v134_v29 = vld [vmem:[#allocation5 + $0x68] sm:$0xff] }
  0x27   :  { %237 = vmatpush.msra.mxu2 %v162_v18  ;;  %v133_v28 = vld [vmem:[#allocation5 + $0x60] sm:$0xff]  ;;  %v150_v30 = vld [vmem:[#allocation5 + $0xe8] sm:$0xff]  ;;  %v131_v32 = vld [vmem:[#allocation5 + $0x50] sm:$0xff] }
  0x28   :  { %182 = vmatpush.msra.mxu0 %v151_v10  ;;  %211 = vmatpush.msra.mxu1 %v152_v11  ;;  %v130_v31 = vld [vmem:[#allocation5 + $0x48] sm:$0xff]  ;;  %v147_v33 = vld [vmem:[#allocation5 + $0xd0] sm:$0xff]  ;;  %v128_v35 = vld [vmem:[#allocation5 + $0x38] sm:$0xff] }
  0x29   :  { %238 = vmatpush.msra.mxu2 %v159_v21  ;;  %v127_v34 = vld [vmem:[#allocation5 + $0x30] sm:$0xff]  ;;  %v144_v36 = vld [vmem:[#allocation5 + $0xb8] sm:$0xff]  ;;  %v125_v38 = vld [vmem:[#allocation5 + $0x20] sm:$0xff] }
  0x2a   :  { %183 = vmatpush.msra.mxu0 %v148_v12  ;;  %212 = vmatpush.msra.mxu1 %v149_v13  ;;  %v124_v37 = vld [vmem:[#allocation5 + $0x18] sm:$0xff]  ;;  %v141_v39 = vld [vmem:[#allocation5 + $0xa0] sm:$0xff]  ;;  %v122_v41 = vld [vmem:[#allocation5 + $0x8] sm:$0xff] }
  0x2b   :  { %239 = vmatpush.msra.mxu2 %v156_v24  ;;  %v121_v40 = vld [vmem:[#allocation5] sm:$0xff]  ;;  %v138_v43 = vld [vmem:[#allocation5 + $0x88] sm:$0xff]  ;;  %v135_v44 = vld [vmem:[#allocation5 + $0x70] sm:$0xff] }
  0x2c   :  { %184 = vmatpush.msra.mxu0 %v145_v16  ;;  %213 = vmatpush.msra.mxu1 %v146_v17  ;;  %v117_v42 = vld [vmem:[#allocation2] sm:$0xff]  ;;  %v132_v45 = vld [vmem:[#allocation5 + $0x58] sm:$0xff]  ;;  %v118_v47 = vld [vmem:[#allocation2 + $0x8] sm:$0xff] }
  0x2d   :  { %240 = vmatpush.msra.mxu2 %v153_v27  ;;  %v129_v46 = vld [vmem:[#allocation5 + $0x40] sm:$0xff]  ;;  %v126_v48 = vld [vmem:[#allocation5 + $0x28] sm:$0xff]  ;;  %v123_v49 = vld [vmem:[#allocation5 + $0x10] sm:$0xff] }
  0x2e   :  { %185 = vmatpush.msra.mxu0 %v142_v19  ;;  %214 = vmatpush.msra.mxu1 %v143_v20  ;;  %v119_v50 = vld [vmem:[#allocation2 + $0x10] sm:$0xff]  ;;  %v120_v51 = vld [vmem:[#allocation2 + $0x18] sm:$0xff]  ;;  %v169_v52 = vld [vmem:[#allocation7] sm:$0x7] }
  0x2f   :  { %241 = vmatpush.msra.mxu2 %v150_v30  ;;  %v171_v53 = vperm.slane %v169_v52, 0  ;;  %v172_v54 = vperm.slane %v169_v52, 1  ;;  %v3585_v8 = vperm.slane %v169_v52, 2 }
  0x30   :  { %186 = vmatpush.msra.mxu0 %v139_v22  ;;  %215 = vmatpush.msra.mxu1 %v140_v23 }
  0x31   :  { %242 = vmatpush.msra.mxu2 %v147_v33 }
  0x32   :  { %187 = vmatpush.msra.mxu0 %v136_v25  ;;  %216 = vmatpush.msra.mxu1 %v137_v26 }
  0x33   :  { %243 = vmatpush.msra.mxu2 %v144_v36 }
  0x34   :  { %188 = vmatpush.msra.mxu0 %v133_v28  ;;  %217 = vmatpush.msra.mxu1 %v134_v29 }
  0x35   :  { %244 = vmatpush.msra.mxu2 %v141_v39 }
  0x36   :  { %189 = vmatpush.msra.mxu0 %v130_v31  ;;  %218 = vmatpush.msra.mxu1 %v131_v32 }
  0x37   :  { %245 = vmatpush.msra.mxu2 %v138_v43 }
  0x38   :  { %190 = vmatpush.msra.mxu0 %v127_v34  ;;  %219 = vmatpush.msra.mxu1 %v128_v35 }
  0x39   :  { %246 = vmatpush.msra.mxu2 %v135_v44 }
  0x3a   :  { %191 = vmatpush.msra.mxu0 %v124_v37  ;;  %220 = vmatpush.msra.mxu1 %v125_v38 }
  0x3b   :  { %247 = vmatpush.msra.mxu2 %v132_v45 }
  0x3c   :  { %192 = vmatpush.msra.mxu0 %v121_v40  ;;  %221 = vmatpush.msra.mxu1 %v122_v41 }
  0x3d   :  { %193 = vmatmul.f32.vlgmr.msra.gmra.mxu0 %v117_v42  ;;  %222 = vmatmul.f32.vlgmr.msra.gmra.mxu1 %v117_v42 }
  0x3e   :  { %248 = vmatpush.msra.mxu2 %v129_v46 }
  0x40   :  { %249 = vmatpush.msra.mxu2 %v126_v48 }
  0x42   :  { %250 = vmatpush.msra.mxu2 %v123_v49 }
  0x43   :  { %251 = vmatmul.f32.vlgmr.msra.gmra.mxu2 %v117_v42 }
  0x45   :  { %225 = vmatmul.f32.gmra.mxu1 %v118_v47  ;;  %196 = vmatmul.f32.gmra.mxu0 %v118_v47 }
  0x4b   :  { %254 = vmatmul.f32.gmra.mxu2 %v118_v47 }
  0x4d   :  { %228 = vmatmul.f32.gmra.mxu1 %v119_v50  ;;  %199 = vmatmul.f32.gmra.mxu0 %v119_v50 }
  0x53   :  { %257 = vmatmul.f32.gmra.mxu2 %v119_v50 }
  0x55   :  { %231 = vmatmul.f32.gmra.mxu1 %v120_v51  ;;  %202 = vmatmul.f32.gmra.mxu0 %v120_v51 }
  0x5b   :  { %260 = vmatmul.f32.gmra.mxu2 %v120_v51 }
  0xba   :  { %v194_v55 = vpop.f32.mrf.mxu0  ;;  %v223_v56 = vpop.f32.mrf.mxu1 }
  0xbb   :  { %v195_v57 = vadd.f32 %v194_v55, %v171_v53  ;;  %v224_v58 = vadd.f32 %v223_v56, %v172_v54 }
  0xbd   :  { %339 = vrot.lane.b32.xlu0 %v224_v58, %s3482_s5  ;;  %647 = vrot.lane.b32.xlu2 %v195_v57, %s3483_s6 }
  0xbe   :  { %335 = vrot.lane.b32.xlu1 %v195_v57, %s3482_s5 }
  0xc2   :  { %v226_v59 = vpop.f32.mrf.mxu1  ;;  %v197_v61 = vpop.f32.mrf.mxu0 }
  0xc3   :  { %v227_v60 = vadd.f32 %v226_v59, %v172_v54  ;;  %v198_v63 = vadd.f32 %v197_v61, %v171_v53 }
  0xc5   :  { %2956 = vmatpush.xpose.msk.msra.mxu3 %vm264_vm0, %v227_v60  ;;  %573 = vrot.lane.b32.xlu2 %v224_v58, %s3484_s10 }
  0xc6   :  { %491 = vrot.lane.b32.xlu0 %v195_v57, %s3485_s11  ;;  %495 = vrot.lane.b32.xlu1 %v224_v58, %s3485_s11  ;;  %v252_v5 = vpop.f32.mrf.mxu2 }
  0xc7   :  { %v3590_v10 = vadd.f32 %v252_v5, %v3585_v8 }
  0xc9   :  { %2957 = vmatpush.xpose.msk.msra.mxu3 %vm264_vm0, %v224_v58 }
  0xca   :  { %v229_v62 = vpop.f32.mrf.mxu1  ;;  %v200_v3 = vpop.f32.mrf.mxu0 }
  0xcb   :  { %v230_v2 = vadd.f32 %v229_v62, %v172_v54  ;;  %v201_v4 = vadd.f32 %v200_v3, %v171_v53 }
  0xcc   :  { %2958 = vmatmul.msk.f32.vlgmr.msra.gmra.mxu3 %vm264_vm0, %v195_v57 }
  0xcd   :  { %803 = vrot.lane.b32.xlu2 %v195_v57, %s3486_s12 }
  0xce   :  { %417 = vrot.lane.b32.xlu0 %v224_v58, %s3487_s13  ;;  %413 = vrot.lane.b32.xlu1 %v195_v57, %s3487_s13  ;;  %v255_v9 = vpop.f32.mrf.mxu2 }
  0xcf   :  { %v3594_v11 = vadd.f32 %v255_v9, %v3585_v8 }
  0xd1   :  { %v3600_v12 = vpack.i.bf16 %v3590_v10, %v3594_v11 }
  0xd2   :  { %v232_v0 = vpop.f32.mrf.mxu1  ;;  %v203_v6 = vpop.f32.mrf.mxu0 }
  0xd3   :  { %v3571_v1 = vadd.f32 %v232_v0, %v172_v54  ;;  %v3583_v7 = vadd.f32 %v203_v6, %v171_v53 }
  0xd4   :  { %2959 = vmatmul.msk.f32.gmra.mxu3 %vm264_vm0, %v198_v63 }
  0xd5   :  { %497 = vrot.lane.b32.xlu2 %v227_v60, %s3485_s11  ;;  %2960 = vmatpush.xpose.msk.msrb.mxu3 %vm264_vm0, %v3571_v1 }
  0xd6   :  { %651 = vrot.lane.b32.xlu0 %v224_v58, %s3483_s6  ;;  %569 = vrot.lane.b32.xlu1 %v195_v57, %s3484_s10  ;;  %v258_v26 = vpop.f32.mrf.mxu2 }
  0xd7   :  { %v3669_v33 = vadd.f32 %v258_v26, %v3585_v8 }
  0xd9   :  { %2961 = vmatpush.xpose.msk.msrb.mxu3 %vm264_vm0, %v230_v2 }
  0xdc   :  { %2962 = vmatmul.msk.f32.vlgmr.msrb.gmra.mxu3 %vm264_vm0, %v201_v4 }
  0xdd   :  { %575 = vrot.lane.b32.xlu2 %v227_v60, %s3484_s10 }
  0xde   :  { %807 = vrot.lane.b32.xlu0 %v224_v58, %s3486_s12  ;;  %725 = vrot.lane.b32.xlu1 %v195_v57, %s3475_s14  ;;  %v261_v32 = vpop.f32.mrf.mxu2 }
  0xdf   :  { %v3674_v34 = vadd.f32 %v261_v32, %v3585_v8 }
  0xe1   :  { %v3684_v38 = vpack.i.bf16 %v3669_v33, %v3674_v34 }
  0xe4   :  { %2963 = vmatmul.msk.f32.gmra.mxu3 %vm264_vm0, %v3583_v7 }
  0xe5   :  { %809 = vrot.lane.b32.xlu2 %v227_v60, %s3486_s12 }
  0xe6   :  { %729 = vrot.lane.b32.xlu0 %v224_v58, %s3475_s14  ;;  %337 = vrot.lane.b32.xlu1 %v198_v63, %s3482_s5 }
  0xed   :  { %727 = vrot.lane.b32.xlu2 %v198_v63, %s3475_s14 }
  0xee   :  { %341 = vrot.lane.b32.xlu0 %v227_v60, %s3482_s5  ;;  %419 = vrot.lane.b32.xlu1 %v227_v60, %s3487_s13 }
  0xf5   :  { %3078 = vrot.lane.b32.xlu2 %v3600_v12, %s3485_s11 }
  0xf6   :  { %653 = vrot.lane.b32.xlu0 %v227_v60, %s3483_s6  ;;  %493 = vrot.lane.b32.xlu1 %v198_v63, %s3485_s11 }
  0xfd   :  { %3083 = vrot.lane.b32.xlu2 %v3600_v12, %s3487_s13 }
  0xfe   :  { %415 = vrot.lane.b32.xlu0 %v198_v63, %s3487_s13  ;;  %571 = vrot.lane.b32.xlu1 %v198_v63, %s3484_s10 }
 0x105   :  { %374 = vrot.lane.b32.xlu2 %v201_v4, %s3482_s5 }
 0x106   :  { %649 = vrot.lane.b32.xlu0 %v198_v63, %s3483_s6  ;;  %805 = vrot.lane.b32.xlu1 %v198_v63, %s3486_s12 }
 0x10d   :  { %534 = vrot.lane.b32.xlu2 %v230_v2, %s3485_s11 }
 0x10e   :  { %731 = vrot.lane.b32.xlu0 %v227_v60, %s3475_s14  ;;  %3073 = vrot.lane.b32.xlu1 %v3600_v12, %s3482_s5 }
 0x115   :  { %690 = vrot.lane.b32.xlu2 %v230_v2, %s3483_s6 }
 0x116   :  { %3088 = vrot.lane.b32.xlu0 %v3600_v12, %s3483_s6  ;;  %530 = vrot.lane.b32.xlu1 %v201_v4, %s3485_s11 }
 0x117   :  { %v3621_v13 = vpop.permute.xlu2 %647 }
 0x11d   :  { %846 = vrot.lane.b32.xlu2 %v230_v2, %s3486_s12 }
 0x11e   :  { %378 = vrot.lane.b32.xlu0 %v230_v2, %s3482_s5  ;;  %686 = vrot.lane.b32.xlu1 %v201_v4, %s3483_s6 }
 0x11f   :  { %v3626_v14 = vpop.permute.xlu2 %573 }
 0x125   :  { %380 = vrot.lane.b32.xlu2 %v3571_v1, %s3482_s5 }
 0x126   :  { %456 = vrot.lane.b32.xlu0 %v230_v2, %s3487_s13  ;;  %612 = vrot.lane.b32.xlu1 %v230_v2, %s3484_s10 }
 0x127   :  { %v3632_v15 = vpop.permute.xlu2 %803 }
 0x12d   :  { %376 = vrot.lane.b32.xlu2 %v3583_v7, %s3482_s5 }
 0x12e   :  { %452 = vrot.lane.b32.xlu0 %v201_v4, %s3487_s13  ;;  %768 = vrot.lane.b32.xlu1 %v230_v2, %s3475_s14 }
 0x12f   :  { %v340_v16 = vpop.permute.xlu0 %339  ;;  %v498_v17 = vpop.permute.xlu2 %497 }
 0x130   :  { %v336_v18 = vpop.permute.xlu1 %335  ;;  %2980 = vmatpush.xpose.msk.msrb.mxu2 %vm264_vm0, %v498_v17 }
 0x135   :  { %536 = vrot.lane.b32.xlu2 %v3571_v1, %s3485_s11 }
 0x136   :  { %608 = vrot.lane.b32.xlu0 %v201_v4, %s3484_s10  ;;  %458 = vrot.lane.b32.xlu1 %v3571_v1, %s3487_s13 }
 0x137   :  { %v576_v19 = vpop.permute.xlu2 %575 }
 0x138   :  { %v492_v20 = vpop.permute.xlu0 %491  ;;  %v496_v21 = vpop.permute.xlu1 %495 }
 0x139   :  { %2981 = vmatpush.xpose.msk.msrb.mxu2 %vm264_vm0, %v496_v21 }
 0x13c   :  { %2982 = vmatmul.msk.f32.vlgmr.msrb.gmra.mxu2 %vm264_vm0, %v492_v20 }
 0x13d   :  { %614 = vrot.lane.b32.xlu2 %v3571_v1, %s3484_s10 }
 0x13e   :  { %842 = vrot.lane.b32.xlu0 %v201_v4, %s3486_s12  ;;  %532 = vrot.lane.b32.xlu1 %v3583_v7, %s3485_s11 }
 0x13f   :  { %v810_v22 = vpop.permute.xlu2 %809 }
 0x140   :  { %v418_v23 = vpop.permute.xlu0 %417  ;;  %v414_v24 = vpop.permute.xlu1 %413 }
 0x145   :  { %688 = vrot.lane.b32.xlu2 %v3583_v7, %s3483_s6 }
 0x146   :  { %764 = vrot.lane.b32.xlu0 %v201_v4, %s3475_s14  ;;  %692 = vrot.lane.b32.xlu1 %v3571_v1, %s3483_s6 }
 0x147   :  { %v3656_v25 = vpop.permute.xlu2 %727 }
 0x148   :  { %v652_v27 = vpop.permute.xlu0 %651  ;;  %v570_v28 = vpop.permute.xlu1 %569 }
 0x14d   :  { %848 = vrot.lane.b32.xlu2 %v3571_v1, %s3486_s12 }
 0x14e   :  { %454 = vrot.lane.b32.xlu0 %v3583_v7, %s3487_s13  ;;  %610 = vrot.lane.b32.xlu1 %v3583_v7, %s3484_s10 }
 0x14f   :  { %v3664_v29 = vpop.permute.xlu2 %3078  ;;  %v3712_v45 = vpop.f32.mrf.mxu3 }
 0x150   :  { %v808_v30 = vpop.permute.xlu0 %807  ;;  %v3666_v31 = vpop.permute.xlu1 %725  ;;  %v3080_v59 = vunpack.i.l.bf16 %v3664_v29  ;;  %v3081_v60 = vunpack.i.h.bf16 %v3664_v29 }
 0x155   :  { %844 = vrot.lane.b32.xlu2 %v3583_v7, %s3486_s12 }
 0x156   :  { %770 = vrot.lane.b32.xlu0 %v3571_v1, %s3475_s14  ;;  %766 = vrot.lane.b32.xlu1 %v3583_v7, %s3475_s14  ;;  %v881_v7 = vsel %vm264_vm0, %v3712_v45, -inf }
 0x157   :  { %v3680_v35 = vpop.permute.xlu2 %3083  ;;  %v3722_v49 = vpop.f32.mrf.mxu3 }
 0x158   :  { %v730_v36 = vpop.permute.xlu0 %729  ;;  %v338_v37 = vpop.permute.xlu1 %337  ;;  %v884_v61 = vsel %vm264_vm0, %v3722_v49, -inf  ;;  %v3085_v1 = vunpack.i.l.bf16 %v3680_v35  ;;  %v3086_v3 = vunpack.i.h.bf16 %v3680_v35 }
 0x15d   :  { %3113 = vrot.lane.b32.xlu2 %v3684_v38, %s3483_s6 }
 0x15e   :  { %3093 = vrot.lane.b32.xlu0 %v3684_v38, %s3482_s5  ;;  %3098 = vrot.lane.b32.xlu1 %v3684_v38, %s3485_s11 }
 0x15f   :  { %v3692_v39 = vpop.permute.xlu2 %374  ;;  %v3728_v54 = vpop.f32.mrf.mxu3 }
 0x160   :  { %v342_v40 = vpop.permute.xlu0 %341  ;;  %v420_v41 = vpop.permute.xlu1 %419  ;;  %v887_v5 = vsel %vm264_vm0, %v3728_v54, -inf }
 0x161   :  { %2964 = vmatpush.xpose.msk.msra.mxu3 %vm264_vm0, %v342_v40  ;;  %2972 = vmatpush.xpose.msk.msrb.mxu0 %vm264_vm0, %v420_v41 }
 0x165   :  { %2965 = vmatpush.xpose.msk.msra.mxu3 %vm264_vm0, %v340_v16  ;;  %2973 = vmatpush.xpose.msk.msrb.mxu0 %vm264_vm0, %v418_v23 }
 0x166   :  { %3108 = vrot.lane.b32.xlu0 %v3684_v38, %s3487_s13  ;;  %3103 = vrot.lane.b32.xlu1 %v3600_v12, %s3484_s10 }
 0x167   :  { %v3703_v42 = vpop.permute.xlu2 %534  ;;  %v3746_v2 = vpop.f32.mrf.mxu3 }
 0x168   :  { %v654_v43 = vpop.permute.xlu0 %653  ;;  %2974 = vmatmul.msk.f32.vlgmr.msrb.gmra.mxu0 %vm264_vm0, %v414_v24  ;;  %v494_v44 = vpop.permute.xlu1 %493  ;;  %2966 = vmatmul.msk.f32.vlgmr.msra.gmra.mxu3 %vm264_vm0, %v336_v18  ;;  %v890_v4 = vsel %vm264_vm0, %v3746_v2, -inf }
 0x169   :  { %2988 = vmatpush.xpose.msk.msra.mxu0 %vm264_vm0, %v576_v19  ;;  %2983 = vmatmul.msk.f32.gmra.mxu2 %vm264_vm0, %v494_v44 }
 0x16a   :  { %2996 = vmatpush.xpose.msk.msra.mxu2 %vm264_vm0, %v654_v43 }
 0x16d   :  { %2989 = vmatpush.xpose.msk.msra.mxu0 %vm264_vm0, %v3626_v14 }
 0x16e   :  { %2997 = vmatpush.xpose.msk.msra.mxu2 %vm264_vm0, %v652_v27 }
 0x16f   :  { %v3715_v46 = vpop.permute.xlu2 %690 }
 0x170   :  { %v416_v47 = vpop.permute.xlu0 %415  ;;  %v572_v48 = vpop.permute.xlu1 %571  ;;  %2967 = vmatmul.msk.f32.gmra.mxu3 %vm264_vm0, %v338_v37 }
 0x171   :  { %2975 = vmatmul.msk.f32.gmra.mxu0 %vm264_vm0, %v416_v47  ;;  %2998 = vmatmul.msk.f32.vlgmr.msra.gmra.mxu2 %vm264_vm0, %v3621_v13 }
 0x172   :  { %3012 = vmatpush.xpose.msk.msrb.mxu2 %vm264_vm0, %v810_v22 }
 0x176   :  { %3013 = vmatpush.xpose.msk.msrb.mxu2 %vm264_vm0, %v808_v30 }
 0x177   :  { %v3724_v50 = vpop.permute.xlu2 %846 }
 0x178   :  { %v650_v51 = vpop.permute.xlu0 %649  ;;  %v806_v52 = vpop.permute.xlu1 %805 }
 0x179   :  { %2990 = vmatmul.msk.f32.vlgmr.msra.gmra.mxu0 %vm264_vm0, %v570_v28  ;;  %2999 = vmatmul.msk.f32.gmra.mxu2 %vm264_vm0, %v650_v51 }
 0x17f   :  { %v381_v53 = vpop.permute.xlu2 %380 }
 0x180   :  { %v732_v55 = vpop.permute.xlu0 %731  ;;  %v3074_v56 = vpop.permute.xlu1 %3073  ;;  %2968 = vmatpush.xpose.msk.msrb.mxu3 %vm264_vm0, %v381_v53 }
 0x181   :  { %v3075_v57 = vunpack.i.l.bf16 %v3074_v56  ;;  %2991 = vmatmul.msk.f32.gmra.mxu0 %vm264_vm0, %v572_v48  ;;  %3014 = vmatmul.msk.f32.vlgmr.msrb.gmra.mxu2 %vm264_vm0, %v3632_v15  ;;  %v3076_v58 = vunpack.i.h.bf16 %v3074_v56 }
 0x182   :  { %3004 = vmatpush.xpose.msk.msrb.mxu0 %vm264_vm0, %v732_v55 }
 0x183   :  { %1735 = vmatpush.msra.mxu2 %v3075_v57 }
 0x185   :  { %1736 = vmatpush.msra.mxu2 %v3076_v58 }
 0x186   :  { %3005 = vmatpush.xpose.msk.msrb.mxu0 %vm264_vm0, %v730_v36  ;;  %885 = vmax.xlane.f32.xlu2 %v884_v61 }
 0x187   :  { %1877 = vmatpush.msrb.mxu2 %v3080_v59  ;;  %v377_v62 = vpop.permute.xlu2 %376 }
 0x188   :  { %v3741_v63 = vpop.permute.xlu0 %3088  ;;  %v531_v0 = vpop.permute.xlu1 %530 }
 0x189   :  { %1878 = vmatpush.msrb.mxu2 %v3081_v60  ;;  %3006 = vmatmul.msk.f32.vlgmr.msrb.gmra.mxu0 %vm264_vm0, %v3666_v31 }
 0x18a   :  { %1669 = vmatpush.msra.mxu0 %v3594_v11  ;;  %3015 = vmatmul.msk.f32.gmra.mxu2 %vm264_vm0, %v806_v52 }
 0x18c   :  { %1670 = vmatpush.msra.mxu0 %v3590_v10 }
 0x18e   :  { %1807 = vmatpush.msrb.mxu0 %v3085_v1  ;;  %891 = vmax.xlane.f32.xlu2 %v890_v4 }
 0x18f   :  { %v537_v6 = vpop.permute.xlu2 %536 }
 0x190   :  { %1808 = vmatpush.msrb.mxu0 %v3086_v3  ;;  %v379_v8 = vpop.permute.xlu0 %378  ;;  %v687_v9 = vpop.permute.xlu1 %686  ;;  %882 = vmax.xlane.f32.xlu0 %v881_v7 }
 0x191   :  { %888 = vmax.xlane.f32.xlu1 %v887_v5  ;;  %2969 = vmatpush.xpose.msk.msrb.mxu3 %vm264_vm0, %v379_v8 }
 0x192   :  { %3007 = vmatmul.msk.f32.gmra.mxu0 %vm264_vm0, %v3656_v25 }
 0x194   :  { %2970 = vmatmul.msk.f32.vlgmr.msrb.gmra.mxu3 %vm264_vm0, %v3692_v39 }
 0x195   :  { %2984 = vmatpush.xpose.msk.msra.mxu3 %vm264_vm0, %v537_v6 }
 0x197   :  { %v615_v17 = vpop.permute.xlu2 %614 }
 0x198   :  { %v457_v10 = vpop.permute.xlu0 %456  ;;  %v613_v11 = vpop.permute.xlu1 %612 }
 0x199   :  { %2985 = vmatpush.xpose.msk.msra.mxu3 %vm264_vm0, %v3703_v42 }
 0x19c   :  { %2971 = vmatmul.msk.f32.gmra.mxu3 %vm264_vm0, %v377_v62 }
 0x19f   :  { %v689_v20 = vpop.permute.xlu2 %688 }
 0x1a0   :  { %v453_v13 = vpop.permute.xlu0 %452  ;;  %v769_v14 = vpop.permute.xlu1 %768 }
 0x1a4   :  { %2986 = vmatmul.msk.f32.vlgmr.msra.gmra.mxu3 %vm264_vm0, %v531_v0 }
 0x1a7   :  { %v849_v23 = vpop.permute.xlu2 %848 }
 0x1a8   :  { %v609_v15 = vpop.permute.xlu0 %608  ;;  %v459_v16 = vpop.permute.xlu1 %458 }
 0x1a9   :  { %2976 = vmatpush.xpose.msk.msrb.mxu1 %vm264_vm0, %v459_v16 }
 0x1ad   :  { %2977 = vmatpush.xpose.msk.msrb.mxu1 %vm264_vm0, %v457_v10 }
 0x1af   :  { %v845_v39 = vpop.permute.xlu2 %844 }
 0x1b0   :  { %v843_v18 = vpop.permute.xlu0 %842  ;;  %2978 = vmatmul.msk.f32.vlgmr.msrb.gmra.mxu1 %vm264_vm0, %v453_v13  ;;  %v533_v19 = vpop.permute.xlu1 %532 }
 0x1b1   :  { %2992 = vmatpush.xpose.msk.msra.mxu1 %vm264_vm0, %v615_v17  ;;  %2987 = vmatmul.msk.f32.gmra.mxu3 %vm264_vm0, %v533_v19 }
 0x1b5   :  { %2993 = vmatpush.xpose.msk.msra.mxu1 %vm264_vm0, %v613_v11 }
 0x1b7   :  { %v3829_v0 = vpop.permute.xlu2 %3113 }
 0x1b8   :  { %v765_v21 = vpop.permute.xlu0 %764  ;;  %v693_v22 = vpop.permute.xlu1 %692 }
 0x1b9   :  { %3000 = vmatpush.xpose.msk.msrb.mxu3 %vm264_vm0, %v693_v22 }
 0x1bd   :  { %3001 = vmatpush.xpose.msk.msrb.mxu3 %vm264_vm0, %v3715_v46 }
 0x1bf   :  { %v3777_v24 = vpop.f32.mrf.mxu2 }
 0x1c0   :  { %v455_v25 = vpop.permute.xlu0 %454  ;;  %v611_v26 = vpop.permute.xlu1 %610  ;;  %3002 = vmatmul.msk.f32.vlgmr.msrb.gmra.mxu3 %vm264_vm0, %v687_v9  ;;  %v917_v27 = vsel %vm264_vm0, %v3777_v24, -inf }
 0x1c1   :  { %3016 = vmatpush.xpose.msk.msra.mxu3 %vm264_vm0, %v849_v23  ;;  %2979 = vmatmul.msk.f32.gmra.mxu1 %vm264_vm0, %v455_v25 }
 0x1c2   :  { %918 = vmax.xlane.f32.xlu0 %v917_v27 }
 0x1c5   :  { %3017 = vmatpush.xpose.msk.msra.mxu3 %vm264_vm0, %v3724_v50 }
 0x1c8   :  { %v771_v28 = vpop.permute.xlu0 %770  ;;  %v767_v29 = vpop.permute.xlu1 %766  ;;  %3003 = vmatmul.msk.f32.gmra.mxu3 %vm264_vm0, %v689_v20 }
 0x1c9   :  { %2994 = vmatmul.msk.f32.vlgmr.msra.gmra.mxu1 %vm264_vm0, %v609_v15 }
 0x1ca   :  { %3008 = vmatpush.xpose.msk.msrb.mxu1 %vm264_vm0, %v771_v28 }
 0x1ce   :  { %3009 = vmatpush.xpose.msk.msrb.mxu1 %vm264_vm0, %v769_v14 }
 0x1d0   :  { %3018 = vmatmul.msk.f32.vlgmr.msra.gmra.mxu3 %vm264_vm0, %v843_v18  ;;  %v3094_v30 = vpop.permute.xlu0 %3093  ;;  %v3099_v31 = vpop.permute.xlu1 %3098 }
 0x1d1   :  { %v3096_v32 = vunpack.i.h.bf16 %v3094_v30  ;;  %v3095_v35 = vunpack.i.l.bf16 %v3094_v30  ;;  %v3100_v36 = vunpack.i.l.bf16 %v3099_v31  ;;  %2995 = vmatmul.msk.f32.gmra.mxu1 %vm264_vm0, %v611_v26  ;;  %v3101_v37 = vunpack.i.h.bf16 %v3099_v31 }
 0x1d2   :  { %1698 = vmatpush.msra.mxu1 %v3674_v34 }
 0x1d3   :  { %1772 = vmatpush.msrb.mxu3 %v3095_v35 }
 0x1d4   :  { %1699 = vmatpush.msra.mxu1 %v3669_v33 }
 0x1d5   :  { %1773 = vmatpush.msrb.mxu3 %v3096_v32 }
 0x1d7   :  { %1912 = vmatpush.msra.mxu3 %v3100_v36 }
 0x1d8   :  { %3019 = vmatmul.msk.f32.gmra.mxu3 %vm264_vm0, %v845_v39  ;;  %v3109_v40 = vpop.permute.xlu0 %3108  ;;  %v3856_v16 = vpop.permute.xlu1 %3103 }
 0x1d9   :  { %v3110_v34 = vunpack.i.l.bf16 %v3109_v40  ;;  %1913 = vmatpush.msra.mxu3 %v3101_v37  ;;  %3010 = vmatmul.msk.f32.vlgmr.msrb.gmra.mxu1 %vm264_vm0, %v765_v21  ;;  %v3111_v41 = vunpack.i.h.bf16 %v3109_v40 }
 0x1db   :  { %1842 = vmatpush.msrb.mxu1 %v3110_v34 }
 0x1dd   :  { %1843 = vmatpush.msrb.mxu1 %v3111_v41 }
 0x1e1   :  { %3011 = vmatmul.msk.f32.gmra.mxu1 %vm264_vm0, %v767_v29 }
 0x1e5   :  { %v3796_v33 = vpop.f32.mrf.mxu0 }
 0x1e6   :  { %v905_v42 = vsel %vm264_vm0, %v3796_v33, -inf }
 0x1e7   :  { %906 = vmax.xlane.f32.xlu2 %v905_v42 }
 0x1eb   :  { %v3800_v43 = vpop.f32.mrf.mxu3 }
 0x1ec   :  { %v893_v46 = vsel %vm264_vm0, %v3800_v43, -inf  ;;  %v3812_v51 = vpop.f32.mrf.mxu2 }
 0x1ed   :  { %v920_v52 = vsel %vm264_vm0, %v3812_v51, -inf }
 0x1ee   :  { %v3802_v44 = vpop.f32.mrf.mxu0 }
 0x1ef   :  { %894 = vmax.xlane.f32.xlu2 %v893_v46  ;;  %v908_v47 = vsel %vm264_vm0, %v3802_v44, -inf }
 0x1f0   :  { %909 = vmax.xlane.f32.xlu0 %v908_v47 }
 0x1f3   :  { %v3808_v48 = vpop.f32.mrf.mxu3 }
 0x1f4   :  { %v896_v50 = vsel %vm264_vm0, %v3808_v48, -inf }
 0x1f5   :  { %897 = vmax.xlane.f32.xlu1 %v896_v50 }
 0x1f6   :  { %v3816_v53 = vpop.f32.mrf.mxu0 }
 0x1f7   :  { %v929_v57 = vsel %vm264_vm0, %v3816_v53, -inf }
 0x1f9   :  { %v886_v3 = vpop.xlane.xlu2 %885 }
 0x1fa   :  { %v978_v5 = vsub.f32 %v3722_v49, %v886_v3 }
 0x1fc   :  { %v1011_v8 = vmul.f32 1.442695, %v978_v5 }
 0x1fd   :  { %921 = vmax.xlane.f32.xlu1 %v920_v52 }
 0x1fe   :  { %v3838_v6 = vpop.f32.mrf.mxu0 }
 0x1ff   :  { %v932_v7 = vsel %vm264_vm0, %v3838_v6, -inf }
 0x201   :  { %v892_v35 = vpop.xlane.xlu2 %891 }
 0x202   :  { %v980_v34 = vsub.f32 %v3746_v2, %v892_v35 }
 0x203   :  { %v883_v55 = vpop.xlane.xlu0 %882 }
 0x204   :  { %v977_v56 = vsub.f32 %v3712_v45, %v883_v55  ;;  %v3831_v45 = vpop.f32.mrf.mxu2  ;;  %v889_v20 = vpop.xlane.xlu1 %888  ;;  %v1015_v46 = vmul.f32 1.442695, %v980_v34 }
 0x205   :  { %930 = vmax.xlane.f32.xlu1 %v929_v57  ;;  %v941_v1 = vsel %vm264_vm0, %v3831_v45, -inf  ;;  %v979_v25 = vsub.f32 %v3728_v54, %v889_v20 }
 0x206   :  { %v1009_v58 = vmul.f32 1.442695, %v977_v56  ;;  %v3868_v23 = vpop.f32.mrf.mxu0 }
 0x207   :  { %v953_v27 = vsel %vm264_vm0, %v3868_v23, -inf  ;;  %v1013_v28 = vmul.f32 1.442695, %v979_v25 }
 0x208   :  { %3142 = vpow2.f32 %v1009_v58 }
 0x209   :  { %3144 = vpow2.f32 %v1011_v8 }
 0x20a   :  { %3146 = vpow2.f32 %v1013_v28 }
 0x20b   :  { %3148 = vpow2.f32 %v1015_v46 }
 0x20c   :  { %v3864_v21 = vpop.f32.mrf.mxu2 }
 0x20d   :  { %v944_v26 = vsel %vm264_vm0, %v3864_v21, -inf }
 0x20e   :  { %v3821_v59 = vpop.eup %3142 }
 0x20f   :  { %v1073_v60 = vsel %vm264_vm0, %v3821_v59, 0.0  ;;  %v3848_v13 = vpop.eup %3144  ;;  %v3903_v56 = vpop.f32.mrf.mxu0 }
 0x210   :  { %1074 = vadd.xlane.f32.xlu1 %v1073_v60  ;;  %v1076_v15 = vsel %vm264_vm0, %v3848_v13, 0.0  ;;  %v3885_v36 = vpop.eup %3146  ;;  %v956_v60 = vsel %vm264_vm0, %v3903_v56, -inf }
 0x211   :  { %v1079_v41 = vsel %vm264_vm0, %v3885_v36, 0.0  ;;  %v3914_v5 = vpop.eup %3148 }
 0x214   :  { %v3889_v39 = vpop.f32.mrf.mxu2 }
 0x215   :  { %v965_v42 = vsel %vm264_vm0, %v3889_v39, -inf }
 0x217   :  { %v3825_v61 = vpop.f32.mrf.mxu3 }
 0x218   :  { %v899_v62 = vsel %vm264_vm0, %v3825_v61, -inf }
 0x219   :  { %900 = vmax.xlane.f32.xlu2 %v899_v62 }
 0x21f   :  { %v3835_v4 = vpop.f32.mrf.mxu3 }
 0x220   :  { %v902_v18 = vsel %vm264_vm0, %v3835_v4, -inf }
 0x221   :  { %942 = vmax.xlane.f32.xlu2 %v941_v1  ;;  %v3911_v1 = vpop.f32.mrf.mxu2 }
 0x227   :  { %v3842_v9 = vpop.f32.mrf.mxu3 }
 0x228   :  { %v923_v32 = vsel %vm264_vm0, %v3842_v9, -inf }
 0x229   :  { %933 = vmax.xlane.f32.xlu2 %v932_v7 }
 0x22d   :  { %v3844_v10 = vpop.f32.mrf.mxu1 }
 0x22e   :  { %v911_v11 = vsel %vm264_vm0, %v3844_v10, -inf }
 0x22f   :  { %912 = vmax.xlane.f32.xlu0 %v911_v11 }
 0x234   :  { %v3850_v14 = vpop.f32.mrf.mxu3 }
 0x235   :  { %v926_v49 = vsel %vm264_vm0, %v3850_v14, -inf }
 0x236   :  { %927 = vmax.xlane.f32.xlu2 %v926_v49  ;;  %v968_v49 = vsel %vm264_vm0, %v3911_v1, -inf }
 0x237   :  { %1077 = vadd.xlane.f32.xlu0 %v1076_v15 }
 0x23e   :  { %v3858_v17 = vpop.f32.mrf.mxu1 }
 0x23f   :  { %903 = vmax.xlane.f32.xlu0 %v902_v18  ;;  %v914_v19 = vsel %vm264_vm0, %v3858_v17, -inf  ;;  %v1082_v18 = vsel %vm264_vm0, %v3914_v5, 0.0 }
 0x240   :  { %915 = vmax.xlane.f32.xlu1 %v914_v19 }
 0x243   :  { %v3866_v22 = vpop.f32.mrf.mxu3 }
 0x246   :  { %v3875_v29 = vpop.f32.mrf.mxu1 }
 0x247   :  { %945 = vmax.xlane.f32.xlu0 %v944_v26  ;;  %v935_v54 = vsel %vm264_vm0, %v3875_v29, -inf }
 0x248   :  { %954 = vmax.xlane.f32.xlu1 %v953_v27 }
 0x24b   :  { %v3877_v30 = vpop.f32.mrf.mxu3 }
 0x24c   :  { %v950_v31 = vsel %vm264_vm0, %v3877_v30, -inf }
 0x24d   :  { %951 = vmax.xlane.f32.xlu2 %v950_v31 }
 0x24e   :  { %v3898_v50 = vpop.f32.mrf.mxu1 }
 0x24f   :  { %936 = vmax.xlane.f32.xlu0 %v935_v54  ;;  %v938_v58 = vsel %vm264_vm0, %v3898_v50, -inf }
 0x250   :  { %924 = vmax.xlane.f32.xlu1 %v923_v32 }
 0x253   :  { %v3887_v37 = vpop.f32.mrf.mxu3 }
 0x254   :  { %v971_v40 = vsel %vm264_vm0, %v3887_v37, -inf }
 0x255   :  { %972 = vmax.xlane.f32.xlu2 %v971_v40  ;;  %v947_v40 = vsel %vm264_vm0, %v3866_v22, -inf }
 0x256   :  { %v3925_v25 = vpop.f32.mrf.mxu1 }
 0x257   :  { %1080 = vadd.xlane.f32.xlu0 %v1079_v41  ;;  %v959_v27 = vsel %vm264_vm0, %v3925_v25, -inf }
 0x258   :  { %966 = vmax.xlane.f32.xlu1 %v965_v42 }
 0x25a   :  { %v907_v47 = vpop.xlane.xlu2 %906 }
 0x25b   :  { %v985_v52 = vsub.f32 %v3796_v33, %v907_v47  ;;  %v3901_v55 = vpop.f32.mrf.mxu3  ;;  %v919_v33 = vpop.xlane.xlu0 %918 }
 0x25c   :  { %v974_v2 = vsel %vm264_vm0, %v3901_v55, -inf  ;;  %v989_v8 = vsub.f32 %v3777_v24, %v919_v33 }
 0x25d   :  { %v1025_v57 = vmul.f32 1.442695, %v985_v52  ;;  %975 = vmax.xlane.f32.xlu2 %v974_v2 }
 0x25e   :  { %v1033_v19 = vmul.f32 1.442695, %v989_v8  ;;  %v3944_v47 = vpop.f32.mrf.mxu1 }
 0x25f   :  { %3150 = vpow2.f32 %v1025_v57  ;;  %939 = vmax.xlane.f32.xlu0 %v938_v58  ;;  %v962_v2 = vsel %vm264_vm0, %v3944_v47, -inf }
 0x260   :  { %957 = vmax.xlane.f32.xlu1 %v956_v60 }
 0x262   :  { %v895_v62 = vpop.xlane.xlu2 %894 }
 0x263   :  { %v981_v3 = vsub.f32 %v3800_v43, %v895_v62  ;;  %v910_v20 = vpop.xlane.xlu0 %909 }
 0x264   :  { %v986_v26 = vsub.f32 %v3802_v44, %v910_v20 }
 0x265   :  { %v3916_v7 = vpop.eup %3150  ;;  %v1017_v11 = vmul.f32 1.442695, %v981_v3 }
 0x266   :  { %v1097_v15 = vsel %vm264_vm0, %v3916_v7, 0.0  ;;  %v1027_v54 = vmul.f32 1.442695, %v986_v26 }
 0x267   :  { %3152 = vpow2.f32 %v1017_v11  ;;  %969 = vmax.xlane.f32.xlu0 %v968_v49  ;;  %1098 = vadd.xlane.f32.xlu2 %v1097_v15 }
 0x268   :  { %v898_v43 = vpop.xlane.xlu1 %897  ;;  %1083 = vadd.xlane.f32.xlu1 %v1082_v18  ;;  %3154 = vpow2.f32 %v1033_v19 }
 0x269   :  { %v982_v35 = vsub.f32 %v3808_v48, %v898_v43  ;;  %3156 = vpow2.f32 %v1027_v54 }
 0x26b   :  { %v1019_v34 = vmul.f32 1.442695, %v982_v35 }
 0x26d   :  { %v3927_v24 = vpop.eup %3152  ;;  %3158 = vpow2.f32 %v1019_v34  ;;  %v3105_v34 = vunpack.i.l.bf16 %v3856_v16 }
 0x26e   :  { %v1085_v28 = vsel %vm264_vm0, %v3927_v24, 0.0  ;;  %v3934_v32 = vpop.eup %3154 }
 0x26f   :  { %960 = vmax.xlane.f32.xlu0 %v959_v27  ;;  %1086 = vadd.xlane.f32.xlu2 %v1085_v28  ;;  %v1109_v44 = vsel %vm264_vm0, %v3934_v32, 0.0  ;;  %v3942_v46 = vpop.eup %3156 }
 0x270   :  { %v922_v31 = vpop.xlane.xlu1 %921  ;;  %v1100_v57 = vsel %vm264_vm0, %v3942_v46, 0.0 }
 0x271   :  { %v990_v48 = vsub.f32 %v3812_v51, %v922_v31 }
 0x273   :  { %v1035_v58 = vmul.f32 1.442695, %v990_v48  ;;  %v3951_v60 = vpop.eup %3158 }
 0x274   :  { %v1088_v62 = vsel %vm264_vm0, %v3951_v60, 0.0 }
 0x277   :  { %948 = vmax.xlane.f32.xlu0 %v947_v40  ;;  %1110 = vadd.xlane.f32.xlu2 %v1109_v44 }
 0x278   :  { %v931_v41 = vpop.xlane.xlu1 %930 }
 0x279   :  { %v993_v42 = vsub.f32 %v3816_v53, %v931_v41 }
 0x27b   :  { %v1041_v52 = vmul.f32 1.442695, %v993_v42 }
 0x27d   :  { %3160 = vpow2.f32 %v1041_v52  ;;  %v3106_v52 = vunpack.i.h.bf16 %v3856_v16 }
 0x27f   :  { %963 = vmax.xlane.f32.xlu0 %v962_v2  ;;  %1101 = vadd.xlane.f32.xlu2 %v1100_v57 }
 0x283   :  { %v3953_v53 = vpop.eup %3160  ;;  %v1075_v33 = vpop.xlane.xlu1 %1074 }
 0x284   :  { %3162 = vrcp.f32 %v1075_v33  ;;  %v1121_v51 = vsel %vm264_vm0, %v3953_v53, 0.0  ;;  %v1180_v43 = vand.u32 2147483648, %v1075_v33  ;;  %v1178_v26 = vand.u32 2147483647, %v1075_v33 }
 0x285   :  { %3164 = vpow2.f32 %v1035_v58  ;;  %1122 = vadd.xlane.f32.xlu1 %v1121_v51  ;;  %vm1174_vm2 = vweird.f32 %v1075_v33 }
 0x286   :  { %v1181_v31 = vor.u32 1.1754944e-38, %v1180_v43  ;;  %vm1179_vm4 = vcmp.eq.f32.partialorder %v1178_v26, 8.507059e+37 }
 0x287   :  { %1089 = vadd.xlane.f32.xlu2 %v1088_v62 }
 0x28a   :  { %v3163_v3 = vpop.eup %3162 }
 0x28b   :  { %v3959_v8 = vpop.eup %3164  ;;  %v1170_v11 = vmul.f32 %v3163_v3, %v1075_v33  ;;  %vm1175_vm1 = vweird.f32 %v3163_v3 }
 0x28c   :  { %v901_v49 = vpop.xlane.xlu2 %900  ;;  %v1112_v19 = vsel %vm264_vm0, %v3959_v8, 0.0  ;;  %vm1176_vm3 = vmor %vm1174_vm2, %vm1175_vm1 }
 0x28d   :  { %v1171_v15 = vsub.f32 1.0, %v1170_v11  ;;  %v983_v18 = vsub.f32 %v3825_v61, %v901_v49 }
 0x28f   :  { %v1172_v20 = vmul.f32 %v3163_v3, %v1171_v15  ;;  %v1021_v27 = vmul.f32 1.442695, %v983_v18  ;;  %1113 = vadd.xlane.f32.xlu2 %v1112_v19 }
 0x291   :  { %v1173_v28 = vadd.f32 %v3163_v3, %v1172_v20  ;;  %3166 = vpow2.f32 %v1021_v27 }
 0x293   :  { %v1177_v54 = vsel %vm1176_vm3, %v3163_v3, %v1173_v28 }
 0x294   :  { %v1182_v35 = vsel %vm1179_vm4, %v1181_v31, %v1177_v54  ;;  %v943_v40 = vpop.xlane.xlu2 %942 }
 0x295   :  { %v997_v61 = vsub.f32 %v3831_v45, %v943_v40  ;;  %v1617_v44 = vmul.f32 %v3821_v59, %v1182_v35 }
 0x297   :  { %v3967_v41 = vpop.eup %3166  ;;  %v1049_v42 = vmul.f32 1.442695, %v997_v61  ;;  %3020 = vmatmul.msk.f32.vlgmr.msra.gmra.mxu0 %vm264_vm0, %v1617_v44 }
 0x298   :  { %1947 = vmatpush.msra.mxu0 %v3105_v34  ;;  %v1091_v48 = vsel %vm264_vm0, %v3967_v41, 0.0 }
 0x299   :  { %3168 = vpow2.f32 %v1049_v42  ;;  %1092 = vadd.xlane.f32.xlu1 %v1091_v48 }
 0x29a   :  { %1948 = vmatpush.msra.mxu0 %v3106_v52 }
 0x29c   :  { %v934_v62 = vpop.xlane.xlu2 %933 }
 0x29d   :  { %v994_v19 = vsub.f32 %v3838_v6, %v934_v62 }
 0x29f   :  { %v3973_v2 = vpop.eup %3168 }
 0x2a0   :  { %v1133_v59 = vsel %vm264_vm0, %v3973_v2, 0.0 }
 0x2a1   :  { %1134 = vadd.xlane.f32.xlu2 %v1133_v59 }
 0x2a2   :  { %v913_v45 = vpop.xlane.xlu0 %912 }
 0x2a3   :  { %v987_v57 = vsub.f32 %v3844_v10, %v913_v45 }
 0x2a5   :  { %v1029_v58 = vmul.f32 1.442695, %v987_v57 }
 0x2a7   :  { %3170 = vpow2.f32 %v1029_v58 }
 0x2a9   :  { %v3985_v54 = vpop.xlane.xlu2 %927 }
 0x2aa   :  { %v1078_v33 = vpop.xlane.xlu0 %1077 }
 0x2ab   :  { %3172 = vrcp.f32 %v1078_v33  ;;  %v1194_v20 = vand.u32 2147483648, %v1078_v33  ;;  %v1192_v31 = vand.u32 2147483647, %v1078_v33  ;;  %vm1188_vm6 = vweird.f32 %v1078_v33 }
 0x2ad   :  { %v3978_v16 = vpop.eup %3170  ;;  %v1195_v40 = vor.u32 1.1754944e-38, %v1194_v20  ;;  %vm1193_vm8 = vcmp.eq.f32.partialorder %v1192_v31, 8.507059e+37 }
 0x2ae   :  { %v1103_v51 = vsel %vm264_vm0, %v3978_v16, 0.0 }
 0x2af   :  { %1104 = vadd.xlane.f32.xlu0 %v1103_v51 }
 0x2b1   :  { %v3173_v3 = vpop.eup %3172 }
 0x2b2   :  { %v1184_v11 = vmul.f32 %v3173_v3, %v1078_v33  ;;  %v904_v49 = vpop.xlane.xlu0 %903  ;;  %vm1189_vm5 = vweird.f32 %v3173_v3 }
 0x2b3   :  { %v984_v15 = vsub.f32 %v3835_v4, %v904_v49  ;;  %v916_v18 = vpop.xlane.xlu1 %915  ;;  %vm1190_vm7 = vmor %vm1188_vm6, %vm1189_vm5  ;;  %v1043_v4 = vmul.f32 1.442695, %v994_v19 }
 0x2b4   :  { %v1185_v43 = vsub.f32 1.0, %v1184_v11  ;;  %v988_v10 = vsub.f32 %v3858_v17, %v916_v18 }
 0x2b5   :  { %v1023_v26 = vmul.f32 1.442695, %v984_v15 }
 0x2b6   :  { %v1186_v27 = vmul.f32 %v3173_v3, %v1185_v43  ;;  %v1031_v28 = vmul.f32 1.442695, %v988_v10 }
 0x2b7   :  { %3174 = vpow2.f32 %v1023_v26 }
 0x2b8   :  { %3176 = vpow2.f32 %v1031_v28  ;;  %v1187_v35 = vadd.f32 %v3173_v3, %v1186_v27 }
 0x2b9   :  { %3178 = vpow2.f32 %v1043_v4 }
 0x2ba   :  { %v946_v61 = vpop.xlane.xlu0 %945  ;;  %v1191_v44 = vsel %vm1190_vm7, %v3173_v3, %v1187_v35 }
 0x2bb   :  { %v998_v6 = vsub.f32 %v3864_v21, %v946_v61  ;;  %v955_v17 = vpop.xlane.xlu1 %954  ;;  %v1196_v34 = vsel %vm1193_vm8, %v1195_v40, %v1191_v44  ;;  %v992_v40 = vsub.f32 %v3850_v14, %v3985_v54 }
 0x2bc   :  { %v1618_v42 = vmul.f32 %v3848_v13, %v1196_v34  ;;  %v1001_v62 = vsub.f32 %v3868_v23, %v955_v17 }
 0x2bd   :  { %v3989_v52 = vpop.eup %3174  ;;  %v1051_v48 = vmul.f32 1.442695, %v998_v6 }
 0x2be   :  { %v3991_v59 = vpop.eup %3176  ;;  %3021 = vmatmul.msk.f32.gmra.mxu0 %vm264_vm0, %v1618_v42  ;;  %v1094_v45 = vsel %vm264_vm0, %v3989_v52, 0.0 }
 0x2bf   :  { %3180 = vpow2.f32 %v1051_v48  ;;  %1095 = vadd.xlane.f32.xlu0 %v1094_v45  ;;  %v1106_v21 = vsel %vm264_vm0, %v3991_v59, 0.0  ;;  %v4001_v51 = vpop.eup %3178  ;;  %v1039_v48 = vmul.f32 1.442695, %v992_v40 }
 0x2c0   :  { %1107 = vadd.xlane.f32.xlu1 %v1106_v21  ;;  %v3998_v57 = vpop.xlane.xlu2 %951  ;;  %v1124_v43 = vsel %vm264_vm0, %v4001_v51, 0.0 }
 0x2c2   :  { %v937_v13 = vpop.xlane.xlu0 %936 }
 0x2c3   :  { %v995_v58 = vsub.f32 %v3875_v29, %v937_v13  ;;  %v925_v33 = vpop.xlane.xlu1 %924  ;;  %v1057_v29 = vmul.f32 1.442695, %v1001_v62 }
 0x2c4   :  { %v991_v3 = vsub.f32 %v3842_v9, %v925_v33 }
 0x2c5   :  { %v4005_v11 = vpop.eup %3180  ;;  %v1045_v49 = vmul.f32 1.442695, %v995_v58 }
 0x2c6   :  { %v1037_v15 = vmul.f32 1.442695, %v991_v3  ;;  %v1136_v18 = vsel %vm264_vm0, %v4005_v11, 0.0 }
 0x2c7   :  { %3182 = vpow2.f32 %v1045_v49  ;;  %1137 = vadd.xlane.f32.xlu2 %v1136_v18 }
 0x2c8   :  { %3184 = vpow2.f32 %v1037_v15  ;;  %1125 = vadd.xlane.f32.xlu1 %v1124_v43  ;;  %v4011_v10 = vpop.xlane.xlu2 %972 }
 0x2ca   :  { %v1081_v23 = vpop.xlane.xlu0 %1080 }
 0x2cb   :  { %3186 = vrcp.f32 %v1081_v23  ;;  %v967_v9 = vpop.xlane.xlu1 %966  ;;  %v1208_v45 = vand.u32 2147483648, %v1081_v23  ;;  %v1206_v54 = vand.u32 2147483647, %v1081_v23  ;;  %vm1202_vm10 = vweird.f32 %v1081_v23 }
 0x2cc   :  { %3188 = vpow2.f32 %v1057_v29  ;;  %v1005_v19 = vsub.f32 %v3889_v39, %v967_v9 }
 0x2cd   :  { %v4014_v20 = vpop.eup %3182  ;;  %vm1207_vm12 = vcmp.eq.f32.partialorder %v1206_v54, 8.507059e+37 }
 0x2ce   :  { %v4016_v26 = vpop.eup %3184  ;;  %v1065_v27 = vmul.f32 1.442695, %v1005_v19  ;;  %v1127_v28 = vsel %vm264_vm0, %v4014_v20, 0.0 }
 0x2cf   :  { %1128 = vadd.xlane.f32.xlu2 %v1127_v28  ;;  %v1115_v31 = vsel %vm264_vm0, %v4016_v26, 0.0 }
 0x2d0   :  { %3190 = vpow2.f32 %v1065_v27  ;;  %1116 = vadd.xlane.f32.xlu0 %v1115_v31  ;;  %v4026_v61 = vpop.xlane.xlu2 %975 }
 0x2d1   :  { %v3187_v35 = vpop.eup %3186 }
 0x2d2   :  { %v4024_v4 = vpop.eup %3188  ;;  %v1198_v39 = vmul.f32 %v3187_v35, %v1081_v23  ;;  %v940_v44 = vpop.xlane.xlu0 %939  ;;  %vm1203_vm9 = vweird.f32 %v3187_v35 }
 0x2d3   :  { %v996_v6 = vsub.f32 %v3898_v50, %v940_v44  ;;  %v958_v17 = vpop.xlane.xlu1 %957  ;;  %v1145_v13 = vsel %vm264_vm0, %v4024_v4, 0.0  ;;  %vm1204_vm11 = vmor %vm1202_vm10, %vm1203_vm9 }
 0x2d4   :  { %v1199_v34 = vsub.f32 1.0, %v1198_v39  ;;  %v1002_v42 = vsub.f32 %v3903_v56, %v958_v17  ;;  %v1209_v56 = vor.u32 1.1754944e-38, %v1208_v45 }
 0x2d5   :  { %v1047_v21 = vmul.f32 1.442695, %v996_v6 }
 0x2d6   :  { %v4032_v58 = vpop.eup %3190  ;;  %v1200_v14 = vmul.f32 %v3187_v35, %v1199_v34  ;;  %v1059_v33 = vmul.f32 1.442695, %v1002_v42 }
 0x2d7   :  { %3192 = vpow2.f32 %v1047_v21  ;;  %1146 = vadd.xlane.f32.xlu2 %v1145_v13  ;;  %v1157_v50 = vsel %vm264_vm0, %v4032_v58, 0.0 }
 0x2d8   :  { %v1201_v62 = vadd.f32 %v3187_v35, %v1200_v14  ;;  %3194 = vpow2.f32 %v1059_v33  ;;  %1158 = vadd.xlane.f32.xlu0 %v1157_v50 }
 0x2d9   :  { %3196 = vpow2.f32 %v1039_v48 }
 0x2da   :  { %v1205_v3 = vsel %vm1204_vm11, %v3187_v35, %v1201_v62  ;;  %v970_v49 = vpop.xlane.xlu0 %969  ;;  %v1099_v15 = vpop.xlane.xlu2 %1098 }
 0x2db   :  { %v1210_v18 = vsel %vm1207_vm12, %v1209_v56, %v1205_v3  ;;  %v1006_v43 = vsub.f32 %v3911_v1, %v970_v49  ;;  %3198 = vrcp.f32 %v1099_v15  ;;  %v1084_v29 = vpop.xlane.xlu1 %1083  ;;  %v1292_v34 = vand.u32 2147483648, %v1099_v15 }
 0x2dc   :  { %3200 = vrcp.f32 %v1084_v29  ;;  %v1619_v23 = vmul.f32 %v3885_v36, %v1210_v18  ;;  %v1290_v21 = vand.u32 2147483647, %v1099_v15  ;;  %vm1286_vm14 = vweird.f32 %v1099_v15 }
 0x2dd   :  { %v4037_v9 = vpop.eup %3192  ;;  %v1067_v19 = vmul.f32 1.442695, %v1006_v43  ;;  %v1222_v33 = vand.u32 2147483648, %v1084_v29  ;;  %v1293_v62 = vor.u32 1.1754944e-38, %v1292_v34  ;;  %v1220_v3 = vand.u32 2147483647, %v1084_v29 }
 0x2de   :  { %v4040_v27 = vpop.eup %3194  ;;  %v1130_v28 = vsel %vm264_vm0, %v4037_v9, 0.0  ;;  %3022 = vmatmul.msk.f32.vlgmr.msra.gmra.mxu1 %vm264_vm0, %v1619_v23  ;;  %vm1291_vm2 = vcmp.eq.f32.partialorder %v1290_v21, 8.507059e+37  ;;  %vm1216_vm3 = vweird.f32 %v1084_v29  ;;  %v3090_v21 = vunpack.i.l.bf16 %v3741_v63 }
 0x2df   :  { %3202 = vpow2.f32 %v1067_v19  ;;  %1131 = vadd.xlane.f32.xlu1 %v1130_v28  ;;  %v1148_v1 = vsel %vm264_vm0, %v4040_v27, 0.0  ;;  %v4047_v31 = vpop.eup %3196  ;;  %v1223_v23 = vor.u32 1.1754944e-38, %v1222_v33  ;;  %vm1221_vm5 = vcmp.eq.f32.partialorder %v1220_v3, 8.507059e+37 }
 0x2e0   :  { %1149 = vadd.xlane.f32.xlu2 %v1148_v1  ;;  %v1118_v48 = vsel %vm264_vm0, %v4047_v31, 0.0 }
 0x2e1   :  { %v3199_v35 = vpop.eup %3198 }
 0x2e2   :  { %v3201_v40 = vpop.eup %3200  ;;  %v1282_v39 = vmul.f32 %v3199_v35, %v1099_v15  ;;  %v1087_v44 = vpop.xlane.xlu2 %1086  ;;  %vm1287_vm13 = vweird.f32 %v3199_v35 }
 0x2e3   :  { %v1212_v36 = vmul.f32 %v3201_v40, %v1084_v29  ;;  %3204 = vrcp.f32 %v1087_v44  ;;  %vm1288_vm15 = vmor %vm1286_vm14, %vm1287_vm13  ;;  %vm1217_vm1 = vweird.f32 %v3201_v40  ;;  %v1236_v15 = vand.u32 2147483648, %v1087_v44 }
 0x2e4   :  { %v1283_v6 = vsub.f32 1.0, %v1282_v39  ;;  %vm1218_vm4 = vmor %vm1216_vm3, %vm1217_vm1  ;;  %vm1230_vm7 = vweird.f32 %v1087_v44 }
 0x2e5   :  { %v4049_v17 = vpop.eup %3202  ;;  %v1213_v42 = vsub.f32 1.0, %v1212_v36  ;;  %v1237_v29 = vor.u32 1.1754944e-38, %v1236_v15 }
 0x2e6   :  { %v1284_v45 = vmul.f32 %v3199_v35, %v1283_v6  ;;  %v1160_v13 = vsel %vm264_vm0, %v4049_v17, 0.0  ;;  %v1234_v6 = vand.u32 2147483647, %v1087_v44 }
 0x2e7   :  { %v1214_v14 = vmul.f32 %v3201_v40, %v1213_v42  ;;  %1119 = vadd.xlane.f32.xlu1 %v1118_v48  ;;  %1161 = vadd.xlane.f32.xlu0 %v1160_v13 }
 0x2e8   :  { %v1285_v54 = vadd.f32 %v3199_v35, %v1284_v45  ;;  %vm1235_vm9 = vcmp.eq.f32.partialorder %v1234_v6, 8.507059e+37 }
 0x2e9   :  { %v3205_v50 = vpop.eup %3204  ;;  %v1215_v56 = vadd.f32 %v3201_v40, %v1214_v14 }
 0x2ea   :  { %v1289_v49 = vsel %vm1288_vm15, %v3199_v35, %v1285_v54  ;;  %v1226_v18 = vmul.f32 %v3205_v50, %v1087_v44  ;;  %v4055_v43 = vpop.xlane.xlu2 %1110  ;;  %vm1231_vm6 = vweird.f32 %v3205_v50 }
 0x2eb   :  { %v1294_v19 = vsel %vm1291_vm2, %v1293_v62, %v1289_v49  ;;  %v1219_v39 = vsel %vm1218_vm4, %v3201_v40, %v1215_v56  ;;  %vm1232_vm8 = vmor %vm1230_vm7, %vm1231_vm6  ;;  %3206 = vrcp.f32 %v4055_v43 }
 0x2ec   :  { %v1227_v28 = vsub.f32 1.0, %v1226_v18  ;;  %v1625_v1 = vmul.f32 %v3916_v7, %v1294_v19  ;;  %v1224_v35 = vsel %vm1221_vm5, %v1223_v23, %v1219_v39 }
 0x2ed   :  { %v1620_v34 = vmul.f32 %v3914_v5, %v1224_v35  ;;  %v3091_v5 = vunpack.i.h.bf16 %v3741_v63  ;;  %v4074_v63 = vpop.xlane.xlu0 %960 }
 0x2ee   :  { %v1228_v36 = vmul.f32 %v3205_v50, %v1227_v28  ;;  %3028 = vmatmul.msk.f32.vlgmr.msrb.gmra.mxu0 %vm264_vm0, %v1625_v1 }
 0x2ef   :  { %3023 = vmatmul.msk.f32.gmra.mxu1 %vm264_vm0, %v1620_v34 }
 0x2f0   :  { %v1229_v42 = vadd.f32 %v3205_v50, %v1228_v36 }
 0x2f1   :  { %v4066_v44 = vpop.eup %3206 }
 0x2f2   :  { %v1233_v48 = vsel %vm1232_vm8, %v3205_v50, %v1229_v42  ;;  %v1102_v7 = vpop.xlane.xlu2 %1101  ;;  %vm1343_vm2 = vweird.f32 %v4066_v44  ;;  %vm1342_vm8 = vweird.f32 %v4055_v43 }
 0x2f3   :  { %v1238_v40 = vsel %vm1235_vm9, %v1237_v29, %v1233_v48  ;;  %3208 = vrcp.f32 %v1102_v7  ;;  %v1306_v56 = vand.u32 2147483648, %v1102_v7  ;;  %v1304_v49 = vand.u32 2147483647, %v1102_v7  ;;  %vm1344_vm9 = vmor %vm1342_vm8, %vm1343_vm2 }
 0x2f4   :  { %v1621_v45 = vmul.f32 %v3927_v24, %v1238_v40  ;;  %v1338_v24 = vmul.f32 %v4066_v44, %v4055_v43  ;;  %vm1300_vm11 = vweird.f32 %v1102_v7 }
 0x2f5   :  { %v1307_v1 = vor.u32 1.1754944e-38, %v1306_v56  ;;  %vm1305_vm13 = vcmp.eq.f32.partialorder %v1304_v49, 8.507059e+37 }
 0x2f6   :  { %3024 = vmatmul.msk.f32.vlgmr.msra.gmra.mxu2 %vm264_vm0, %v1621_v45  ;;  %v1339_v3 = vsub.f32 1.0, %v1338_v24  ;;  %v4083_v45 = vpop.xlane.xlu0 %948 }
 0x2f7   :  { %2017 = vmatpush.msra.mxu2 %v3090_v21 }
 0x2f8   :  { %3123 = vrot.lane.b32.xlu2 %v3684_v38, %s3484_s10  ;;  %v1123_v14 = vpop.xlane.xlu1 %1122  ;;  %v1340_v6 = vmul.f32 %v4066_v44, %v1339_v3 }
 0x2f9   :  { %v3209_v13 = vpop.eup %3208  ;;  %2018 = vmatpush.msra.mxu2 %v3091_v5  ;;  %3210 = vrcp.f32 %v1123_v14  ;;  %v1402_v34 = vand.u32 2147483647, %v1123_v14  ;;  %v1404_v42 = vand.u32 2147483648, %v1123_v14  ;;  %vm1398_vm1 = vweird.f32 %v1123_v14 }
 0x2fa   :  { %v1296_v54 = vmul.f32 %v3209_v13, %v1102_v7  ;;  %v1090_v33 = vpop.xlane.xlu2 %1089  ;;  %vm1301_vm10 = vweird.f32 %v3209_v13 }
 0x2fb   :  { %3212 = vrcp.f32 %v1090_v33  ;;  %3118 = vrot.lane.b32.xlu0 %v3600_v12, %s3486_s12  ;;  %vm1302_vm12 = vmor %vm1300_vm11, %vm1301_vm10  ;;  %v1250_v7 = vand.u32 2147483648, %v1090_v33  ;;  %v1248_v5 = vand.u32 2147483647, %v1090_v33  ;;  %vm1244_vm4 = vweird.f32 %v1090_v33 }
 0x2fc   :  { %v1297_v50 = vsub.f32 1.0, %v1296_v54  ;;  %v1405_v54 = vor.u32 1.1754944e-38, %v1404_v42  ;;  %vm1403_vm5 = vcmp.eq.f32.partialorder %v1402_v34, 8.507059e+37 }
 0x2fd   :  { %vm1249_vm7 = vcmp.eq.f32.partialorder %v1248_v5, 8.507059e+37  ;;  %v1003_v5 = vsub.f32 %v3925_v25, %v4074_v63 }
 0x2fe   :  { %v1298_v62 = vmul.f32 %v3209_v13, %v1297_v50 }
 0x2ff   :  { %v3211_v18 = vpop.eup %3210 }
 0x300   :  { %3128 = vrot.lane.b32.xlu1 %v3600_v12, %s3475_s14  ;;  %v1299_v19 = vadd.f32 %v3209_v13, %v1298_v62  ;;  %v1394_v28 = vmul.f32 %v3211_v18, %v1123_v14  ;;  %vm1399_vm14 = vweird.f32 %v3211_v18  ;;  %v1341_v62 = vadd.f32 %v4066_v44, %v1340_v6 }
 0x301   :  { %v3213_v23 = vpop.eup %3212  ;;  %vm1400_vm3 = vmor %vm1398_vm1, %vm1399_vm14 }
 0x302   :  { %v1240_v15 = vmul.f32 %v3213_v23, %v1090_v33  ;;  %v4078_v39 = vpop.xlane.xlu2 %1113  ;;  %v1303_v36 = vsel %vm1302_vm12, %v3209_v13, %v1299_v19  ;;  %v1395_v35 = vsub.f32 1.0, %v1394_v28  ;;  %vm1245_vm15 = vweird.f32 %v3213_v23 }
 0x303   :  { %3214 = vrcp.f32 %v4078_v39  ;;  %v1308_v48 = vsel %vm1305_vm13, %v1307_v1, %v1303_v36  ;;  %vm1246_vm6 = vmor %vm1244_vm4, %vm1245_vm15  ;;  %v1348_v19 = vand.u32 2147483648, %v4055_v43  ;;  %v1346_v33 = vand.u32 2147483647, %v4055_v43  ;;  %v964_v43 = vpop.xlane.xlu0 %963 }
 0x304   :  { %v1241_v29 = vsub.f32 1.0, %v1240_v15  ;;  %v1396_v12 = vmul.f32 %v3211_v18, %v1395_v35  ;;  %v1626_v40 = vmul.f32 %v3942_v46, %v1308_v48  ;;  %v1251_v46 = vor.u32 1.1754944e-38, %v1250_v7 }
 0x305   :  { %v1345_v6 = vsel %vm1344_vm9, %v4066_v44, %v1341_v62  ;;  %v1349_v34 = vor.u32 1.1754944e-38, %v1348_v19  ;;  %vm1347_vm10 = vcmp.eq.f32.partialorder %v1346_v33, 8.507059e+37  ;;  %vm1356_vm12 = vweird.f32 %v4078_v39 }
 0x306   :  { %v1242_v21 = vmul.f32 %v3213_v23, %v1241_v29  ;;  %v1397_v13 = vadd.f32 %v3211_v18, %v1396_v12  ;;  %3029 = vmatmul.msk.f32.gmra.mxu0 %vm264_vm0, %v1626_v40  ;;  %v1362_v12 = vand.u32 2147483648, %v4078_v39  ;;  %v1360_v7 = vand.u32 2147483647, %v4078_v39 }
 0x307   :  { %v1007_v40 = vsub.f32 %v3887_v37, %v4011_v10  ;;  %v1061_v37 = vmul.f32 1.442695, %v1003_v5  ;;  %v3115_v19 = vunpack.i.l.bf16 %v3829_v0 }
 0x308   :  { %v1243_v24 = vadd.f32 %v3213_v23, %v1242_v21  ;;  %v1401_v56 = vsel %vm1400_vm3, %v3211_v18, %v1397_v13  ;;  %vm1361_vm15 = vcmp.eq.f32.partialorder %v1360_v7, 8.507059e+37 }
 0x309   :  { %v3215_v50 = vpop.eup %3214  ;;  %v1406_v3 = vsel %vm1403_vm5, %v1405_v54, %v1401_v56  ;;  %v1363_v54 = vor.u32 1.1754944e-38, %v1362_v12  ;;  %v1069_v56 = vmul.f32 1.442695, %v1007_v40 }
 0x30a   :  { %v1352_v49 = vmul.f32 %v3215_v50, %v4078_v39  ;;  %v1247_v14 = vsel %vm1246_vm6, %v3213_v23, %v1243_v24  ;;  %v1633_v36 = vmul.f32 %v3953_v53, %v1406_v3  ;;  %v1000_v23 = vsub.f32 %v3877_v30, %v3998_v57 }
 0x30b   :  { %v1252_v28 = vsel %vm1249_vm7, %v1251_v46, %v1247_v14  ;;  %vm1357_vm11 = vweird.f32 %v3215_v50  ;;  %v1004_v53 = vsub.f32 %v3944_v47, %v964_v43 }
 0x30c   :  { %v1353_v1 = vsub.f32 1.0, %v1352_v49  ;;  %v1093_v15 = vpop.xlane.xlu1 %1092  ;;  %v1622_v18 = vmul.f32 %v3951_v60, %v1252_v28  ;;  %v1350_v60 = vsel %vm1347_vm10, %v1349_v34, %v1345_v6  ;;  %v1055_v42 = vmul.f32 1.442695, %v1000_v23  ;;  %vm1358_vm13 = vmor %vm1356_vm12, %vm1357_vm11 }
 0x30d   :  { %3216 = vrcp.f32 %v1093_v15  ;;  %v1629_v44 = vmul.f32 %v3934_v32, %v1350_v60  ;;  %v1063_v13 = vmul.f32 1.442695, %v1004_v53  ;;  %v1264_v24 = vand.u32 2147483648, %v1093_v15 }
 0x30e   :  { %v1354_v35 = vmul.f32 %v3215_v50, %v1353_v1  ;;  %3025 = vmatmul.msk.f32.gmra.mxu2 %vm264_vm0, %v1622_v18  ;;  %3036 = vmatmul.msk.f32.vlgmr.msra.gmra.mxu0 %vm264_vm0, %v1633_v36  ;;  %v1262_v39 = vand.u32 2147483647, %v1093_v15  ;;  %vm1258_vm1 = vweird.f32 %v1093_v15  ;;  %v1008_v1 = vsub.f32 %v3901_v55, %v4026_v61 }
 0x30f   :  { %v1265_v10 = vor.u32 1.1754944e-38, %v1264_v24 }
 0x310   :  { %v1355_v29 = vadd.f32 %v3215_v50, %v1354_v35  ;;  %vm1263_vm3 = vcmp.eq.f32.partialorder %v1262_v39, 8.507059e+37  ;;  %v1071_v35 = vmul.f32 1.442695, %v1008_v1 }
 0x312   :  { %v1359_v47 = vsel %vm1358_vm13, %v3215_v50, %v1355_v29 }
 0x313   :  { %v3217_v48 = vpop.eup %3216  ;;  %v1364_v62 = vsel %vm1361_vm15, %v1363_v54, %v1359_v47 }
 0x314   :  { %v1254_v30 = vmul.f32 %v3217_v48, %v1093_v15  ;;  %v4105_v57 = vpop.xlane.xlu2 %1134  ;;  %vm1259_vm14 = vweird.f32 %v3217_v48  ;;  %v1630_v63 = vmul.f32 %v3959_v8, %v1364_v62  ;;  %v999_v8 = vsub.f32 %v3866_v22, %v4083_v45 }
 0x315   :  { %3218 = vrcp.f32 %v4105_v57  ;;  %vm1260_vm2 = vmor %vm1258_vm1, %vm1259_vm14  ;;  %v1460_v15 = vand.u32 2147483648, %v4105_v57  ;;  %v1458_v23 = vand.u32 2147483647, %v4105_v57  ;;  %vm1454_vm5 = vweird.f32 %v4105_v57 }
 0x316   :  { %3220 = vpow2.f32 %v1055_v42  ;;  %v1255_v21 = vsub.f32 1.0, %v1254_v30  ;;  %3032 = vmatmul.msk.f32.vlgmr.msrb.gmra.mxu2 %vm264_vm0, %v1629_v44  ;;  %v1053_v45 = vmul.f32 1.442695, %v999_v8 }
 0x317   :  { %3222 = vpow2.f32 %v1063_v13  ;;  %v1461_v34 = vor.u32 1.1754944e-38, %v1460_v15  ;;  %vm1459_vm7 = vcmp.eq.f32.partialorder %v1458_v23, 8.507059e+37 }
 0x318   :  { %v1256_v32 = vmul.f32 %v3217_v48, %v1255_v21  ;;  %3224 = vpow2.f32 %v1069_v56 }
 0x319   :  { %3226 = vpow2.f32 %v1061_v37 }
 0x31a   :  { %v1257_v46 = vadd.f32 %v3217_v48, %v1256_v32 }
 0x31b   :  { %v3219_v3 = vpop.eup %3218 }
 0x31c   :  { %v4115_v50 = vpop.eup %3220  ;;  %v1261_v49 = vsel %vm1260_vm2, %v3217_v48, %v1257_v46  ;;  %v1450_v25 = vmul.f32 %v3219_v3, %v4105_v57  ;;  %vm1455_vm4 = vweird.f32 %v3219_v3 }
 0x31d   :  { %v1266_v14 = vsel %vm1263_vm3, %v1265_v10, %v1261_v49  ;;  %v1142_v18 = vsel %vm264_vm0, %v4115_v50, 0.0  ;;  %v4131_v6 = vpop.eup %3222  ;;  %vm1456_vm6 = vmor %vm1454_vm5, %vm1455_vm4 }
 0x31e   :  { %v1451_v28 = vsub.f32 1.0, %v1450_v25  ;;  %3033 = vmatmul.msk.f32.gmra.mxu2 %vm264_vm0, %v1630_v63  ;;  %v1623_v33 = vmul.f32 %v3967_v41, %v1266_v14  ;;  %v3116_v41 = vunpack.i.h.bf16 %v3829_v0  ;;  %v4135_v22 = vpop.eup %3224  ;;  %v1154_v60 = vsel %vm264_vm0, %v4131_v6, 0.0 }
 0x31f   :  { %v4139_v0 = vpop.eup %3226  ;;  %v1163_v48 = vsel %vm264_vm0, %v4135_v22, 0.0 }
 0x320   :  { %v1452_v36 = vmul.f32 %v3219_v3, %v1451_v28  ;;  %3026 = vmatmul.msk.f32.vlgmr.msrb.gmra.mxu3 %vm264_vm0, %v1623_v33  ;;  %v1151_v12 = vsel %vm264_vm0, %v4139_v0, 0.0 }
 0x321   :  { %2052 = vmatpush.msrb.mxu3 %v3115_v19  ;;  %1143 = vadd.xlane.f32.xlu2 %v1142_v18 }
 0x322   :  { %v1453_v55 = vadd.f32 %v3219_v3, %v1452_v36  ;;  %v1105_v61 = vpop.xlane.xlu0 %1104 }
 0x323   :  { %2053 = vmatpush.msrb.mxu3 %v3116_v41  ;;  %3228 = vrcp.f32 %v1105_v61  ;;  %v1320_v7 = vand.u32 2147483648, %v1105_v61  ;;  %v1318_v21 = vand.u32 2147483647, %v1105_v61  ;;  %vm1314_vm9 = vweird.f32 %v1105_v61 }
 0x324   :  { %v1457_v43 = vsel %vm1456_vm6, %v3219_v3, %v1453_v55  ;;  %3230 = vpow2.f32 %v1071_v35 }
 0x325   :  { %v1462_v42 = vsel %vm1459_vm7, %v1461_v34, %v1457_v43  ;;  %1155 = vadd.xlane.f32.xlu0 %v1154_v60  ;;  %3232 = vpow2.f32 %v1053_v45  ;;  %v1321_v13 = vor.u32 1.1754944e-38, %v1320_v7  ;;  %vm1319_vm11 = vcmp.eq.f32.partialorder %v1318_v21, 8.507059e+37 }
 0x326   :  { %v1637_v29 = vmul.f32 %v3973_v2, %v1462_v42 }
 0x328   :  { %3040 = vmatmul.msk.f32.vlgmr.msra.gmra.mxu2 %vm264_vm0, %v1637_v29 }
 0x329   :  { %v3229_v53 = vpop.eup %3228  ;;  %1164 = vadd.xlane.f32.xlu2 %v1163_v48 }
 0x32a   :  { %v1310_v30 = vmul.f32 %v3229_v53, %v1105_v61  ;;  %1152 = vadd.xlane.f32.xlu1 %v1151_v12  ;;  %v4147_v44 = vpop.eup %3230  ;;  %vm1315_vm8 = vweird.f32 %v3229_v53 }
 0x32b   :  { %v4149_v40 = vpop.eup %3232  ;;  %v1166_v5 = vsel %vm264_vm0, %v4147_v44, 0.0  ;;  %vm1316_vm10 = vmor %vm1314_vm9, %vm1315_vm8 }
 0x32c   :  { %v1311_v57 = vsub.f32 1.0, %v1310_v30  ;;  %v1139_v54 = vsel %vm264_vm0, %v4149_v40, 0.0 }
 0x32e   :  { %v1312_v2 = vmul.f32 %v3229_v53, %v1311_v57 }
 0x330   :  { %v1313_v47 = vadd.f32 %v3229_v53, %v1312_v2 }
 0x331   :  { %1167 = vadd.xlane.f32.xlu2 %v1166_v5 }
 0x332   :  { %v1317_v24 = vsel %vm1316_vm10, %v3229_v53, %v1313_v47  ;;  %1140 = vadd.xlane.f32.xlu1 %v1139_v54  ;;  %v1096_v32 = vpop.xlane.xlu0 %1095 }
 0x333   :  { %v1322_v39 = vsel %vm1319_vm11, %v1321_v13, %v1317_v24  ;;  %3234 = vrcp.f32 %v1096_v32  ;;  %v1108_v62 = vpop.xlane.xlu1 %1107  ;;  %vm1272_vm13 = vweird.f32 %v1096_v32  ;;  %v1276_v15 = vand.u32 2147483647, %v1096_v32 }
 0x334   :  { %3236 = vrcp.f32 %v1108_v62  ;;  %v1627_v56 = vmul.f32 %v3978_v16, %v1322_v39  ;;  %v1278_v16 = vand.u32 2147483648, %v1096_v32  ;;  %v1334_v8 = vand.u32 2147483648, %v1108_v62 }
 0x335   :  { %v1332_v45 = vand.u32 2147483647, %v1108_v62  ;;  %vm1328_vm1 = vweird.f32 %v1108_v62  ;;  %vm1277_vm2 = vcmp.eq.f32.partialorder %v1276_v15, 8.507059e+37 }
 0x336   :  { %3030 = vmatmul.msk.f32.vlgmr.msrb.gmra.mxu1 %vm264_vm0, %v1627_v56  ;;  %v1279_v43 = vor.u32 1.1754944e-38, %v1278_v16  ;;  %v1335_v29 = vor.u32 1.1754944e-38, %v1334_v8 }
 0x337   :  { %vm1333_vm4 = vcmp.eq.f32.partialorder %v1332_v45, 8.507059e+37 }
 0x339   :  { %v3235_v46 = vpop.eup %3234 }
 0x33a   :  { %v3237_v3 = vpop.eup %3236  ;;  %v1268_v37 = vmul.f32 %v3235_v46, %v1096_v32  ;;  %v4157_v10 = vpop.xlane.xlu2 %1137  ;;  %vm1273_vm12 = vweird.f32 %v3235_v46 }
 0x33b   :  { %v1324_v49 = vmul.f32 %v3237_v3, %v1108_v62  ;;  %3238 = vrcp.f32 %v4157_v10  ;;  %v4160_v25 = vpop.xlane.xlu1 %1125  ;;  %vm4168_vm14 = vmor %vm1272_vm13, %vm1273_vm12  ;;  %vm1329_vm15 = vweird.f32 %v3237_v3  ;;  %v1474_v57 = vand.u32 2147483648, %v4157_v10 }
 0x33c   :  { %v1269_v63 = vsub.f32 1.0, %v1268_v37  ;;  %3240 = vrcp.f32 %v4160_v25  ;;  %vm1330_vm3 = vmor %vm1328_vm1, %vm1329_vm15  ;;  %vm1468_vm6 = vweird.f32 %v4157_v10  ;;  %v1472_v13 = vand.u32 2147483647, %v4157_v10 }
 0x33d   :  { %v1325_v14 = vsub.f32 1.0, %v1324_v49  ;;  %v1475_v56 = vor.u32 1.1754944e-38, %v1474_v57  ;;  %vm1412_vm9 = vweird.f32 %v4160_v25 }
 0x33e   :  { %v1270_v19 = vmul.f32 %v3235_v46, %v1269_v63  ;;  %vm1473_vm10 = vcmp.eq.f32.partialorder %v1472_v13, 8.507059e+37 }
 0x33f   :  { %v1326_v28 = vmul.f32 %v3237_v3, %v1325_v14 }
 0x340   :  { %v1271_v33 = vadd.f32 %v3235_v46, %v1270_v19 }
 0x341   :  { %v3239_v1 = vpop.eup %3238  ;;  %v1327_v55 = vadd.f32 %v3237_v3, %v1326_v28 }
 0x342   :  { %v4163_v18 = vpop.eup %3240  ;;  %v1464_v36 = vmul.f32 %v3239_v1, %v4157_v10  ;;  %v4166_v23 = vpop.xlane.xlu2 %1128  ;;  %v1275_v34 = vsel %vm4168_vm14, %v3235_v46, %v1271_v33  ;;  %vm1469_vm5 = vweird.f32 %v3239_v1 }
 0x343   :  { %v1408_v61 = vmul.f32 %v4163_v18, %v4160_v25  ;;  %3242 = vrcp.f32 %v4166_v23  ;;  %v4175_v35 = vpop.xlane.xlu0 %1116  ;;  %v1280_v53 = vsel %vm1277_vm2, %v1279_v43, %v1275_v34  ;;  %v1331_v12 = vsel %vm1330_vm3, %v3237_v3, %v1327_v55  ;;  %vm4192_vm7 = vmor %vm1468_vm6, %vm1469_vm5 }
 0x344   :  { %v1465_v60 = vsub.f32 1.0, %v1464_v36  ;;  %3244 = vrcp.f32 %v4175_v35  ;;  %v1624_v30 = vmul.f32 %v3989_v52, %v1280_v53  ;;  %v1336_v2 = vsel %vm1333_vm4, %v1335_v29, %v1331_v12 }
 0x345   :  { %v1409_v42 = vsub.f32 1.0, %v1408_v61  ;;  %v1628_v5 = vmul.f32 %v3991_v59, %v1336_v2  ;;  %v1418_v52 = vand.u32 2147483648, %v4160_v25  ;;  %vm1413_vm8 = vweird.f32 %v4163_v18 }
 0x346   :  { %v1466_v48 = vmul.f32 %v3239_v1, %v1465_v60  ;;  %3027 = vmatmul.msk.f32.gmra.mxu3 %vm264_vm0, %v1624_v30  ;;  %v1416_v3 = vand.u32 2147483647, %v4160_v25  ;;  %v1374_v49 = vand.u32 2147483647, %v4175_v35  ;;  %v1376_v63 = vand.u32 2147483648, %v4175_v35  ;;  %vm1414_vm12 = vmor %vm1412_vm9, %vm1413_vm8 }
 0x347   :  { %v1410_v7 = vmul.f32 %v4163_v18, %v1409_v42  ;;  %3031 = vmatmul.msk.f32.gmra.mxu1 %vm264_vm0, %v1628_v5  ;;  %v1419_v10 = vor.u32 1.1754944e-38, %v1418_v52  ;;  %vm1370_vm14 = vweird.f32 %v4175_v35  ;;  %v1432_v45 = vand.u32 2147483648, %v4166_v23  ;;  %v4238_v42 = vpop.f32.mrf.mxu0 }
 0x348   :  { %v1467_v21 = vadd.f32 %v3239_v1, %v1466_v48  ;;  %vm1417_vm13 = vcmp.eq.f32.partialorder %v1416_v3, 8.507059e+37  ;;  %v1377_v8 = vor.u32 1.1754944e-38, %v1376_v63  ;;  %vm1375_vm1 = vcmp.eq.f32.partialorder %v1374_v49, 8.507059e+37 }
 0x349   :  { %v4183_v47 = vpop.eup %3242  ;;  %v1411_v46 = vadd.f32 %v4163_v18, %v1410_v7  ;;  %vm1426_vm3 = vweird.f32 %v4166_v23  ;;  %v1433_v30 = vor.u32 1.1754944e-38, %v1432_v45 }
 0x34a   :  { %v3245_v54 = vpop.eup %3244  ;;  %v4190_v24 = vpop.xlane.xlu2 %1146  ;;  %v1422_v39 = vmul.f32 %v4183_v47, %v4166_v23  ;;  %v1471_v59 = vsel %vm4192_vm7, %v3239_v1, %v1467_v21  ;;  %vm1427_vm2 = vweird.f32 %v4183_v47 }
 0x34b   :  { %v1366_v62 = vmul.f32 %v3245_v54, %v4175_v35  ;;  %3133 = vrot.lane.b32.xlu1 %v3684_v38, %s3486_s12  ;;  %v1476_v14 = vsel %vm1473_vm10, %v1475_v56, %v1471_v59  ;;  %vm1371_vm11 = vweird.f32 %v3245_v54  ;;  %v4210_v16 = vpop.xlane.xlu0 %1158  ;;  %v1415_v1 = vsel %vm1414_vm12, %v4163_v18, %v1411_v46  ;;  %vm1428_vm4 = vmor %vm1426_vm3, %vm1427_vm2 }
 0x34c   :  { %v1423_v19 = vsub.f32 1.0, %v1422_v39  ;;  %v1638_v33 = vmul.f32 %v4005_v11, %v1476_v14  ;;  %v1420_v15 = vsel %vm1417_vm13, %v1419_v10, %v1415_v1  ;;  %vm1372_vm15 = vmor %vm1370_vm14, %vm1371_vm11  ;;  %3246 = vrcp.f32 %v4210_v16 }
 0x34d   :  { %v1367_v37 = vsub.f32 1.0, %v1366_v62  ;;  %v1634_v36 = vmul.f32 %v4001_v51, %v1420_v15  ;;  %v1572_v15 = vand.u32 2147483648, %v4210_v16  ;;  %vm1566_vm13 = vweird.f32 %v4210_v16 }
 0x34e   :  { %3041 = vmatmul.msk.f32.gmra.mxu2 %vm264_vm0, %v1638_v33  ;;  %v1424_v55 = vmul.f32 %v4183_v47, %v1423_v19 }
 0x34f   :  { %v1368_v28 = vmul.f32 %v3245_v54, %v1367_v37  ;;  %3037 = vmatmul.msk.f32.gmra.mxu0 %vm264_vm0, %v1634_v36  ;;  %v4254_v46 = vpop.f32.mrf.mxu0 }
 0x350   :  { %v1425_v34 = vadd.f32 %v4183_v47, %v1424_v55 }
 0x351   :  { %v1369_v25 = vadd.f32 %v3245_v54, %v1368_v28 }
 0x352   :  { %v1132_v41 = vpop.xlane.xlu1 %1131  ;;  %v4228_v51 = vpop.eup %3246  ;;  %v1429_v29 = vsel %vm1428_vm4, %v4183_v47, %v1425_v34  ;;  %vm1510_vm4 = vweird.f32 %v4190_v24 }
 0x353   :  { %v1373_v11 = vsel %vm1372_vm15, %v3245_v54, %v1369_v25  ;;  %3138 = vrot.lane.b32.xlu1 %v3684_v38, %s3475_s14  ;;  %v4221_v18 = vpop.xlane.xlu2 %1149  ;;  %3248 = vrcp.f32 %v1132_v41  ;;  %v1430_v38 = vand.u32 2147483647, %v4166_v23  ;;  %v1562_v48 = vmul.f32 %v4228_v51, %v4210_v16 }
 0x354   :  { %v1378_v61 = vsel %vm1375_vm1, %v1377_v8, %v1373_v11  ;;  %3250 = vrcp.f32 %v4190_v24  ;;  %v1446_v13 = vand.u32 2147483648, %v1132_v41  ;;  %vm1440_vm7 = vweird.f32 %v1132_v41 }
 0x355   :  { %v1631_v35 = vmul.f32 %v4016_v26, %v1378_v61  ;;  %vm1431_vm5 = vcmp.eq.f32.partialorder %v1430_v38, 8.507059e+37  ;;  %v1563_v21 = vsub.f32 1.0, %v1562_v48  ;;  %v1444_v62 = vand.u32 2147483647, %v1132_v41 }
 0x356   :  { %v1434_v7 = vsel %vm1431_vm5, %v1433_v30, %v1429_v29  ;;  %v1447_v49 = vor.u32 1.1754944e-38, %v1446_v13  ;;  %vm1567_vm11 = vweird.f32 %v4228_v51  ;;  %v1570_v11 = vand.u32 2147483647, %v4210_v16 }
 0x357   :  { %3034 = vmatmul.msk.f32.vlgmr.msra.gmra.mxu3 %vm264_vm0, %v1631_v35  ;;  %v1635_v32 = vmul.f32 %v4014_v20, %v1434_v7  ;;  %v1564_v3 = vmul.f32 %v4228_v51, %v1563_v21  ;;  %vm1445_vm9 = vcmp.eq.f32.partialorder %v1444_v62, 8.507059e+37  ;;  %vm4274_vm15 = vmor %vm1566_vm13, %vm1567_vm11  ;;  %v1514_v30 = vand.u32 2147483647, %v4190_v24 }
 0x358   :  { %vm1571_vm3 = vcmp.eq.f32.partialorder %v1570_v11, 8.507059e+37 }
 0x359   :  { %v3249_v43 = vpop.eup %3248  ;;  %v1565_v25 = vadd.f32 %v4228_v51, %v1564_v3 }
 0x35a   :  { %v4234_v60 = vpop.xlane.xlu1 %1119  ;;  %v4236_v26 = vpop.xlane.xlu0 %1161  ;;  %v1436_v53 = vmul.f32 %v3249_v43, %v1132_v41  ;;  %vm1441_vm6 = vweird.f32 %v3249_v43 }
 0x35b   :  { %3252 = vrcp.f32 %v4234_v60  ;;  %v3124_v12 = vpop.permute.xlu2 %3123  ;;  %v4244_v57 = vpop.eup %3250  ;;  %vm1442_vm8 = vmor %vm1440_vm7, %vm1441_vm6  ;;  %v1390_v19 = vand.u32 2147483648, %v4234_v60  ;;  %v1388_v1 = vand.u32 2147483647, %v4234_v60  ;;  %vm1384_vm12 = vweird.f32 %v4234_v60 }
 0x35c   :  { %v1437_v23 = vsub.f32 1.0, %v1436_v53  ;;  %3254 = vrcp.f32 %v4236_v26  ;;  %v3125_v2 = vunpack.i.l.bf16 %v3124_v12  ;;  %v1506_v47 = vmul.f32 %v4244_v57, %v4190_v24 }
 0x35d   :  { %3256 = vrcp.f32 %v4221_v18  ;;  %v3126_v54 = vunpack.i.h.bf16 %v3124_v12  ;;  %v1391_v61 = vor.u32 1.1754944e-38, %v1390_v19  ;;  %vm1389_vm1 = vcmp.eq.f32.partialorder %v1388_v1, 8.507059e+37 }
 0x35e   :  { %v1438_v5 = vmul.f32 %v3249_v43, %v1437_v23  ;;  %1982 = vmatpush.msra.mxu1 %v3125_v2  ;;  %v1507_v10 = vsub.f32 1.0, %v1506_v47  ;;  %v1569_v38 = vsel %vm4274_vm15, %v4228_v51, %v1565_v25  ;;  %vm1511_vm2 = vweird.f32 %v4244_v57 }
 0x35f   :  { %v1516_v12 = vand.u32 2147483648, %v4190_v24  ;;  %vm4291_vm5 = vmor %vm1510_vm4, %vm1511_vm2  ;;  %v1586_v24 = vand.u32 2147483648, %v4236_v26  ;;  %vm1580_vm7 = vweird.f32 %v4236_v26 }
 0x360   :  { %v1439_v39 = vadd.f32 %v3249_v43, %v1438_v5  ;;  %1983 = vmatpush.msra.mxu1 %v3126_v54  ;;  %v1508_v36 = vmul.f32 %v4244_v57, %v1507_v10 }
 0x361   :  { %v3253_v52 = vpop.eup %3252  ;;  %3038 = vmatmul.msk.f32.vlgmr.msra.gmra.mxu1 %vm264_vm0, %v1635_v32  ;;  %v1517_v13 = vor.u32 1.1754944e-38, %v1516_v12 }
 0x362   :  { %v1380_v59 = vmul.f32 %v3253_v52, %v4234_v60  ;;  %v4252_v56 = vpop.eup %3254  ;;  %v1443_v37 = vsel %vm1442_vm8, %v3249_v43, %v1439_v39  ;;  %vm1385_vm10 = vweird.f32 %v3253_v52  ;;  %v1573_v43 = vor.u32 1.1754944e-38, %v1572_v15 }
 0x363   :  { %v1576_v20 = vmul.f32 %v4252_v56, %v4236_v26  ;;  %v4260_v14 = vpop.eup %3256  ;;  %v1448_v33 = vsel %vm1445_vm9, %v1447_v49, %v1443_v37  ;;  %vm1386_vm14 = vmor %vm1384_vm12, %vm1385_vm10  ;;  %vm1581_vm6 = vweird.f32 %v4252_v56  ;;  %vm1515_vm8 = vcmp.eq.f32.partialorder %v1514_v30, 8.507059e+37 }
 0x364   :  { %v1381_v63 = vsub.f32 1.0, %v1380_v59  ;;  %v1520_v41 = vmul.f32 %v4260_v14, %v4221_v18  ;;  %v1636_v35 = vmul.f32 %v4037_v9, %v1448_v33  ;;  %v1509_v9 = vadd.f32 %v4244_v57, %v1508_v36  ;;  %vm1582_vm9 = vmor %vm1580_vm7, %vm1581_vm6 }
 0x365   :  { %v1577_v8 = vsub.f32 1.0, %v1576_v20  ;;  %v1574_v23 = vsel %vm1571_vm3, %v1573_v43, %v1569_v38  ;;  %v1587_v59 = vor.u32 1.1754944e-38, %v1586_v24  ;;  %vm1525_vm10 = vweird.f32 %v4260_v14 }
 0x366   :  { %v1382_v28 = vmul.f32 %v3253_v52, %v1381_v63  ;;  %v1521_v48 = vsub.f32 1.0, %v1520_v41  ;;  %v1645_v54 = vmul.f32 %v4032_v58, %v1574_v23  ;;  %v1530_v37 = vand.u32 2147483648, %v4221_v18 }
 0x367   :  { %v1578_v60 = vmul.f32 %v4252_v56, %v1577_v8  ;;  %vm1524_vm12 = vweird.f32 %v4221_v18  ;;  %v1528_v49 = vand.u32 2147483647, %v4221_v18 }
 0x368   :  { %v1383_v55 = vadd.f32 %v3253_v52, %v1382_v28  ;;  %v1522_v5 = vmul.f32 %v4260_v14, %v1521_v48  ;;  %vm1526_vm13 = vmor %vm1524_vm12, %vm1525_vm10  ;;  %v1531_v63 = vor.u32 1.1754944e-38, %v1530_v37 }
 0x369   :  { %3039 = vmatmul.msk.f32.gmra.mxu1 %vm264_vm0, %v1636_v35  ;;  %v1579_v21 = vadd.f32 %v4252_v56, %v1578_v60 }
 0x36a   :  { %v1387_v45 = vsel %vm1386_vm14, %v3253_v52, %v1383_v55  ;;  %v1584_v52 = vand.u32 2147483647, %v4236_v26  ;;  %v1523_v3 = vadd.f32 %v4260_v14, %v1522_v5  ;;  %vm1529_vm14 = vcmp.eq.f32.partialorder %v1528_v49, 8.507059e+37 }
 0x36b   :  { %v1810_v16 = vpop.f32.mrf.mxu0  ;;  %v1392_v29 = vsel %vm1389_vm1, %v1391_v61, %v1387_v45 }
 0x36c   :  { %2221 = vrot.lane.b32.xlu2 %v1810_v16, %s3475_s14  ;;  %v1632_v53 = vmul.f32 %v4047_v31, %v1392_v29  ;;  %v1513_v31 = vsel %vm4291_vm5, %v4244_v57, %v1509_v9  ;;  %v1583_v57 = vsel %vm1582_vm9, %v4252_v56, %v1579_v21  ;;  %vm1585_vm11 = vcmp.eq.f32.partialorder %v1584_v52, 8.507059e+37 }
 0x36d   :  { %v3119_v51 = vpop.permute.xlu0 %3118  ;;  %v1518_v39 = vsel %vm1515_vm8, %v1517_v13, %v1513_v31  ;;  %v1588_v10 = vsel %vm1585_vm11, %v1587_v59, %v1583_v57  ;;  %v1527_v56 = vsel %vm1526_vm13, %v4260_v14, %v1523_v3 }
 0x36e   :  { %v3120_v7 = vunpack.i.l.bf16 %v3119_v51  ;;  %3035 = vmatmul.msk.f32.gmra.mxu3 %vm264_vm0, %v1632_v53  ;;  %v3121_v47 = vunpack.i.h.bf16 %v3119_v51  ;;  %v1641_v26 = vmul.f32 %v4024_v4, %v1518_v39  ;;  %v1646_v20 = vmul.f32 %v4049_v17, %v1588_v10 }
 0x36f   :  { %v1532_v19 = vsel %vm1529_vm14, %v1531_v63, %v1527_v56 }
 0x370   :  { %2157 = vmatpush.msrb.mxu2 %v3120_v7  ;;  %v1642_v28 = vmul.f32 %v4040_v27, %v1532_v19  ;;  %v4326_v27 = vpop.f32.mrf.mxu1 }
 0x372   :  { %v3129_v32 = vpop.permute.xlu1 %3128  ;;  %2158 = vmatpush.msrb.mxu2 %v3121_v47 }
 0x373   :  { %v3130_v62 = vunpack.i.l.bf16 %v3129_v32  ;;  %3048 = vmatmul.msk.f32.vlgmr.msrb.gmra.mxu2 %vm264_vm0, %v1645_v54  ;;  %v3131_v58 = vunpack.i.h.bf16 %v3129_v32 }
 0x375   :  { %2087 = vmatpush.msrb.mxu0 %v3130_v62 }
 0x377   :  { %2088 = vmatpush.msrb.mxu0 %v3131_v58 }
 0x378   :  { %3044 = vmatmul.msk.f32.vlgmr.msrb.gmra.mxu0 %vm264_vm0, %v1641_v26  ;;  %v4333_v11 = vpop.f32.mrf.mxu1 }
 0x379   :  { %v1738_v18 = vpop.f32.mrf.mxu2 }
 0x37b   :  { %3049 = vmatmul.msk.f32.gmra.mxu2 %vm264_vm0, %v1646_v20 }
 0x380   :  { %3045 = vmatmul.msk.f32.gmra.mxu0 %vm264_vm0, %v1642_v28 }
 0x383   :  { %v1813_v4 = vpop.f32.mrf.mxu0 }
 0x384   :  { %2223 = vrot.lane.b32.xlu1 %v1813_v4, %s3475_s14 }
 0x38b   :  { %v1950_v33 = vpop.f32.mrf.mxu0 }
 0x38c   :  { %2205 = vrot.lane.b32.xlu1 %v1738_v18, %s3486_s12  ;;  %2253 = vrot.lane.b32.xlu0 %v1950_v33, %s3484_s10 }
 0x391   :  { %v1741_v14 = vpop.f32.mrf.mxu2 }
 0x394   :  { %2207 = vrot.lane.b32.xlu0 %v1741_v14, %s3486_s12  ;;  %v1144_v17 = vpop.xlane.xlu2 %1143 }
 0x395   :  { %3258 = vrcp.f32 %v1144_v17  ;;  %v1502_v24 = vand.u32 2147483648, %v1144_v17  ;;  %vm1496_vm5 = vweird.f32 %v1144_v17  ;;  %v1500_v52 = vand.u32 2147483647, %v1144_v17 }
 0x397   :  { %v1503_v59 = vor.u32 1.1754944e-38, %v1502_v24  ;;  %vm1501_vm7 = vcmp.eq.f32.partialorder %v1500_v52, 8.507059e+37 }
 0x398   :  { %v4339_v43 = vpop.xlane.xlu0 %1155 }
 0x399   :  { %v1880_v1 = vpop.f32.mrf.mxu2 }
 0x39a   :  { %2237 = vrot.lane.b32.xlu1 %v1880_v1, %s3483_s6 }
 0x39b   :  { %v3259_v36 = vpop.eup %3258 }
 0x39c   :  { %v4328_v15 = vpop.xlane.xlu2 %1164  ;;  %v1492_v55 = vmul.f32 %v3259_v36, %v1144_v17  ;;  %vm1497_vm3 = vweird.f32 %v3259_v36 }
 0x39d   :  { %v4324_v25 = vpop.xlane.xlu1 %1152  ;;  %vm1498_vm6 = vmor %vm1496_vm5, %vm1497_vm3  ;;  %vm1594_vm9 = vweird.f32 %v4328_v15  ;;  %v1598_v56 = vand.u32 2147483647, %v4328_v15  ;;  %v1600_v63 = vand.u32 2147483648, %v4328_v15  ;;  %vm1552_vm5 = vweird.f32 %v4339_v43 }
 0x39e   :  { %v1493_v35 = vsub.f32 1.0, %v1492_v55  ;;  %v1544_v33 = vand.u32 2147483648, %v4324_v25  ;;  %vm1538_vm12 = vweird.f32 %v4324_v25  ;;  %v1542_v1 = vand.u32 2147483647, %v4324_v25 }
 0x39f   :  { %vm1599_vm14 = vcmp.eq.f32.partialorder %v1598_v56, 8.507059e+37 }
 0x3a0   :  { %v1494_v29 = vmul.f32 %v3259_v36, %v1493_v35  ;;  %v1545_v55 = vor.u32 1.1754944e-38, %v1544_v33 }
 0x3a1   :  { %v1883_v58 = vpop.f32.mrf.mxu2 }
 0x3a2   :  { %v1495_v31 = vadd.f32 %v3259_v36, %v1494_v29 }
 0x3a3   :  { %v1775_v8 = vpop.f32.mrf.mxu3 }
 0x3a4   :  { %2209 = vrot.lane.b32.xlu1 %v1775_v8, %s3486_s12  ;;  %v4335_v34 = vpop.xlane.xlu2 %1167  ;;  %v1499_v57 = vsel %vm1498_vm6, %v3259_v36, %v1495_v31 }
 0x3a5   :  { %v1141_v41 = vpop.xlane.xlu1 %1140  ;;  %vm1608_vm3 = vweird.f32 %v4335_v34 }
 0x3a6   :  { %3260 = vrcp.f32 %v1141_v41  ;;  %v1488_v9 = vand.u32 2147483648, %v1141_v41  ;;  %v1486_v12 = vand.u32 2147483647, %v1141_v41  ;;  %vm1482_vm1 = vweird.f32 %v1141_v41 }
 0x3a7   :  { %3262 = vrcp.f32 %v4328_v15 }
 0x3a8   :  { %3264 = vrcp.f32 %v4324_v25  ;;  %v1489_v7 = vor.u32 1.1754944e-38, %v1488_v9  ;;  %vm1487_vm4 = vcmp.eq.f32.partialorder %v1486_v12, 8.507059e+37  ;;  %v1558_v9 = vand.u32 2147483648, %v4339_v43 }
 0x3a9   :  { %3266 = vrcp.f32 %v4335_v34 }
 0x3aa   :  { %3268 = vrcp.f32 %v4339_v43 }
 0x3ac   :  { %v3261_v61 = vpop.eup %3260 }
 0x3ad   :  { %v1478_v45 = vmul.f32 %v3261_v61, %v1141_v41  ;;  %v4337_v38 = vpop.eup %3262  ;;  %vm1483_vm15 = vweird.f32 %v3261_v61 }
 0x3ae   :  { %v4341_v16 = vpop.eup %3264  ;;  %v1590_v48 = vmul.f32 %v4337_v38, %v4328_v15  ;;  %vm1484_vm2 = vmor %vm1482_vm1, %vm1483_vm15  ;;  %vm1595_vm8 = vweird.f32 %v4337_v38  ;;  %vm1543_vm15 = vcmp.eq.f32.partialorder %v1542_v1, 8.507059e+37 }
 0x3af   :  { %v1479_v60 = vsub.f32 1.0, %v1478_v45  ;;  %v1534_v51 = vmul.f32 %v4341_v16, %v4324_v25  ;;  %v4350_v5 = vpop.eup %3266  ;;  %vm1539_vm10 = vweird.f32 %v4341_v16  ;;  %vm4371_vm11 = vmor %vm1594_vm9, %vm1595_vm8  ;;  %v1614_v45 = vand.u32 2147483648, %v4335_v34 }
 0x3b0   :  { %v1591_v2 = vsub.f32 1.0, %v1590_v48  ;;  %v4353_v32 = vpop.eup %3268  ;;  %v1604_v62 = vmul.f32 %v4350_v5, %v4335_v34  ;;  %vm1540_vm13 = vmor %vm1538_vm12, %vm1539_vm10  ;;  %vm1609_vm1 = vweird.f32 %v4350_v5  ;;  %vm2317_vm9 = vcmask 261120  }
 0x3b1   :  { %v1480_v53 = vmul.f32 %v3261_v61, %v1479_v60  ;;  %v1535_v13 = vsub.f32 1.0, %v1534_v51  ;;  %v1548_v3 = vmul.f32 %v4353_v32, %v4339_v43  ;;  %v1556_v51 = vand.u32 2147483647, %v4339_v43 }
 0x3b2   :  { %v1592_v39 = vmul.f32 %v4337_v38, %v1591_v2  ;;  %v1605_v10 = vsub.f32 1.0, %v1604_v62  ;;  %vm2322_vm10 = vcmask 392192   ;;  %vm2332_vm12 = vcmask 654336  }
 0x3b3   :  { %v1481_v30 = vadd.f32 %v3261_v61, %v1480_v53  ;;  %v1845_v23 = vpop.f32.mrf.mxu1  ;;  %v1536_v37 = vmul.f32 %v4341_v16, %v1535_v13  ;;  %v1549_v19 = vsub.f32 1.0, %v1548_v3  ;;  %vm1557_vm8 = vcmp.eq.f32.partialorder %v1556_v51, 8.507059e+37 }
 0x3b4   :  { %2225 = vrot.lane.b32.xlu2 %v1845_v23, %s3475_s14  ;;  %v1593_v26 = vadd.f32 %v4337_v38, %v1592_v39  ;;  %v1606_v15 = vmul.f32 %v4350_v5, %v1605_v10 }
 0x3b5   :  { %v1485_v21 = vsel %vm1484_vm2, %v3261_v61, %v1481_v30  ;;  %v1537_v28 = vadd.f32 %v4341_v16, %v1536_v37  ;;  %v1550_v8 = vmul.f32 %v4353_v32, %v1549_v19  ;;  %vm1553_vm2 = vweird.f32 %v4353_v32 }
 0x3b6   :  { %v1490_v47 = vsel %vm1487_vm4, %v1489_v7, %v1485_v21  ;;  %v1597_v17 = vsel %vm4371_vm11, %v4337_v38, %v1593_v26  ;;  %v1607_v35 = vadd.f32 %v4350_v5, %v1606_v15  ;;  %vm1610_vm4 = vmor %vm1608_vm3, %vm1609_vm1  ;;  %v1559_v30 = vor.u32 1.1754944e-38, %v1558_v9 }
 0x3b7   :  { %v1639_v54 = vmul.f32 %v4149_v40, %v1490_v47  ;;  %v1504_v40 = vsel %vm1501_vm7, %v1503_v59, %v1499_v57  ;;  %v1541_v36 = vsel %vm1540_vm13, %v4341_v16, %v1537_v28  ;;  %v1612_v16 = vand.u32 2147483647, %v4335_v34  ;;  %vm1554_vm6 = vmor %vm1552_vm5, %vm1553_vm2 }
 0x3b8   :  { %v1640_v4 = vmul.f32 %v4115_v50, %v1504_v40  ;;  %v1601_v50 = vor.u32 1.1754944e-38, %v1600_v63  ;;  %v1546_v25 = vsel %vm1543_vm15, %v1545_v55, %v1541_v36  ;;  %v1551_v29 = vadd.f32 %v4353_v32, %v1550_v8 }
 0x3b9   :  { %3042 = vmatmul.msk.f32.vlgmr.msrb.gmra.mxu3 %vm264_vm0, %v1639_v54  ;;  %v1643_v53 = vmul.f32 %v4139_v0, %v1546_v25  ;;  %v1611_v12 = vsel %vm1610_vm4, %v4350_v5, %v1607_v35  ;;  %vm1613_vm7 = vcmp.eq.f32.partialorder %v1612_v16, 8.507059e+37  ;;  %v2020_v5 = vpop.f32.mrf.mxu2  ;;  %vm2327_vm11 = vcmask 523264  }
 0x3ba   :  { %v1602_v41 = vsel %vm1599_vm14, %v1601_v50, %v1597_v17  ;;  %v1555_v34 = vsel %vm1554_vm6, %v4353_v32, %v1551_v29  ;;  %vm2337_vm13 = vcmask 785408   ;;  %vm2342_vm14 = vcmask 916480   ;;  %v3288_v29 = vld [vmem:[#allocation2] sm:$0xff] }
 0x3bb   :  { %v1647_v60 = vmul.f32 %v4135_v22, %v1602_v41  ;;  %v1615_v22 = vor.u32 1.1754944e-38, %v1614_v45  ;;  %v1560_v0 = vsel %vm1557_vm8, %v1559_v30, %v1555_v34 }
 0x3bc   :  { %2239 = vrot.lane.b32.xlu2 %v1883_v58, %s3483_s6  ;;  %v1644_v21 = vmul.f32 %v4131_v6, %v1560_v0 }
 0x3bd   :  { %v3134_v49 = vpop.permute.xlu1 %3133  ;;  %v1616_v7 = vsel %vm1613_vm7, %v1615_v22, %v1611_v12 }
 0x3be   :  { %v3135_v20 = vunpack.i.l.bf16 %v3134_v49  ;;  %v3136_v14 = vunpack.i.h.bf16 %v3134_v49  ;;  %v1648_v2 = vmul.f32 %v4147_v44, %v1616_v7 }
 0x3c0   :  { %2192 = vmatpush.msra.mxu3 %v3135_v20 }
 0x3c1   :  { %3043 = vmatmul.msk.f32.gmra.mxu3 %vm264_vm0, %v1640_v4 }
 0x3c2   :  { %2193 = vmatpush.msra.mxu3 %v3136_v14 }
 0x3c4   :  { %v1848_v24 = vpop.f32.mrf.mxu1 }
 0x3c5   :  { %v3139_v61 = vpop.permute.xlu1 %3138 }
 0x3c6   :  { %v3140_v38 = vunpack.i.l.bf16 %v3139_v61  ;;  %v3141_v48 = vunpack.i.h.bf16 %v3139_v61  ;;  %v2222_v52 = vpop.permute.xlu2 %2221 }
 0x3c8   :  { %2122 = vmatpush.msrb.mxu1 %v3140_v38 }
 0x3c9   :  { %3050 = vmatmul.msk.f32.vlgmr.msra.gmra.mxu3 %vm264_vm0, %v1647_v60  ;;  %v1778_v23 = vpop.f32.mrf.mxu3 }
 0x3ca   :  { %2123 = vmatpush.msrb.mxu1 %v3141_v48  ;;  %2211 = vrot.lane.b32.xlu2 %v1778_v23, %s3486_s12 }
 0x3cb   :  { %3046 = vmatmul.msk.f32.vlgmr.msrb.gmra.mxu1 %vm264_vm0, %v1643_v53 }
 0x3cc   :  { %v1953_v43 = vpop.f32.mrf.mxu0 }
 0x3cd   :  { %2255 = vrot.lane.b32.xlu0 %v1953_v43, %s3484_s10 }
 0x3d1   :  { %3051 = vmatmul.msk.f32.gmra.mxu3 %vm264_vm0, %v1648_v2  ;;  %v2023_v13 = vpop.f32.mrf.mxu2 }
 0x3d3   :  { %3047 = vmatmul.msk.f32.gmra.mxu1 %vm264_vm0, %v1644_v21  ;;  %v3289_v21 = vld [vmem:[#allocation2 + $0x10] sm:$0xff] }
 0x3da   :  { %v1915_v31 = vpop.f32.mrf.mxu3 }
 0x3db   :  { %2241 = vrot.lane.b32.xlu0 %v1915_v31, %s3483_s6 }
 0x3de   :  { %v1985_v54 = vpop.f32.mrf.mxu1 }
 0x3e6   :  { %v1988_v10 = vpop.f32.mrf.mxu1 }
 0x3f1   :  { %v1918_v59 = vpop.f32.mrf.mxu3 }
 0x3f5   :  { %v2090_v47 = vpop.f32.mrf.mxu0 }
 0x3f6   :  { %2285 = vrot.lane.b32.xlu1 %v2090_v47, %s3487_s13  ;;  %v2160_v6 = vpop.f32.mrf.mxu2  ;;  %v2224_v3 = vpop.permute.xlu1 %2223 }
 0x3fd   :  { %v2093_v44 = vpop.f32.mrf.mxu0 }
 0x3fe   :  { %2287 = vrot.lane.b32.xlu2 %v2093_v44, %s3487_s13  ;;  %2257 = vrot.lane.b32.xlu1 %v1985_v54, %s3484_s10  ;;  %v2254_v32 = vpop.permute.xlu0 %2253  ;;  %v2206_v63 = vpop.permute.xlu1 %2205 }
 0x3ff   :  { %v2163_v20 = vpop.f32.mrf.mxu2  ;;  %v2313_v1 = vsel %vm264_vm0, %v4238_v42, %v2206_v63 }
 0x400   :  { %v2318_v50 = vsel %vm2317_vm9, %v2313_v1, %v2222_v52  ;;  %v2505_v1 = vld [vmem:[#allocation8 + $0x1c0] sm:$0xff] }
 0x406   :  { %2301 = vrot.lane.b32.xlu2 %v2160_v6, %s3482_s5  ;;  %2269 = vrot.lane.b32.xlu1 %v2020_v5, %s3485_s11  ;;  %v2208_v62 = vpop.permute.xlu0 %2207 }
 0x407   :  { %v2314_v57 = vsel %vm264_vm0, %v4254_v46, %v2208_v62 }
 0x408   :  { %v2319_v37 = vsel %vm2317_vm9, %v2314_v57, %v2224_v3 }
 0x40c   :  { %v2238_v4 = vpop.permute.xlu1 %2237 }
 0x40d   :  { %v2323_v36 = vsel %vm2322_vm10, %v2318_v50, %v2238_v4  ;;  %v2507_v50 = vld [vmem:[#allocation8 + $0x1d0] sm:$0xff] }
 0x40e   :  { %v2226_v39 = vpop.permute.xlu2 %2225  ;;  %2271 = vrot.lane.b32.xlu1 %v2023_v13, %s3485_s11  ;;  %v2328_v55 = vsel %vm2327_vm11, %v2323_v36, %v2254_v32 }
 0x416   :  { %v2240_v58 = vpop.permute.xlu2 %2239  ;;  %2243 = vrot.lane.b32.xlu1 %v1918_v59, %s3483_s6  ;;  %v2210_v18 = vpop.permute.xlu1 %2209 }
 0x417   :  { %v2324_v40 = vsel %vm2322_vm10, %v2319_v37, %v2240_v58  ;;  %v2315_v12 = vsel %vm264_vm0, %v4326_v27, %v2210_v18  ;;  %v3291_v58 = vld [vmem:[#allocation2 + $0x18] sm:$0xff]  ;;  %v2509_v18 = vld [vmem:[#allocation8 + $0x1e0] sm:$0xff] }
 0x418   :  { %v2320_v51 = vsel %vm2317_vm9, %v2315_v12, %v2226_v39  ;;  %2523 = vmatpush.msra.mxu0 %v2509_v18  ;;  %v2504_v12 = vld [vmem:[#allocation8 + $0x1b8] sm:$0xff]  ;;  %v2463_v18 = vld [vmem:[#allocation8 + $0x70] sm:$0xff] }
 0x41a   :  { %2524 = vmatpush.msra.mxu0 %v2505_v1  ;;  %v2459_v1 = vld [vmem:[#allocation8 + $0x50] sm:$0xff] }
 0x424   :  { %v2212_v17 = vpop.permute.xlu2 %2211 }
 0x425   :  { %v2316_v54 = vsel %vm264_vm0, %v4333_v11, %v2212_v17  ;;  %v3488_v11 = vmov 128.0   ;;  %v2512_v17 = vld [vmem:[#allocation8 + $0x1f8] sm:$0xff] }
 0x426   :  { %3270 = vrcp.f32 %v3488_v11  ;;  %2610 = vmatpush.msrb.mxu3 %v2512_v17  ;;  %v2470_v11 = vld [vmem:[#allocation8 + $0xa8] sm:$0xff] }
 0x427   :  { %v2458_v17 = vld [vmem:[#allocation8 + $0x48] sm:$0xff] }
 0x43c   :  { %v2055_v26 = vpop.f32.mrf.mxu3 }
 0x43d   :  { %2273 = vrot.lane.b32.xlu2 %v2055_v26, %s3485_s11  ;;  %v3271_v26 = vpop.eup %3270 }
 0x43e   :  { %vm2365_vm0 = vweird.f32 %v3271_v26 }
 0x43f   :  { %v2256_v41 = vpop.permute.xlu0 %2255 }
 0x440   :  { %v2329_v61 = vsel %vm2327_vm11, %v2324_v40, %v2256_v41 }
 0x444   :  { %v2058_v49 = vpop.f32.mrf.mxu3 }
 0x445   :  { %2259 = vrot.lane.b32.xlu2 %v1988_v10, %s3484_s10  ;;  %v2361_v10 = vmul.f32 128.0, %v3271_v26 }
 0x448   :  { %v2125_v56 = vpop.f32.mrf.mxu1 }
 0x449   :  { %2289 = vrot.lane.b32.xlu0 %v2125_v56, %s3487_s13 }
 0x44c   :  { %v2195_v46 = vpop.f32.mrf.mxu3 }
 0x44d   :  { %2305 = vrot.lane.b32.xlu1 %v2195_v46, %s3482_s5  ;;  %v2242_v48 = vpop.permute.xlu0 %2241 }
 0x44e   :  { %v2325_v30 = vsel %vm2322_vm10, %v2320_v51, %v2242_v48  ;;  %v2502_v48 = vld [vmem:[#allocation8 + $0x1a8] sm:$0xff]  ;;  %v2497_v51 = vld [vmem:[#allocation8 + $0x180] sm:$0xff] }
 0x450   :  { %v2128_v19 = vpop.f32.mrf.mxu1 }
 0x451   :  { %2303 = vrot.lane.b32.xlu0 %v2163_v20, %s3482_s5 }
 0x454   :  { %v2198_v28 = vpop.f32.mrf.mxu3 }
 0x455   :  { %2307 = vrot.lane.b32.xlu2 %v2198_v28, %s3482_s5  ;;  %2291 = vrot.lane.b32.xlu1 %v2128_v19, %s3487_s13 }
 0x458   :  { %v2288_v8 = vpop.permute.xlu2 %2287 }
 0x459   :  { %2227 = vrot.lane.b32.xlu0 %v1848_v24, %s3475_s14  ;;  %v3290_v24 = vld [vmem:[#allocation2 + $0x8] sm:$0xff] }
 0x460   :  { %v2302_v60 = vpop.permute.xlu2 %2301 }
 0x461   :  { %2275 = vrot.lane.b32.xlu0 %v2058_v49, %s3485_s11  ;;  %v2362_v49 = vsub.f32 1.0, %v2361_v10  ;;  %v2472_v10 = vld [vmem:[#allocation8 + $0xb8] sm:$0xff] }
 0x463   :  { %v2363_v56 = vmul.f32 %v3271_v26, %v2362_v49  ;;  %v2465_v49 = vld [vmem:[#allocation8 + $0x80] sm:$0xff] }
 0x465   :  { %v2364_v46 = vadd.f32 %v3271_v26, %v2363_v56  ;;  %v2466_v56 = vld [vmem:[#allocation8 + $0x88] sm:$0xff] }
 0x467   :  { %v4458_v63 = vsel %vm2365_vm0, %v3271_v26, %v2364_v46  ;;  %v2471_v26 = vld [vmem:[#allocation8 + $0xb0] sm:$0xff] }
 0x468   :  { %v2286_v33 = vpop.permute.xlu1 %2285  ;;  %v2467_v46 = vld [vmem:[#allocation8 + $0x90] sm:$0xff] }
 0x470   :  { %v2258_v14 = vpop.permute.xlu1 %2257 }
 0x471   :  { %v2330_v23 = vsel %vm2327_vm11, %v2325_v30, %v2258_v14  ;;  %v2511_v14 = vld [vmem:[#allocation8 + $0x1f0] sm:$0xff]  ;;  %v2500_v30 = vld [vmem:[#allocation8 + $0x198] sm:$0xff] }
 0x472   :  { %2581 = vmatpush.msra.mxu2 %v2511_v14  ;;  %v2457_v14 = vld [vmem:[#allocation8 + $0x40] sm:$0xff] }
 0x474   :  { %2582 = vmatpush.msra.mxu2 %v2507_v50  ;;  %v2453_v50 = vld [vmem:[#allocation8 + $0x20] sm:$0xff] }
 0x478   :  { %v2270_v15 = vpop.permute.xlu1 %2269 }
 0x479   :  { %v2333_v35 = vsel %vm2332_vm12, %v2328_v55, %v2270_v15  ;;  %v2506_v15 = vld [vmem:[#allocation8 + $0x1c8] sm:$0xff] }
 0x47a   :  { %v2338_v38 = vsel %vm2337_vm13, %v2333_v35, %v2286_v33  ;;  %v2510_v33 = vld [vmem:[#allocation8 + $0x1e8] sm:$0xff] }
 0x47b   :  { %v2343_v16 = vsel %vm2342_vm14, %v2338_v38, %v2302_v60  ;;  %2552 = vmatpush.msra.mxu1 %v2510_v33  ;;  %v2464_v33 = vld [vmem:[#allocation8 + $0x78] sm:$0xff] }
 0x47c   :  { %v2348_v9 = vadd.f32 %v3288_v29, %v2343_v16 }
 0x47d   :  { %2553 = vmatpush.msra.mxu1 %v2506_v15  ;;  %v2460_v15 = vld [vmem:[#allocation8 + $0x58] sm:$0xff] }
 0x47f   :  { %2554 = vmatpush.msra.mxu1 %v2502_v48 }
 0x480   :  { %v2272_v25 = vpop.permute.xlu1 %2271 }
 0x481   :  { %v2334_v45 = vsel %vm2332_vm12, %v2329_v61, %v2272_v25 }
 0x482   :  { %v2339_v42 = vsel %vm2337_vm13, %v2334_v45, %v2288_v8  ;;  %v2508_v8 = vld [vmem:[#allocation8 + $0x1d8] sm:$0xff] }
 0x483   :  { %2611 = vmatpush.msrb.mxu3 %v2508_v8  ;;  %v2454_v8 = vld [vmem:[#allocation8 + $0x28] sm:$0xff] }
 0x485   :  { %2612 = vmatpush.msrb.mxu3 %v2504_v12 }
 0x487   :  { %2613 = vmatpush.msrb.mxu3 %v2500_v30 }
 0x488   :  { %v2244_v53 = vpop.permute.xlu1 %2243 }
 0x48b   :  { %2352 = vadd.xlane.f32.xlu0 %v2348_v9 }
 0x497   :  { %v2274_v22 = vpop.permute.xlu2 %2273 }
 0x498   :  { %v2335_v7 = vsel %vm2332_vm12, %v2330_v23, %v2274_v22  ;;  %v2498_v22 = vld [vmem:[#allocation8 + $0x188] sm:$0xff]  ;;  %v2493_v23 = vld [vmem:[#allocation8 + $0x160] sm:$0xff] }
 0x499   :  { %2555 = vmatpush.msra.mxu1 %v2498_v22 }
 0x49f   :  { %v2260_v44 = vpop.permute.xlu2 %2259 }
 0x4af   :  { %v2308_v59 = vpop.permute.xlu2 %2307 }
 0x4bb   :  { %v2290_v34 = vpop.permute.xlu0 %2289 }
 0x4bc   :  { %v2340_v0 = vsel %vm2337_vm13, %v2335_v7, %v2290_v34  ;;  %v2499_v34 = vld [vmem:[#allocation8 + $0x190] sm:$0xff]  ;;  %v2494_v7 = vld [vmem:[#allocation8 + $0x168] sm:$0xff] }
 0x4bd   :  { %2556 = vmatpush.msra.mxu1 %v2494_v7 }
 0x4bf   :  { %v2306_v2 = vpop.permute.xlu1 %2305 }
 0x4c0   :  { %v2345_v43 = vsel %vm2342_vm14, %v2340_v0, %v2306_v2  ;;  %v2495_v0 = vld [vmem:[#allocation8 + $0x170] sm:$0xff]  ;;  %v2496_v2 = vld [vmem:[#allocation8 + $0x178] sm:$0xff] }
 0x4c1   :  { %v2350_v31 = vadd.f32 %v3289_v21, %v2345_v43  ;;  %2614 = vmatpush.msrb.mxu3 %v2496_v2  ;;  %v2489_v43 = vld [vmem:[#allocation8 + $0x140] sm:$0xff]  ;;  %v2490_v21 = vld [vmem:[#allocation8 + $0x148] sm:$0xff] }
 0x4c2   :  { %2557 = vmatpush.msra.mxu1 %v2490_v21 }
 0x4c3   :  { %2356 = vadd.xlane.f32.xlu2 %v2350_v31  ;;  %v2304_v5 = vpop.permute.xlu0 %2303 }
 0x4c4   :  { %v2344_v27 = vsel %vm2342_vm14, %v2339_v42, %v2304_v5  ;;  %v2492_v5 = vld [vmem:[#allocation8 + $0x158] sm:$0xff] }
 0x4c5   :  { %v2349_v47 = vadd.f32 %v3290_v24, %v2344_v27  ;;  %2615 = vmatpush.msrb.mxu3 %v2492_v5  ;;  %v2485_v27 = vld [vmem:[#allocation8 + $0x120] sm:$0xff]  ;;  %v2486_v24 = vld [vmem:[#allocation8 + $0x128] sm:$0xff] }
 0x4c6   :  { %2558 = vmatpush.msra.mxu1 %v2486_v24 }
 0x4c7   :  { %2354 = vadd.xlane.f32.xlu1 %v2349_v47  ;;  %v2292_v62 = vpop.permute.xlu1 %2291 }
 0x4cb   :  { %v2228_v13 = vpop.permute.xlu0 %2227 }
 0x4cc   :  { %v2321_v6 = vsel %vm2317_vm9, %v2316_v54, %v2228_v13  ;;  %v2488_v13 = vld [vmem:[#allocation8 + $0x138] sm:$0xff]  ;;  %v2481_v54 = vld [vmem:[#allocation8 + $0x100] sm:$0xff] }
 0x4cd   :  { %v2326_v52 = vsel %vm2322_vm10, %v2321_v6, %v2244_v53  ;;  %v2503_v53 = vld [vmem:[#allocation8 + $0x1b0] sm:$0xff]  ;;  %2616 = vmatpush.msrb.mxu3 %v2488_v13 }
 0x4ce   :  { %v2331_v32 = vsel %vm2327_vm11, %v2326_v52, %v2260_v44  ;;  %2583 = vmatpush.msra.mxu2 %v2503_v53  ;;  %v2482_v44 = vld [vmem:[#allocation8 + $0x108] sm:$0xff]  ;;  %v2483_v6 = vld [vmem:[#allocation8 + $0x110] sm:$0xff]  ;;  %v2484_v52 = vld [vmem:[#allocation8 + $0x118] sm:$0xff] }
 0x4cf   :  { %2559 = vmatpush.msra.mxu1 %v2482_v44  ;;  %2617 = vmatpush.msrb.mxu3 %v2484_v52 }
 0x4d0   :  { %2584 = vmatpush.msra.mxu2 %v2499_v34 }
 0x4d2   :  { %2585 = vmatpush.msra.mxu2 %v2495_v0 }
 0x4d3   :  { %v2276_v39 = vpop.permute.xlu0 %2275 }
 0x4d4   :  { %v2336_v57 = vsel %vm2332_vm12, %v2331_v32, %v2276_v39  ;;  %v2477_v32 = vld [vmem:[#allocation8 + $0xe0] sm:$0xff]  ;;  %v2478_v39 = vld [vmem:[#allocation8 + $0xe8] sm:$0xff] }
 0x4d5   :  { %v2341_v3 = vsel %vm2337_vm13, %v2336_v57, %v2292_v62  ;;  %v2479_v62 = vld [vmem:[#allocation8 + $0xf0] sm:$0xff]  ;;  %2560 = vmatpush.msra.mxu1 %v2478_v39  ;;  %v2480_v57 = vld [vmem:[#allocation8 + $0xf8] sm:$0xff] }
 0x4d6   :  { %v2346_v37 = vsel %vm2342_vm14, %v2341_v3, %v2308_v59  ;;  %2618 = vmatpush.msrb.mxu3 %v2480_v57  ;;  %v2473_v59 = vld [vmem:[#allocation8 + $0xc0] sm:$0xff]  ;;  %v2474_v3 = vld [vmem:[#allocation8 + $0xc8] sm:$0xff]  ;;  %v2670_v57 = vld [vmem:[#allocation10 + $0x78] sm:$0xff] }
 0x4d7   :  { %v2351_v40 = vadd.f32 %v3291_v58, %v2346_v37  ;;  %v2475_v37 = vld [vmem:[#allocation8 + $0xd0] sm:$0xff]  ;;  %2561 = vmatpush.msra.mxu1 %v2474_v3  ;;  %v2476_v58 = vld [vmem:[#allocation8 + $0xd8] sm:$0xff] }
 0x4d8   :  { %2619 = vmatpush.msrb.mxu3 %v2476_v58  ;;  %v2669_v3 = vld [vmem:[#allocation10 + $0x70] sm:$0xff] }
 0x4d9   :  { %2358 = vadd.xlane.f32.xlu0 %v2351_v40  ;;  %2562 = vmatpush.msra.mxu1 %v2470_v11  ;;  %v2668_v11 = vld [vmem:[#allocation10 + $0x68] sm:$0xff] }
 0x4da   :  { %2620 = vmatpush.msrb.mxu3 %v2472_v10  ;;  %v2702_v10 = vld [vmem:[#allocation10 + $0x178] sm:$0xff] }
 0x4db   :  { %2563 = vmatpush.msra.mxu1 %v2466_v56  ;;  %v2667_v56 = vld [vmem:[#allocation10 + $0x60] sm:$0xff] }
 0x4fe   :  { %v2353_v20 = vpop.xlane.xlu0 %2352 }
 0x4ff   :  { %v2367_v19 = vmul.f32 %v4458_v63, %v2353_v20  ;;  %v2468_v20 = vld [vmem:[#allocation8 + $0x98] sm:$0xff] }
 0x500   :  { %2621 = vmatpush.msrb.mxu3 %v2468_v20 }
 0x501   :  { %v4461_v28 = vsub.f32 %v2348_v9, %v2367_v19  ;;  %v2501_v9 = vld [vmem:[#allocation8 + $0x1a0] sm:$0xff] }
 0x502   :  { %2525 = vmatpush.msra.mxu0 %v2501_v9  ;;  %v2461_v19 = vld [vmem:[#allocation8 + $0x60] sm:$0xff]  ;;  %2622 = vmatpush.msrb.mxu3 %v2464_v33  ;;  %v2717_v33 = vld [vmem:[#allocation10 + $0x1f0] sm:$0xff] }
 0x503   :  { %v2375_v4 = vmul.f32 %v4461_v28, %v4461_v28 }
 0x504   :  { %2526 = vmatpush.msra.mxu0 %v2497_v51  ;;  %2623 = vmatpush.msrb.mxu3 %v2460_v15  ;;  %v4481_v51 = vld [vmem:[#allocation11] sm:$0xff] }
 0x505   :  { %2379 = vadd.xlane.f32.xlu1 %v2375_v4  ;;  %v2462_v4 = vld [vmem:[#allocation8 + $0x68] sm:$0xff]  ;;  %v4484_v30 = vperm.slane %v4481_v51, 0  ;;  %v4488_v0 = vperm.slane %v4481_v51, 1 }
 0x506   :  { %2527 = vmatpush.msra.mxu0 %v2493_v23  ;;  %2564 = vmatpush.msra.mxu1 %v2462_v4  ;;  %v2683_v4 = vld [vmem:[#allocation10 + $0xe0] sm:$0xff] }
 0x508   :  { %2528 = vmatpush.msra.mxu0 %v2489_v43  ;;  %2565 = vmatpush.msra.mxu1 %v2458_v17  ;;  %v2700_v17 = vld [vmem:[#allocation10 + $0x168] sm:$0xff] }
 0x50a   :  { %2529 = vmatpush.msra.mxu0 %v2485_v27  ;;  %2566 = vmatpush.msra.mxu1 %v2454_v8  ;;  %v2682_v8 = vld [vmem:[#allocation10 + $0xd8] sm:$0xff] }
 0x50c   :  { %2530 = vmatpush.msra.mxu0 %v2481_v54 }
 0x50e   :  { %2531 = vmatpush.msra.mxu0 %v2477_v32 }
 0x510   :  { %2532 = vmatpush.msra.mxu0 %v2473_v59  ;;  %v2686_v59 = vld [vmem:[#allocation10 + $0xf8] sm:$0xff] }
 0x536   :  { %v2357_v36 = vpop.xlane.xlu2 %2356 }
 0x537   :  { %v2369_v41 = vmul.f32 %v4458_v63, %v2357_v36  ;;  %v2455_v36 = vld [vmem:[#allocation8 + $0x30] sm:$0xff] }
 0x539   :  { %v4466_v55 = vsub.f32 %v2350_v31, %v2369_v41  ;;  %v2491_v31 = vld [vmem:[#allocation8 + $0x150] sm:$0xff]  ;;  %v2456_v41 = vld [vmem:[#allocation8 + $0x38] sm:$0xff] }
 0x53a   :  { %v2355_v61 = vpop.xlane.xlu1 %2354  ;;  %2586 = vmatpush.msra.mxu2 %v2491_v31  ;;  %2624 = vmatpush.msrb.mxu3 %v2456_v41 }
 0x53b   :  { %v2368_v35 = vmul.f32 %v4458_v63, %v2355_v61  ;;  %v2377_v25 = vmul.f32 %v4466_v55, %v4466_v55  ;;  %v2449_v61 = vld [vmem:[#allocation8] sm:$0xff] }
 0x53d   :  { %v4471_v45 = vsub.f32 %v2349_v47, %v2368_v35  ;;  %2383 = vadd.xlane.f32.xlu0 %v2377_v25  ;;  %v2487_v47 = vld [vmem:[#allocation8 + $0x130] sm:$0xff]  ;;  %v2450_v35 = vld [vmem:[#allocation8 + $0x8] sm:$0xff] }
 0x53e   :  { %2587 = vmatpush.msra.mxu2 %v2487_v47  ;;  %2567 = vmatpush.msra.mxu1 %v2450_v35  ;;  %v2715_v35 = vld [vmem:[#allocation10 + $0x1e0] sm:$0xff] }
 0x53f   :  { %v2376_v42 = vmul.f32 %v4471_v45, %v4471_v45 }
 0x540   :  { %2588 = vmatpush.msra.mxu2 %v2483_v6  ;;  %2749 = vmatpush.msrb.mxu1 %v2686_v59  ;;  %v2660_v59 = vld [vmem:[#allocation10 + $0x28] sm:$0xff] }
 0x541   :  { %2381 = vadd.xlane.f32.xlu2 %v2376_v42  ;;  %v2451_v42 = vld [vmem:[#allocation8 + $0x10] sm:$0xff] }
 0x542   :  { %2589 = vmatpush.msra.mxu2 %v2479_v62 }
 0x544   :  { %2590 = vmatpush.msra.mxu2 %v2475_v37  ;;  %v2685_v37 = vld [vmem:[#allocation10 + $0xf0] sm:$0xff] }
 0x545   :  { %2750 = vmatpush.msrb.mxu1 %v2685_v37  ;;  %v2693_v37 = vld [vmem:[#allocation10 + $0x130] sm:$0xff] }
 0x546   :  { %2591 = vmatpush.msra.mxu2 %v2471_v26  ;;  %v2684_v26 = vld [vmem:[#allocation10 + $0xe8] sm:$0xff] }
 0x547   :  { %2751 = vmatpush.msrb.mxu1 %v2684_v26  ;;  %v2675_v26 = vld [vmem:[#allocation10 + $0xa0] sm:$0xff] }
 0x548   :  { %2592 = vmatpush.msra.mxu2 %v2467_v46  ;;  %v2718_v46 = vld [vmem:[#allocation10 + $0x1f8] sm:$0xff] }
 0x549   :  { %2752 = vmatpush.msrb.mxu1 %v2683_v4  ;;  %v2692_v4 = vld [vmem:[#allocation10 + $0x128] sm:$0xff] }
 0x54a   :  { %2593 = vmatpush.msra.mxu2 %v2463_v18  ;;  %v2701_v18 = vld [vmem:[#allocation10 + $0x170] sm:$0xff] }
 0x54b   :  { %2753 = vmatpush.msrb.mxu1 %v2682_v8  ;;  %v2689_v8 = vld [vmem:[#allocation10 + $0x110] sm:$0xff] }
 0x54c   :  { %v2359_v38 = vpop.xlane.xlu0 %2358  ;;  %2594 = vmatpush.msra.mxu2 %v2459_v1  ;;  %v2716_v1 = vld [vmem:[#allocation10 + $0x1e8] sm:$0xff] }
 0x54d   :  { %v2370_v60 = vmul.f32 %v4458_v63, %v2359_v38  ;;  %v2452_v38 = vld [vmem:[#allocation8 + $0x18] sm:$0xff] }
 0x54e   :  { %2595 = vmatpush.msra.mxu2 %v2455_v36  ;;  %2625 = vmatpush.msrb.mxu3 %v2452_v38  ;;  %v2681_v38 = vld [vmem:[#allocation10 + $0xd0] sm:$0xff] }
 0x54f   :  { %v4476_v16 = vsub.f32 %v2351_v40, %v2370_v60  ;;  %v2469_v40 = vld [vmem:[#allocation8 + $0xa0] sm:$0xff]  ;;  %2754 = vmatpush.msrb.mxu1 %v2681_v38  ;;  %v2705_v36 = vld [vmem:[#allocation10 + $0x190] sm:$0xff] }
 0x550   :  { %2533 = vmatpush.msra.mxu0 %v2469_v40  ;;  %2596 = vmatpush.msra.mxu2 %v2451_v42  ;;  %v2665_v42 = vld [vmem:[#allocation10 + $0x50] sm:$0xff] }
 0x551   :  { %v2378_v29 = vmul.f32 %v4476_v16, %v4476_v16  ;;  %2807 = vmatpush.msra.mxu3 %v2718_v46 }
 0x552   :  { %2534 = vmatpush.msra.mxu0 %v2465_v49  ;;  %2778 = vmatpush.msrb.mxu2 %v2702_v10 }
 0x553   :  { %2385 = vadd.xlane.f32.xlu1 %v2378_v29  ;;  %2808 = vmatpush.msra.mxu3 %v2717_v33  ;;  %v2672_v33 = vld [vmem:[#allocation10 + $0x88] sm:$0xff] }
 0x554   :  { %2535 = vmatpush.msra.mxu0 %v2461_v19  ;;  %2779 = vmatpush.msrb.mxu2 %v2701_v18  ;;  %v2656_v18 = vld [vmem:[#allocation10 + $0x8] sm:$0xff] }
 0x555   :  { %2809 = vmatpush.msra.mxu3 %v2716_v1  ;;  %v2671_v1 = vld [vmem:[#allocation10 + $0x80] sm:$0xff] }
 0x556   :  { %2536 = vmatpush.msra.mxu0 %v2457_v14  ;;  %2780 = vmatpush.msrb.mxu2 %v2700_v17  ;;  %v2655_v17 = vld [vmem:[#allocation10] sm:$0xff] }
 0x557   :  { %2810 = vmatpush.msra.mxu3 %v2715_v35  ;;  %v2687_v35 = vld [vmem:[#allocation10 + $0x100] sm:$0xff] }
 0x558   :  { %2537 = vmatpush.msra.mxu0 %v2453_v50  ;;  %v2666_v50 = vld [vmem:[#allocation10 + $0x58] sm:$0xff] }
 0x55a   :  { %2538 = vmatpush.msra.mxu0 %v2449_v61  ;;  %v2699_v61 = vld [vmem:[#allocation10 + $0x160] sm:$0xff] }
 0x55b   :  { %2781 = vmatpush.msrb.mxu2 %v2699_v61  ;;  %v2704_v61 = vld [vmem:[#allocation10 + $0x188] sm:$0xff] }
 0x55c   :  { %2720 = vmatpush.msrb.mxu0 %v2670_v57 }
 0x55e   :  { %2721 = vmatpush.msrb.mxu0 %v2669_v3  ;;  %v2676_v3 = vld [vmem:[#allocation10 + $0xa8] sm:$0xff] }
 0x560   :  { %2722 = vmatpush.msrb.mxu0 %v2668_v11  ;;  %v2659_v11 = vld [vmem:[#allocation10 + $0x20] sm:$0xff] }
 0x562   :  { %2723 = vmatpush.msrb.mxu0 %v2667_v56  ;;  %v2674_v56 = vld [vmem:[#allocation10 + $0x98] sm:$0xff] }
 0x564   :  { %2724 = vmatpush.msrb.mxu0 %v2666_v50  ;;  %v2706_v50 = vld [vmem:[#allocation10 + $0x198] sm:$0xff] }
 0x566   :  { %2725 = vmatpush.msrb.mxu0 %v2665_v42  ;;  %v2513_v42 = vld [vmem:[%s4588_s4] sm:$0xf]  ;;  %s3489_s4 = smov [#allocation13]  }
 0x567   :  { %v2515_v38 = vperm.slane %v2513_v42, 0  ;;  %s2938_s15 = sshll.u32 %s3489_s4, 4  ;;  %s2939_s15 = int_to_ptr.vmem [resolvable:$true] %s2938_s15 }
 0x578   :  { %v2380_v25 = vpop.xlane.xlu1 %2379 }
 0x579   :  { %v2387_v60 = vmul.f32 %v2380_v25, %v4458_v63 }
 0x57b   :  { %v2391_v29 = vadd.f32 1e-05, %v2387_v60 }
 0x57d   :  { %3272 = vrsqrt.f32 %v2391_v29  ;;  %vm2401_vm1 = vweird.f32 %v2391_v29 }
 0x583   :  { %v3273_v9 = vpop.eup %3272 }
 0x584   :  { %v2396_v48 = vmul.f32 %v3273_v9, %v2391_v29  ;;  %vm2402_vm15 = vweird.f32 %v3273_v9  ;;  %v2698_v29 = vld [vmem:[#allocation10 + $0x158] sm:$0xff] }
 0x585   :  { %vm2403_vm2 = vmor %vm2401_vm1, %vm2402_vm15  ;;  %2782 = vmatpush.msrb.mxu2 %v2698_v29 }
 0x586   :  { %v2397_v53 = vmul.f32 %v3273_v9, %v2396_v48 }
 0x588   :  { %v2398_v12 = vmul.f32 0.5, %v2397_v53  ;;  %v2664_v53 = vld [vmem:[#allocation10 + $0x48] sm:$0xff] }
 0x589   :  { %2726 = vmatpush.msrb.mxu0 %v2664_v53 }
 0x58a   :  { %v2399_v22 = vsub.f32 1.5, %v2398_v12  ;;  %v2680_v12 = vld [vmem:[#allocation10 + $0xc8] sm:$0xff] }
 0x58b   :  { %2755 = vmatpush.msrb.mxu1 %v2680_v12 }
 0x58c   :  { %v2400_v34 = vmul.f32 %v3273_v9, %v2399_v22 }
 0x58e   :  { %v2404_v23 = vsel %vm2403_vm2, %v3273_v9, %v2400_v34  ;;  %v2697_v34 = vld [vmem:[#allocation10 + $0x150] sm:$0xff] }
 0x58f   :  { %v2435_v7 = vmul.f32 %v2404_v23, %v4461_v28  ;;  %v2713_v23 = vld [vmem:[#allocation10 + $0x1d0] sm:$0xff]  ;;  %2783 = vmatpush.msrb.mxu2 %v2697_v34  ;;  %v2517_v34 = vperm.slane %v2513_v42, 2 }
 0x591   :  { %v2440_v2 = vmul.f32 %v4484_v30, %v2435_v7 }
 0x593   :  { %v4492_v43 = vadd.f32 %v4488_v0, %v2440_v2  ;;  %v2679_v2 = vld [vmem:[#allocation10 + $0xc0] sm:$0xff] }
 0x594   :  { %2756 = vmatpush.msrb.mxu1 %v2679_v2 }
 0x595   :  { %2539 = vmatmul.f32.vlgmr.msra.gmra.mxu0 %v4492_v43  ;;  %2568 = vmatmul.f32.vlgmr.msra.gmra.mxu1 %v4492_v43 }
 0x596   :  { %2597 = vmatmul.f32.vlgmr.msra.gmra.mxu2 %v4492_v43  ;;  %2626 = vmatmul.f32.vlgmr.msrb.gmra.mxu3 %v4492_v43 }
 0x5b0   :  { %v2384_v21 = vpop.xlane.xlu0 %2383 }
 0x5b1   :  { %v2389_v31 = vmul.f32 %v2384_v21, %v4458_v63 }
 0x5b3   :  { %v2393_v28 = vadd.f32 1e-05, %v2389_v31  ;;  %v2696_v31 = vld [vmem:[#allocation10 + $0x148] sm:$0xff] }
 0x5b4   :  { %v2382_v5 = vpop.xlane.xlu2 %2381  ;;  %2784 = vmatpush.msrb.mxu2 %v2696_v31 }
 0x5b5   :  { %3274 = vrsqrt.f32 %v2393_v28  ;;  %v2388_v27 = vmul.f32 %v2382_v5, %v4458_v63  ;;  %vm2421_vm7 = vweird.f32 %v2393_v28 }
 0x5b7   :  { %v2392_v24 = vadd.f32 1e-05, %v2388_v27  ;;  %v2662_v27 = vld [vmem:[#allocation10 + $0x38] sm:$0xff] }
 0x5b9   :  { %3276 = vrsqrt.f32 %v2392_v24  ;;  %vm2411_vm5 = vweird.f32 %v2392_v24 }
 0x5bb   :  { %v4500_v47 = vpop.eup %3274 }
 0x5bc   :  { %v2416_v13 = vmul.f32 %v4500_v47, %v2393_v28  ;;  %vm2422_vm4 = vweird.f32 %v4500_v47  ;;  %v2712_v28 = vld [vmem:[#allocation10 + $0x1c8] sm:$0xff] }
 0x5bd   :  { %vm4512_vm8 = vmor %vm2421_vm7, %vm2422_vm4 }
 0x5be   :  { %v2417_v54 = vmul.f32 %v4500_v47, %v2416_v13  ;;  %v2711_v13 = vld [vmem:[#allocation10 + $0x1c0] sm:$0xff] }
 0x5bf   :  { %v3277_v44 = vpop.eup %3276 }
 0x5c0   :  { %v2418_v6 = vmul.f32 0.5, %v2417_v54  ;;  %v2406_v52 = vmul.f32 %v3277_v44, %v2392_v24  ;;  %vm2412_vm3 = vweird.f32 %v3277_v44  ;;  %v2678_v24 = vld [vmem:[#allocation10 + $0xb8] sm:$0xff] }
 0x5c1   :  { %vm2413_vm6 = vmor %vm2411_vm5, %vm2412_vm3  ;;  %2757 = vmatpush.msrb.mxu1 %v2678_v24 }
 0x5c2   :  { %v2407_v32 = vmul.f32 %v3277_v44, %v2406_v52  ;;  %v2419_v39 = vsub.f32 1.5, %v2418_v6  ;;  %v2661_v52 = vld [vmem:[#allocation10 + $0x30] sm:$0xff] }
 0x5c4   :  { %v2408_v62 = vmul.f32 0.5, %v2407_v32  ;;  %v2420_v20 = vmul.f32 %v4500_v47, %v2419_v39  ;;  %v2677_v32 = vld [vmem:[#allocation10 + $0xb0] sm:$0xff]  ;;  %v2694_v39 = vld [vmem:[#allocation10 + $0x138] sm:$0xff] }
 0x5c5   :  { %2758 = vmatpush.msrb.mxu1 %v2677_v32 }
 0x5c6   :  { %v2409_v58 = vsub.f32 1.5, %v2408_v62  ;;  %v2386_v40 = vpop.xlane.xlu1 %2385  ;;  %v2424_v25 = vsel %vm4512_vm8, %v4500_v47, %v2420_v20  ;;  %v2695_v47 = vld [vmem:[#allocation10 + $0x140] sm:$0xff]  ;;  %v2710_v62 = vld [vmem:[#allocation10 + $0x1b8] sm:$0xff] }
 0x5c7   :  { %v2390_v49 = vmul.f32 %v2386_v40, %v4458_v63  ;;  %v2437_v9 = vmul.f32 %v2424_v25, %v4466_v55  ;;  %v2663_v55 = vld [vmem:[#allocation10 + $0x40] sm:$0xff]  ;;  %2785 = vmatpush.msrb.mxu2 %v2695_v47  ;;  %2759 = vmatpush.msrb.mxu1 %v2676_v3 }
 0x5c8   :  { %v2410_v19 = vmul.f32 %v3277_v44, %v2409_v58  ;;  %2727 = vmatpush.msrb.mxu0 %v2663_v55  ;;  %v2709_v58 = vld [vmem:[#allocation10 + $0x1b0] sm:$0xff]  ;;  %v2703_v25 = vld [vmem:[#allocation10 + $0x180] sm:$0xff] }
 0x5c9   :  { %v4508_v14 = vadd.f32 1e-05, %v2390_v49  ;;  %v2442_v21 = vmul.f32 %v4484_v30, %v2437_v9  ;;  %2786 = vmatpush.msrb.mxu2 %v2694_v39  ;;  %v2658_v49 = vld [vmem:[#allocation10 + $0x18] sm:$0xff]  ;;  %2760 = vmatpush.msrb.mxu1 %v2675_v26 }
 0x5ca   :  { %v2414_v15 = vsel %vm2413_vm6, %v3277_v44, %v2410_v19  ;;  %2728 = vmatpush.msrb.mxu0 %v2662_v27  ;;  %v2673_v19 = vld [vmem:[#allocation10 + $0x90] sm:$0xff] }
 0x5cb   :  { %v2436_v41 = vmul.f32 %v2414_v15, %v4471_v45  ;;  %3278 = vrsqrt.f32 %v4508_v14  ;;  %v2714_v45 = vld [vmem:[#allocation10 + $0x1d8] sm:$0xff]  ;;  %v4533_v44 = vadd.f32 %v4488_v0, %v2442_v21  ;;  %vm2431_vm10 = vweird.f32 %v4508_v14  ;;  %2787 = vmatpush.msrb.mxu2 %v2693_v37  ;;  %2761 = vmatpush.msrb.mxu1 %v2674_v56 }
 0x5cc   :  { %2811 = vmatpush.msra.mxu3 %v2714_v45  ;;  %2729 = vmatpush.msrb.mxu0 %v2661_v52  ;;  %v2690_v15 = vld [vmem:[#allocation10 + $0x118] sm:$0xff] }
 0x5cd   :  { %v2441_v60 = vmul.f32 %v4484_v30, %v2436_v41  ;;  %2762 = vmatpush.msrb.mxu1 %v2673_v19  ;;  %2788 = vmatpush.msrb.mxu2 %v2692_v4  ;;  %v2688_v41 = vld [vmem:[#allocation10 + $0x108] sm:$0xff] }
 0x5ce   :  { %2812 = vmatpush.msra.mxu3 %v2713_v23  ;;  %2730 = vmatpush.msrb.mxu0 %v2660_v59  ;;  %v2518_v23 = vperm.slane %v2513_v42, 3 }
 0x5cf   :  { %v4524_v48 = vadd.f32 %v4488_v0, %v2441_v60  ;;  %2763 = vmatpush.msrb.mxu1 %v2672_v33  ;;  %v2516_v60 = vperm.slane %v2513_v42, 1 }
 0x5d0   :  { %2813 = vmatpush.msra.mxu3 %v2712_v28  ;;  %2731 = vmatpush.msrb.mxu0 %v2659_v11 }
 0x5d1   :  { %v3279_v22 = vpop.eup %3278  ;;  %2542 = vmatmul.f32.gmra.mxu0 %v4524_v48  ;;  %2571 = vmatmul.f32.gmra.mxu1 %v4524_v48 }
 0x5d2   :  { %v2426_v7 = vmul.f32 %v3279_v22, %v4508_v14  ;;  %2600 = vmatmul.f32.gmra.mxu2 %v4524_v48  ;;  %2629 = vmatmul.f32.gmra.mxu3 %v4524_v48  ;;  %vm2432_vm9 = vweird.f32 %v3279_v22  ;;  %v2707_v14 = vld [vmem:[#allocation10 + $0x1a0] sm:$0xff] }
 0x5d3   :  { %2814 = vmatpush.msra.mxu3 %v2711_v13  ;;  %vm2433_vm11 = vmor %vm2431_vm10, %vm2432_vm9  ;;  %2732 = vmatpush.msrb.mxu0 %v2658_v49 }
 0x5d4   :  { %v2427_v5 = vmul.f32 %v3279_v22, %v2426_v7  ;;  %2764 = vmatpush.msrb.mxu1 %v2671_v1 }
 0x5d5   :  { %2815 = vmatpush.msra.mxu3 %v2710_v62 }
 0x5d6   :  { %v2428_v54 = vmul.f32 0.5, %v2427_v5 }
 0x5d7   :  { %2816 = vmatpush.msra.mxu3 %v2709_v58 }
 0x5d8   :  { %v2429_v6 = vsub.f32 1.5, %v2428_v54 }
 0x5d9   :  { %2545 = vmatmul.f32.gmra.mxu0 %v4533_v44  ;;  %2574 = vmatmul.f32.gmra.mxu1 %v4533_v44 }
 0x5da   :  { %v2430_v57 = vmul.f32 %v3279_v22, %v2429_v6  ;;  %2603 = vmatmul.f32.gmra.mxu2 %v4533_v44  ;;  %2632 = vmatmul.f32.gmra.mxu3 %v4533_v44 }
 0x5dc   :  { %v2434_v40 = vsel %vm2433_vm11, %v3279_v22, %v2430_v57 }
 0x5dd   :  { %v2438_v10 = vmul.f32 %v2434_v40, %v4476_v16  ;;  %v2657_v16 = vld [vmem:[#allocation10 + $0x10] sm:$0xff] }
 0x5de   :  { %2733 = vmatpush.msrb.mxu0 %v2657_v16 }
 0x5df   :  { %v2443_v46 = vmul.f32 %v4484_v30, %v2438_v10  ;;  %v2708_v30 = vld [vmem:[#allocation10 + $0x1a8] sm:$0xff] }
 0x5e0   :  { %2817 = vmatpush.msra.mxu3 %v2708_v30  ;;  %2734 = vmatpush.msrb.mxu0 %v2656_v18 }
 0x5e1   :  { %v4544_v20 = vadd.f32 %v4488_v0, %v2443_v46  ;;  %v2691_v0 = vld [vmem:[#allocation10 + $0x120] sm:$0xff] }
 0x5e2   :  { %2789 = vmatpush.msrb.mxu2 %v2691_v0  ;;  %2818 = vmatpush.msra.mxu3 %v2707_v14 }
 0x5e3   :  { %2548 = vmatmul.f32.gmra.mxu0 %v4544_v20  ;;  %2577 = vmatmul.f32.gmra.mxu1 %v4544_v20 }
 0x5e4   :  { %2606 = vmatmul.f32.gmra.mxu2 %v4544_v20  ;;  %2635 = vmatmul.f32.gmra.mxu3 %v4544_v20 }
 0x5e5   :  { %2735 = vmatpush.msrb.mxu0 %v2655_v17  ;;  %2790 = vmatpush.msrb.mxu2 %v2690_v15 }
 0x5e6   :  { %2819 = vmatpush.msra.mxu3 %v2706_v50 }
 0x5e7   :  { %2791 = vmatpush.msrb.mxu2 %v2689_v8 }
 0x5e8   :  { %2820 = vmatpush.msra.mxu3 %v2705_v36  ;;  %v2719_v36 = vperm.slane %v4481_v51, 4 }
 0x5e9   :  { %2792 = vmatpush.msrb.mxu2 %v2688_v41 }
 0x5ea   :  { %2821 = vmatpush.msra.mxu3 %v2704_v61 }
 0x5eb   :  { %2793 = vmatpush.msrb.mxu2 %v2687_v35 }
 0x5ec   :  { %2822 = vmatpush.msra.mxu3 %v2703_v25 }
 0x612   :  { %v2540_v29 = vpop.f32.mrf.mxu0  ;;  %v2569_v45 = vpop.f32.mrf.mxu1 }
 0x613   :  { %v2541_v9 = vadd.f32 %v2540_v29, %v2515_v38  ;;  %v2570_v53 = vadd.f32 %v2569_v45, %v2516_v60 }
 0x615   :  { %v2639_v12 = vmax.f32 %v2541_v9, 0.0  ;;  %v2640_v22 = vmax.f32 %v2570_v53, 0.0 }
 0x617   :  { %2736 = vmatmul.f32.vlgmr.msrb.gmra.mxu0 %v2639_v12  ;;  %2765 = vmatmul.f32.vlgmr.msrb.gmra.mxu1 %v2640_v22 }
 0x619   :  { %v2598_v7 = vpop.f32.mrf.mxu2  ;;  %v2627_v55 = vpop.f32.mrf.mxu3 }
 0x61a   :  { %v2599_v2 = vadd.f32 %v2598_v7, %v2517_v34  ;;  %v2628_v21 = vadd.f32 %v2627_v55, %v2518_v23 }
 0x61c   :  { %v2641_v31 = vmax.f32 %v2599_v2, 0.0  ;;  %v2642_v28 = vmax.f32 %v2628_v21, 0.0 }
 0x61e   :  { %2794 = vmatmul.f32.vlgmr.msrb.gmra.mxu2 %v2641_v31  ;;  %2823 = vmatmul.f32.vlgmr.msra.gmra.mxu3 %v2642_v28 }
 0x64e   :  { %v2543_v5 = vpop.f32.mrf.mxu0  ;;  %v2572_v27 = vpop.f32.mrf.mxu1 }
 0x64f   :  { %v2544_v24 = vadd.f32 %v2543_v5, %v2515_v38  ;;  %v2573_v47 = vadd.f32 %v2572_v27, %v2516_v60 }
 0x651   :  { %v2643_v13 = vmax.f32 %v2544_v24, 0.0  ;;  %v2644_v54 = vmax.f32 %v2573_v47, 0.0 }
 0x653   :  { %2739 = vmatmul.f32.gmra.mxu0 %v2643_v13  ;;  %2768 = vmatmul.f32.gmra.mxu1 %v2644_v54 }
 0x655   :  { %v2601_v6 = vpop.f32.mrf.mxu2  ;;  %v2630_v52 = vpop.f32.mrf.mxu3 }
 0x656   :  { %v2602_v32 = vadd.f32 %v2601_v6, %v2517_v34  ;;  %v2631_v39 = vadd.f32 %v2630_v52, %v2518_v23  ;;  %v2546_v62 = vpop.f32.mrf.mxu0  ;;  %v2575_v57 = vpop.f32.mrf.mxu1 }
 0x657   :  { %v2547_v59 = vadd.f32 %v2546_v62, %v2515_v38  ;;  %v2576_v3 = vadd.f32 %v2575_v57, %v2516_v60 }
 0x658   :  { %v2645_v37 = vmax.f32 %v2602_v32, 0.0  ;;  %v2646_v58 = vmax.f32 %v2631_v39, 0.0 }
 0x659   :  { %v2647_v40 = vmax.f32 %v2547_v59, 0.0  ;;  %v2648_v11 = vmax.f32 %v2576_v3, 0.0 }
 0x65a   :  { %2797 = vmatmul.f32.gmra.mxu2 %v2645_v37  ;;  %2826 = vmatmul.f32.gmra.mxu3 %v2646_v58 }
 0x65b   :  { %2742 = vmatmul.f32.gmra.mxu0 %v2647_v40  ;;  %2771 = vmatmul.f32.gmra.mxu1 %v2648_v11 }
 0x65d   :  { %v2604_v26 = vpop.f32.mrf.mxu2  ;;  %v2633_v10 = vpop.f32.mrf.mxu3 }
 0x65e   :  { %v2605_v49 = vadd.f32 %v2604_v26, %v2517_v34  ;;  %v2634_v56 = vadd.f32 %v2633_v10, %v2518_v23 }
 0x660   :  { %v2649_v46 = vmax.f32 %v2605_v49, 0.0  ;;  %v2650_v16 = vmax.f32 %v2634_v56, 0.0  ;;  %v2549_v19 = vpop.f32.mrf.mxu0  ;;  %v2578_v4 = vpop.f32.mrf.mxu1 }
 0x661   :  { %v2550_v30 = vadd.f32 %v2549_v19, %v2515_v38  ;;  %v2579_v18 = vadd.f32 %v2578_v4, %v2516_v60 }
 0x662   :  { %2800 = vmatmul.f32.gmra.mxu2 %v2649_v46  ;;  %2829 = vmatmul.f32.gmra.mxu3 %v2650_v16 }
 0x663   :  { %v2651_v33 = vmax.f32 %v2550_v30, 0.0  ;;  %v2652_v0 = vmax.f32 %v2579_v18, 0.0 }
 0x665   :  { %2745 = vmatmul.f32.gmra.mxu0 %v2651_v33  ;;  %2774 = vmatmul.f32.gmra.mxu1 %v2652_v0 }
 0x667   :  { %v2607_v14 = vpop.f32.mrf.mxu2  ;;  %v2636_v17 = vpop.f32.mrf.mxu3 }
 0x668   :  { %v2608_v1 = vadd.f32 %v2607_v14, %v2517_v34  ;;  %v2637_v15 = vadd.f32 %v2636_v17, %v2518_v23 }
 0x66a   :  { %v2653_v50 = vmax.f32 %v2608_v1, 0.0  ;;  %v2654_v8 = vmax.f32 %v2637_v15, 0.0 }
 0x66c   :  { %2803 = vmatmul.f32.gmra.mxu2 %v2653_v50  ;;  %2832 = vmatmul.f32.gmra.mxu3 %v2654_v8 }
 0x694   :  { %v2737_v41 = vpop.f32.mrf.mxu0  ;;  %v2766_v35 = vpop.f32.mrf.mxu1 }
 0x695   :  { %v2738_v61 = vadd.f32 %v2737_v41, %v2719_v36 }
 0x697   :  { %v2767_v25 = vadd.f32 %v2766_v35, %v2738_v61  ;;  %v2925_v35 = vperm.slane %v4481_v51, 3 }
 0x6a1   :  { %v2795_v42 = vpop.f32.mrf.mxu2  ;;  %v2824_v60 = vpop.f32.mrf.mxu3 }
 0x6a2   :  { %v2796_v38 = vadd.f32 %v2795_v42, %v2767_v25 }
 0x6a4   :  { %v2825_v29 = vadd.f32 %v2824_v60, %v2796_v38 }
 0x6a6   :  { %v2836_v45 = vadd.f32 %v2825_v29, %v4492_v43 }
 0x6a8   :  { %2840 = vadd.xlane.f32.xlu2 %v2836_v45 }
 0x6d0   :  { %v2740_v9 = vpop.f32.mrf.mxu0  ;;  %v2769_v12 = vpop.f32.mrf.mxu1 }
 0x6d1   :  { %v2741_v53 = vadd.f32 %v2740_v9, %v2719_v36 }
 0x6d3   :  { %v2770_v22 = vadd.f32 %v2769_v12, %v2741_v53 }
 0x6d8   :  { %v2743_v34 = vpop.f32.mrf.mxu0  ;;  %v2772_v28 = vpop.f32.mrf.mxu1 }
 0x6d9   :  { %v2744_v2 = vadd.f32 %v2743_v34, %v2719_v36 }
 0x6db   :  { %v2773_v5 = vadd.f32 %v2772_v28, %v2744_v2 }
 0x6dd   :  { %v2798_v23 = vpop.f32.mrf.mxu2  ;;  %v2827_v7 = vpop.f32.mrf.mxu3 }
 0x6de   :  { %v2799_v55 = vadd.f32 %v2798_v23, %v2770_v22 }
 0x6e0   :  { %v2828_v21 = vadd.f32 %v2827_v7, %v2799_v55 }
 0x6e2   :  { %v2837_v31 = vadd.f32 %v2828_v21, %v4524_v48  ;;  %v2746_v47 = vpop.f32.mrf.mxu0  ;;  %v2775_v52 = vpop.f32.mrf.mxu1 }
 0x6e3   :  { %v2747_v54 = vadd.f32 %v2746_v47, %v2719_v36  ;;  %v2920_v36 = vperm.slane %v4481_v51, 2 }
 0x6e4   :  { %2842 = vadd.xlane.f32.xlu0 %v2837_v31 }
 0x6e5   :  { %v2801_v27 = vpop.f32.mrf.mxu2  ;;  %v2830_v43 = vpop.f32.mrf.mxu3  ;;  %v2776_v32 = vadd.f32 %v2775_v52, %v2747_v54 }
 0x6e6   :  { %v2802_v24 = vadd.f32 %v2801_v27, %v2773_v5 }
 0x6e8   :  { %v2831_v13 = vadd.f32 %v2830_v43, %v2802_v24 }
 0x6ea   :  { %v2838_v6 = vadd.f32 %v2831_v13, %v4533_v44 }
 0x6ec   :  { %2844 = vadd.xlane.f32.xlu1 %v2838_v6 }
 0x6ef   :  { %v2804_v39 = vpop.f32.mrf.mxu2  ;;  %v2833_v57 = vpop.f32.mrf.mxu3 }
 0x6f0   :  { %v2805_v62 = vadd.f32 %v2804_v39, %v2776_v32 }
 0x6f2   :  { %v2834_v59 = vadd.f32 %v2833_v57, %v2805_v62 }
 0x6f4   :  { %v2839_v48 = vadd.f32 %v2834_v59, %v4544_v20 }
 0x6f6   :  { %2846 = vadd.xlane.f32.xlu2 %v2839_v48 }
 0x71b   :  { %v2841_v3 = vpop.xlane.xlu2 %2840 }
 0x71c   :  { %v2848_v37 = vmul.f32 %v2841_v3, %v4458_v63 }
 0x71e   :  { %v2852_v58 = vsub.f32 %v2836_v45, %v2848_v37 }
 0x720   :  { %v2856_v40 = vmul.f32 %v2852_v58, %v2852_v58 }
 0x722   :  { %2860 = vadd.xlane.f32.xlu0 %v2856_v40 }
 0x757   :  { %v2843_v11 = vpop.xlane.xlu0 %2842 }
 0x758   :  { %v2849_v26 = vmul.f32 %v2843_v11, %v4458_v63 }
 0x75a   :  { %v2853_v44 = vsub.f32 %v2837_v31, %v2849_v26 }
 0x75c   :  { %v2857_v10 = vmul.f32 %v2853_v44, %v2853_v44 }
 0x75e   :  { %2862 = vadd.xlane.f32.xlu1 %v2857_v10 }
 0x75f   :  { %v2845_v49 = vpop.xlane.xlu1 %2844 }
 0x760   :  { %v2850_v56 = vmul.f32 %v2845_v49, %v4458_v63 }
 0x762   :  { %v4561_v46 = vsub.f32 %v2838_v6, %v2850_v56 }
 0x764   :  { %v2858_v20 = vmul.f32 %v4561_v46, %v4561_v46 }
 0x766   :  { %2864 = vadd.xlane.f32.xlu2 %v2858_v20 }
 0x769   :  { %v2847_v16 = vpop.xlane.xlu2 %2846 }
 0x76a   :  { %v2851_v19 = vmul.f32 %v2847_v16, %v4458_v63 }
 0x76c   :  { %v4566_v4 = vsub.f32 %v2839_v48, %v2851_v19 }
 0x76e   :  { %v2859_v30 = vmul.f32 %v4566_v4, %v4566_v4 }
 0x770   :  { %2866 = vadd.xlane.f32.xlu0 %v2859_v30 }
 0x795   :  { %v2861_v18 = vpop.xlane.xlu0 %2860 }
 0x796   :  { %v2868_v33 = vmul.f32 %v2861_v18, %v4458_v63 }
 0x798   :  { %v2872_v0 = vadd.f32 1e-05, %v2868_v33 }
 0x79a   :  { %3280 = vrsqrt.f32 %v2872_v0  ;;  %vm2882_vm13 = vweird.f32 %v2872_v0 }
 0x7a0   :  { %v3281_v14 = vpop.eup %3280 }
 0x7a1   :  { %v2877_v17 = vmul.f32 %v3281_v14, %v2872_v0  ;;  %vm2883_vm12 = vweird.f32 %v3281_v14 }
 0x7a2   :  { %vm2884_vm14 = vmor %vm2882_vm13, %vm2883_vm12 }
 0x7a3   :  { %v2878_v1 = vmul.f32 %v3281_v14, %v2877_v17 }
 0x7a5   :  { %v2879_v15 = vmul.f32 0.5, %v2878_v1 }
 0x7a7   :  { %v2880_v50 = vsub.f32 1.5, %v2879_v15 }
 0x7a9   :  { %v2881_v8 = vmul.f32 %v3281_v14, %v2880_v50 }
 0x7ab   :  { %v2885_v41 = vsel %vm2884_vm14, %v3281_v14, %v2881_v8 }
 0x7ac   :  { %v2916_v61 = vmul.f32 %v2885_v41, %v2852_v58 }
 0x7ae   :  { %v2921_v25 = vmul.f32 %v2920_v36, %v2916_v61 }
 0x7b0   :  { %v2926_v42 = vadd.f32 %v2925_v35, %v2921_v25 }
 0x7b2   :  { %2930 = vst [vmem:[#allocation13] sm:$0xff] %v2926_v42 }
 0x7d1   :  { %v2863_v38 = vpop.xlane.xlu1 %2862 }
 0x7d2   :  { %v2869_v60 = vmul.f32 %v2863_v38, %v4458_v63 }
 0x7d4   :  { %v2873_v29 = vadd.f32 1e-05, %v2869_v60 }
 0x7d6   :  { %3282 = vrsqrt.f32 %v2873_v29  ;;  %vm2892_vm15 = vweird.f32 %v2873_v29 }
 0x7d9   :  { %v2865_v45 = vpop.xlane.xlu2 %2864 }
 0x7da   :  { %v2870_v9 = vmul.f32 %v2865_v45, %v4458_v63 }
 0x7dc   :  { %v3283_v53 = vpop.eup %3282  ;;  %v2874_v12 = vadd.f32 1e-05, %v2870_v9 }
 0x7dd   :  { %v2887_v22 = vmul.f32 %v3283_v53, %v2873_v29  ;;  %vm2893_vm0 = vweird.f32 %v3283_v53 }
 0x7de   :  { %3284 = vrsqrt.f32 %v2874_v12  ;;  %vm2894_vm1 = vmor %vm2892_vm15, %vm2893_vm0  ;;  %vm2902_vm3 = vweird.f32 %v2874_v12 }
 0x7df   :  { %v2888_v34 = vmul.f32 %v3283_v53, %v2887_v22 }
 0x7e1   :  { %v2889_v23 = vmul.f32 0.5, %v2888_v34 }
 0x7e3   :  { %v2890_v7 = vsub.f32 1.5, %v2889_v23  ;;  %v2867_v51 = vpop.xlane.xlu0 %2866 }
 0x7e4   :  { %v3285_v55 = vpop.eup %3284  ;;  %v2871_v2 = vmul.f32 %v2867_v51, %v4458_v63 }
 0x7e5   :  { %v2891_v21 = vmul.f32 %v3283_v53, %v2890_v7  ;;  %v2897_v31 = vmul.f32 %v3285_v55, %v2874_v12  ;;  %vm2903_vm2 = vweird.f32 %v3285_v55 }
 0x7e6   :  { %v2875_v28 = vadd.f32 1e-05, %v2871_v2  ;;  %vm2904_vm4 = vmor %vm2902_vm3, %vm2903_vm2 }
 0x7e7   :  { %v2895_v5 = vsel %vm2894_vm1, %v3283_v53, %v2891_v21  ;;  %v2898_v27 = vmul.f32 %v3285_v55, %v2897_v31 }
 0x7e8   :  { %v2917_v24 = vmul.f32 %v2895_v5, %v2853_v44  ;;  %3286 = vrsqrt.f32 %v2875_v28  ;;  %vm2912_vm6 = vweird.f32 %v2875_v28 }
 0x7e9   :  { %v2899_v47 = vmul.f32 0.5, %v2898_v27 }
 0x7ea   :  { %v2922_v43 = vmul.f32 %v2920_v36, %v2917_v24 }
 0x7eb   :  { %v2900_v13 = vsub.f32 1.5, %v2899_v47 }
 0x7ec   :  { %v2927_v54 = vadd.f32 %v2925_v35, %v2922_v43 }
 0x7ed   :  { %v2901_v6 = vmul.f32 %v3285_v55, %v2900_v13 }
 0x7ee   :  { %v3287_v52 = vpop.eup %3286  ;;  %2931 = vst [vmem:[#allocation13 + $0x8] sm:$0xff] %v2927_v54 }
 0x7ef   :  { %v2905_v63 = vsel %vm2904_vm4, %v3285_v55, %v2901_v6  ;;  %v2907_v32 = vmul.f32 %v3287_v52, %v2875_v28  ;;  %vm2913_vm5 = vweird.f32 %v3287_v52 }
 0x7f0   :  { %v2918_v39 = vmul.f32 %v2905_v63, %v4561_v46  ;;  %vm2914_vm7 = vmor %vm2912_vm6, %vm2913_vm5 }
 0x7f1   :  { %v2908_v62 = vmul.f32 %v3287_v52, %v2907_v32 }
 0x7f2   :  { %v2923_v57 = vmul.f32 %v2920_v36, %v2918_v39 }
 0x7f3   :  { %v2909_v59 = vmul.f32 0.5, %v2908_v62 }
 0x7f4   :  { %v2928_v48 = vadd.f32 %v2925_v35, %v2923_v57 }
 0x7f5   :  { %v2910_v3 = vsub.f32 1.5, %v2909_v59 }
 0x7f6   :  { %2932 = vst [vmem:[#allocation13 + $0x10] sm:$0xff] %v2928_v48 }
 0x7f7   :  { %v2911_v37 = vmul.f32 %v3287_v52, %v2910_v3 }
 0x7f9   :  { %v2915_v58 = vsel %vm2914_vm7, %v3287_v52, %v2911_v37 }
 0x7fa   :  { %v2919_v40 = vmul.f32 %v2915_v58, %v4566_v4 }
 0x7fc   :  { %v2924_v11 = vmul.f32 %v2920_v36, %v2919_v40 }
 0x7fe   :  { %v2929_v26 = vadd.f32 %v2925_v35, %v2924_v11 }
 0x800   :  { %2933 = vst [vmem:[#allocation13 + $0x18] sm:$0xff] %v2929_v26 }
 0x801   :  { %2946 = dma.vmem_to_hbm [thread:$0]  %s2939_s15, 512, %s2941_s18, [#allocation4], %s3477_s21, %s3477_s21, %s3478_s22  }
 0x802   :  { %3468 = dma.done.wait [#allocation4], 512  }
 0x803   :  { %3469 = vsyncadd [#allocation4], 4294966784 }
 0x804   :  { %2951 = vsyncpa [#allocation3], 1 }
 0x805   :  { %2952 = vsyncpa [#allocation6], 1 }
 0x806   :  { %2953 = vsyncpa [#allocation9], 1 }
 0x807   :  { %2954 = vsyncpa [#allocation12], 1 }
 0x808   :  { %2955 = vsyncpa [#allocation4], 1 }

</bundles_post_ra>
